<compile_context>
chip_gen: v6e
topology: v6e:2x2x1
jax: 0.10.0
libtpu: 0.0.40
codegen_flags: <defaults>
</compile_context>

<pallas_src>
import functools

import jax
import jax.numpy as jnp
from jax.experimental import pallas as pl
from jax.experimental.pallas import tpu as pltpu

EPS = 1e-5


def _conv_bn_add_kernel(x_ref, res_ref, w_ref, gb_ref, o_ref, *scratch,
                        inv_p, use_bf16_matmul):
    # x_ref:   (Cin, Pp)  full input activation, resident across the grid
    # res_ref: (TC, Pp)   residual tile (x229), channels-first
    # w_ref:   (TC, Cin)  1x1 conv weight tile (bf16 if use_bf16_matmul)
    # gb_ref:  (TC, 2)    column 0 = gamma, column 1 = beta
    # o_ref:   (TC, Pp)
    # scratch: optionally ((Cin, Pp) bf16) cast-once copy of x
    if use_bf16_matmul:
        xb_ref = scratch[0]

        @pl.when(pl.program_id(0) == 0)
        def _cast_once():
            xb_ref[...] = x_ref[...].astype(jnp.bfloat16)

        x = xb_ref[...]
    else:
        x = x_ref[...]

    # 1x1 conv == channel-mixing matmul on the MXU (NCHW orientation):
    #   y[co, p] = sum_ci W[co, ci] * x[ci, p]
    y = jnp.dot(w_ref[...], x, preferred_element_type=jnp.float32)  # (TC, Pp)

    # One-pass BatchNorm statistics per output channel.  Padded columns of x
    # are zero, hence zero in y and y*y, so dividing by the true P is exact.
    mean = jnp.sum(y, axis=1, keepdims=True) * inv_p                # (TC, 1)
    mean_sq = jnp.sum(y * y, axis=1, keepdims=True) * inv_p         # (TC, 1)
    var = jnp.maximum(mean_sq - mean * mean, 0.0)                   # biased var

    gamma = gb_ref[:, 0:1]
    beta = gb_ref[:, 1:2]
    scale = gamma * jax.lax.rsqrt(var + EPS)                        # (TC, 1)
    shift = beta - mean * scale                                     # (TC, 1)
    o_ref[...] = res_ref[...] + y * scale + shift


def _default_tile_cout(c_out):
    """Pick the Cout tile per chip generation (see perf review)."""
    try:
        kind = jax.devices()[0].device_kind.lower()
    except Exception:  # pragma: no cover - defensive
        kind = ""
    if "v5" in kind and c_out % 144 == 0:
        return 144          # keep the DMA pipeline deep on bandwidth-bound v5
    if "v7" in kind and c_out % 216 == 0:
        return 216          # exactly one tile per TensorCore on v7x
    return c_out             # grid=(1,): best on v6e, safe default elsewhere


@functools.partial(jax.jit, static_argnames=("tile_cout", "use_bf16_matmul"))
def conv1x1_bn_add(x235, x229, weight, gamma, beta,
                   *, tile_cout=None, use_bf16_matmul=True):
    """x235, x229: NCHW f32. weight: (Cout, Cin, 1, 1). gamma/beta: (Cout,)."""
    n, c_in, h, w_sp = x235.shape
    c_out = weight.shape[0]
    p = n * h * w_sp
    p_pad = max(128, ((p + 127) // 128) * 128)   # 196 -> 256 lanes

    if tile_cout is None:
        tile_cout = _default_tile_cout(c_out)
    assert c_out % tile_cout == 0 and tile_cout % 8 == 0, "bad Cout tile"

    # NCHW -> (C, P) channels-first slab (pure reshape for N == 1), then
    # zero-pad the lane axis to a multiple of 128.
    x2d = jnp.transpose(x235, (1, 0, 2, 3)).reshape(c_in, p)
    r2d = jnp.transpose(x229, (1, 0, 2, 3)).reshape(c_out, p)
    if p_pad != p:
        x2d = jnp.pad(x2d, ((0, 0), (0, p_pad - p)))
        r2d = jnp.pad(r2d, ((0, 0), (0, p_pad - p)))

    w2d = weight.reshape(c_out, c_in)
    if use_bf16_matmul:
        w2d = w2d.astype(jnp.bfloat16)            # halves the weight DMA/VMEM
    gb = jnp.stack([gamma.astype(jnp.float32),
                    beta.astype(jnp.float32)], axis=1)   # (Cout, 2)

    grid = (c_out // tile_cout,)
    kernel = functools.partial(_conv_bn_add_kernel, inv_p=1.0 / p,
                               use_bf16_matmul=use_bf16_matmul)
    vmem = pltpu.MemorySpace.VMEM
    scratch_shapes = ([pltpu.VMEM((c_in, p_pad), jnp.bfloat16)]
                      if use_bf16_matmul else [])

    w_bytes = w2d.dtype.itemsize
    out2d = pl.pallas_call(
        kernel,
        out_shape=jax.ShapeDtypeStruct((c_out, p_pad), jnp.float32),
        grid=grid,
        in_specs=[
            # Full activation, resident across Cout tiles (fetched once).
            pl.BlockSpec((c_in, p_pad), lambda i: (0, 0), memory_space=vmem),
            pl.BlockSpec((tile_cout, p_pad), lambda i: (i, 0),
                         memory_space=vmem),
            pl.BlockSpec((tile_cout, c_in), lambda i: (i, 0),
                         memory_space=vmem),
            pl.BlockSpec((tile_cout, 2), lambda i: (i, 0), memory_space=vmem),
        ],
        out_specs=pl.BlockSpec((tile_cout, p_pad), lambda i: (i, 0),
                               memory_space=vmem),
        scratch_shapes=scratch_shapes,
        compiler_params=pltpu.CompilerParams(
            dimension_semantics=("parallel",),   # megacore sharding on v7x
        ),
        cost_estimate=pl.CostEstimate(
            flops=2 * p_pad * c_in * c_out,
            transcendentals=c_out,
            bytes_accessed=(4 * (c_in * p_pad + 2 * c_out * p_pad)
                            + w_bytes * c_out * c_in + 8 * c_out),
        ),
    )(x2d, r2d, w2d, gb)

    # Drop padded lanes, then (C, P) -> NCHW (free for N == 1).
    out2d = out2d[:, :p]
    return jnp.transpose(out2d.reshape(c_out, n, h, w_sp), (1, 0, 2, 3))


if __name__ == "__main__":
    key = jax.random.PRNGKey(0)
    k_x235, k_x229, k_w, k_g, k_b = jax.random.split(key, 5)

    N, C, H, W = 1, 432, 14, 14  # shapes implied by the module
    x235 = jax.random.normal(k_x235, (N, C, H, W), dtype=jnp.float32)
    x229 = jax.random.normal(k_x229, (N, C, H, W), dtype=jnp.float32)

    # Deterministic synthetic parameters (conv weight, BN affine params).
    weight = jax.random.normal(k_w, (C, C, 1, 1), dtype=jnp.float32) * 0.05
    gamma = 1.0 + 0.1 * jax.random.normal(k_g, (C,), dtype=jnp.float32)
    beta = 0.1 * jax.random.normal(k_b, (C,), dtype=jnp.float32)

    # Pure-JAX reference of the same math (training-mode BN, biased variance).
    y = jnp.einsum("oi,nihw->nohw", weight.reshape(C, C), x235)
    mean = y.mean(axis=(0, 2, 3), keepdims=True)
    var = y.var(axis=(0, 2, 3), keepdims=True)
    bn = (y - mean) * jax.lax.rsqrt(var + EPS) * gamma.reshape(1, C, 1, 1) \
        + beta.reshape(1, C, 1, 1)
    ref = x229 + bn

    # Default (bf16 matmul, f32 accumulate) path — tolerance reflects bf16.
    out = conv1x1_bn_add(x235, x229, weight, gamma, beta)
    jax.block_until_ready(out)
    assert jnp.allclose(out, ref, atol=2e-2, rtol=2e-2), \
        "bf16 kernel mismatch vs reference"

    # Full-precision path — tight check of the kernel math.
    out_f32 = conv1x1_bn_add(x235, x229, weight, gamma, beta,
                             use_bf16_matmul=False)
    jax.block_until_ready(out_f32)
    assert jnp.allclose(out_f32, ref, atol=1e-3, rtol=1e-3), \
        "f32 kernel mismatch vs reference"

    print("KERNEL_OK")
</pallas_src>

<mosaic_0001>
module attributes {stable_mosaic.version = 11 : i64} {
  func.func @_conv_bn_add_kernel(%arg0: i32, %arg1: memref<432x256xf32, #tpu.memory_space<vmem>>, %arg2: memref<432x256xf32, #tpu.memory_space<vmem>>, %arg3: memref<432x432xbf16, #tpu.memory_space<vmem>>, %arg4: memref<432x2xf32, #tpu.memory_space<vmem>>, %arg5: memref<432x256xf32, #tpu.memory_space<vmem>>, %arg6: memref<432x256xbf16, #tpu.memory_space<vmem>>) attributes {dimension_semantics = [#tpu.dimension_semantics<parallel>], iteration_bounds = array<i64: 1>, scalar_prefetch = 0 : i64, scratch_operands = 1 : i64, tpu.core_type = #tpu.core_type<tc>, window_params = [{pipeline_mode = #tpu.pipeline_mode<synchronous>, transform_indices = @transform_0, window_bounds = array<i64: 432, 256>}, {transform_indices = @transform_1, window_bounds = array<i64: 432, 256>}, {transform_indices = @transform_2, window_bounds = array<i64: 432, 432>}, {transform_indices = @transform_3, window_bounds = array<i64: 432, 2>}, {transform_indices = @transform_4, window_bounds = array<i64: 432, 256>}]} {
    %c0_i32 = arith.constant 0 : i32
    %0 = arith.cmpi eq, %arg0, %c0_i32 : i32
    %1 = arith.extui %0 : i1 to i32
    %c0_i32_0 = arith.constant 0 : i32
    %2 = arith.cmpi ne, %1, %c0_i32_0 : i32
    scf.if %2 {
      %c0_17 = arith.constant 0 : index
      %c0_18 = arith.constant 0 : index
      %34 = vector.load %arg1[%c0_17, %c0_18] : memref<432x256xf32, #tpu.memory_space<vmem>>, vector<432x256xf32>
      %35 = arith.truncf %34 : vector<432x256xf32> to vector<432x256xbf16>
      %c0_19 = arith.constant 0 : index
      %c0_20 = arith.constant 0 : index
      %36 = vector.load %arg6[%c0_19, %c0_20] : memref<432x256xbf16, #tpu.memory_space<vmem>>, vector<432x256xbf16>
      tpu.vector_store %arg6[%c0_19, %c0_20], %35 {strides = array<i32>} : memref<432x256xbf16, #tpu.memory_space<vmem>>, vector<432x256xbf16>,
    } else {
    }
    %c0 = arith.constant 0 : index
    %c0_1 = arith.constant 0 : index
    %3 = vector.load %arg6[%c0, %c0_1] : memref<432x256xbf16, #tpu.memory_space<vmem>>, vector<432x256xbf16>
    %c0_2 = arith.constant 0 : index
    %c0_3 = arith.constant 0 : index
    %4 = vector.load %arg3[%c0_2, %c0_3] : memref<432x432xbf16, #tpu.memory_space<vmem>>, vector<432x432xbf16>
    %cst = arith.constant dense<0.000000e+00> : vector<432x256xf32>
    %5 = tpu.matmul %4, %3, %cst {dimension_numbers = #tpu.dot_dimension_numbers<[1], [0], [0], [1], [0, 0, 1, 1], [], []>} : vector<432x432xbf16>, vector<432x256xbf16>, vector<432x256xf32> -> vector<432x256xf32>
    %cst_4 = arith.constant dense<0.000000e+00> : vector<432xf32>
    %6 = vector.multi_reduction <add>, %5, %cst_4 [1] : vector<432x256xf32> to vector<432xf32>
    %7 = vector.shape_cast %6 : vector<432xf32> to vector<432x1xf32>
    %cst_5 = arith.constant 0.00510204071 : f32
    %8 = vector.broadcast %cst_5 : f32 to vector<432x1xf32>
    %9 = arith.mulf %7, %8 : vector<432x1xf32>
    %10 = arith.mulf %5, %5 : vector<432x256xf32>
    %cst_6 = arith.constant dense<0.000000e+00> : vector<432xf32>
    %11 = vector.multi_reduction <add>, %10, %cst_6 [1] : vector<432x256xf32> to vector<432xf32>
    %12 = vector.shape_cast %11 : vector<432xf32> to vector<432x1xf32>
    %cst_7 = arith.constant 0.00510204071 : f32
    %13 = vector.broadcast %cst_7 : f32 to vector<432x1xf32>
    %14 = arith.mulf %12, %13 : vector<432x1xf32>
    %15 = arith.mulf %9, %9 : vector<432x1xf32>
    %16 = arith.subf %14, %15 : vector<432x1xf32>
    %cst_8 = arith.constant 0.000000e+00 : f32
    %17 = vector.broadcast %cst_8 : f32 to vector<432x1xf32>
    %18 = arith.maximumf %16, %17 : vector<432x1xf32>
    %c0_9 = arith.constant 0 : index
    %c0_10 = arith.constant 0 : index
    %19 = vector.load %arg4[%c0_9, %c0_10] : memref<432x2xf32, #tpu.memory_space<vmem>>, vector<432x1xf32>
    %c0_11 = arith.constant 0 : index
    %c1 = arith.constant 1 : index
    %20 = vector.load %arg4[%c0_11, %c1] : memref<432x2xf32, #tpu.memory_space<vmem>>, vector<432x1xf32>
    %cst_12 = arith.constant 9.99999974E-6 : f32
    %21 = vector.broadcast %cst_12 : f32 to vector<432x1xf32>
    %22 = arith.addf %18, %21 : vector<432x1xf32>
    %23 = math.rsqrt %22 : vector<432x1xf32>
    %24 = arith.mulf %19, %23 : vector<432x1xf32>
    %25 = arith.mulf %9, %24 : vector<432x1xf32>
    %26 = arith.subf %20, %25 : vector<432x1xf32>
    %c0_13 = arith.constant 0 : index
    %c0_14 = arith.constant 0 : index
    %27 = vector.load %arg2[%c0_13, %c0_14] : memref<432x256xf32, #tpu.memory_space<vmem>>, vector<432x256xf32>
    %28 = vector.broadcast %24 : vector<432x1xf32> to vector<432x256xf32>
    %29 = arith.mulf %5, %28 : vector<432x256xf32>
    %30 = arith.addf %27, %29 : vector<432x256xf32>
    %31 = vector.broadcast %26 : vector<432x1xf32> to vector<432x256xf32>
    %32 = arith.addf %30, %31 : vector<432x256xf32>
    %c0_15 = arith.constant 0 : index
    %c0_16 = arith.constant 0 : index
    %33 = vector.load %arg5[%c0_15, %c0_16] : memref<432x256xf32, #tpu.memory_space<vmem>>, vector<432x256xf32>
    tpu.vector_store %arg5[%c0_15, %c0_16], %32 {strides = array<i32>} : memref<432x256xf32, #tpu.memory_space<vmem>>, vector<432x256xf32>,
    return
  }
  func.func @transform_0(%arg0: i32) -> (i32, i32) {
    %c0_i32 = arith.constant 0 : i32
    %c0_i32_0 = arith.constant 0 : i32
    %c0_i32_1 = arith.constant 0 : i32
    return %c0_i32, %c0_i32_0 : i32, i32
  }
  func.func @transform_1(%arg0: i32) -> (i32, i32) {
    %c0_i32 = arith.constant 0 : i32
    %c0_i32_0 = arith.constant 0 : i32
    return %arg0, %c0_i32 : i32, i32
  }
  func.func @transform_2(%arg0: i32) -> (i32, i32) {
    %c0_i32 = arith.constant 0 : i32
    %c0_i32_0 = arith.constant 0 : i32
    return %arg0, %c0_i32 : i32, i32
  }
  func.func @transform_3(%arg0: i32) -> (i32, i32) {
    %c0_i32 = arith.constant 0 : i32
    %c0_i32_0 = arith.constant 0 : i32
    return %arg0, %c0_i32 : i32, i32
  }
  func.func @transform_4(%arg0: i32) -> (i32, i32) {
    %c0_i32 = arith.constant 0 : i32
    %c0_i32_0 = arith.constant 0 : i32
    return %arg0, %c0_i32 : i32, i32
  }
}

</mosaic_0001>

<bundles_post_ra>
// kernel: conv1x1_bn_add.1
= control target key start
LH: loop header
LB: loop body
LE: loop exit
PB: predicated region body
PF: predicated region fallthrough
CT: control target
= control target key end

     0   :  { %vm1453_vm0 = vcmask 392192   ;;  %s5179_s11 = smov 1   ;;  %s8569_s0 = inlined_call_operand.vmem [shape: f32[432,256], index: 0, kind: input, shape index: {}]   ;;  %s8570_s2 = inlined_call_operand.vmem [shape: bf16[432,432], index: 2, kind: input, shape index: {}]   ;;  %s8571_s3 = inlined_call_operand.vmem [shape: f32[432,2], index: 3, kind: input, shape index: {}]   ;;  %s8572_s1 = inlined_call_operand.vmem [shape: f32[432,256], index: 1, kind: input, shape index: {}]   ;;  %s8573_s4 = inlined_call_operand.vmem [shape: f32[432,256], index: 4, kind: output, shape index: {}]  }
   0x1   :  { %v51_v0 = vld [vmem:[%s8569_s0 + $0xe8] sm:$0xff]  ;;  %v53_v1 = vld [vmem:[%s8569_s0 + $0xf8] sm:$0xff]  ;;  %v50_v2 = vld [vmem:[%s8569_s0 + $0xe0] sm:$0xff] }
   0x2   :  { %v4779_v3 = vpack.c.bf16 %v53_v1, %v51_v0  ;;  %v52_v4 = vld [vmem:[%s8569_s0 + $0xf0] sm:$0xff]  ;;  %v47_v5 = vld [vmem:[%s8569_s0 + $0xc8] sm:$0xff]  ;;  %v49_v6 = vld [vmem:[%s8569_s0 + $0xd8] sm:$0xff] }
   0x3   :  { %v4778_v7 = vpack.c.bf16 %v52_v4, %v50_v2  ;;  %v4777_v8 = vpack.c.bf16 %v49_v6, %v47_v5  ;;  %v46_v9 = vld [vmem:[%s8569_s0 + $0xc0] sm:$0xff]  ;;  %v48_v10 = vld [vmem:[%s8569_s0 + $0xd0] sm:$0xff]  ;;  %v43_v11 = vld [vmem:[%s8569_s0 + $0xa8] sm:$0xff] }
   0x4   :  { %1535 = vmatprep.subr.bf16.mxu0 %v4779_v3  ;;  %v45_v12 = vld [vmem:[%s8569_s0 + $0xb8] sm:$0xff]  ;;  %v4776_v13 = vpack.c.bf16 %v48_v10, %v46_v9  ;;  %v42_v14 = vld [vmem:[%s8569_s0 + $0xa0] sm:$0xff]  ;;  %v44_v15 = vld [vmem:[%s8569_s0 + $0xb0] sm:$0xff] }
   0x5   :  { %1536 = vmatpush1.bf16.msra.mxu0 %v4778_v7  ;;  %v4775_v16 = vpack.c.bf16 %v45_v12, %v43_v11  ;;  %v39_v17 = vld [vmem:[%s8569_s0 + $0x88] sm:$0xff]  ;;  %v117_v19 = vld [vmem:[%s8569_s0 + $0x2f8] sm:$0xff]  ;;  %v114_v22 = vld [vmem:[%s8569_s0 + $0x2e0] sm:$0xff]  ;;  %v4774_v25 = vpack.c.bf16 %v44_v15, %v42_v14 }
   0x6   :  { %1537 = vmatprep.subr.bf16.mxu0 %v4777_v8  ;;  %v115_v18 = vld [vmem:[%s8569_s0 + $0x2e8] sm:$0xff]  ;;  %v41_v20 = vld [vmem:[%s8569_s0 + $0x98] sm:$0xff]  ;;  %v116_v23 = vld [vmem:[%s8569_s0 + $0x2f0] sm:$0xff] }
   0x7   :  { %v4811_v21 = vpack.c.bf16 %v117_v19, %v115_v18  ;;  %v4810_v24 = vpack.c.bf16 %v116_v23, %v114_v22  ;;  %v111_v26 = vld [vmem:[%s8569_s0 + $0x2c8] sm:$0xff]  ;;  %v113_v27 = vld [vmem:[%s8569_s0 + $0x2d8] sm:$0xff]  ;;  %v110_v28 = vld [vmem:[%s8569_s0 + $0x2c0] sm:$0xff]  ;;  %v4773_v29 = vpack.c.bf16 %v41_v20, %v39_v17 }
   0x8   :  { %v38_v30 = vld [vmem:[%s8569_s0 + $0x80] sm:$0xff]  ;;  %v40_v31 = vld [vmem:[%s8569_s0 + $0x90] sm:$0xff]  ;;  %v4809_v32 = vpack.c.bf16 %v113_v27, %v111_v26  ;;  %v35_v34 = vld [vmem:[%s8569_s0 + $0x68] sm:$0xff] }
   0x9   :  { %1538 = vmatpush1.bf16.msra.mxu0 %v4776_v13  ;;  %1838 = vmatprep.subr.bf16.mxu1 %v4811_v21  ;;  %v112_v33 = vld [vmem:[%s8569_s0 + $0x2d0] sm:$0xff]  ;;  %v37_v35 = vld [vmem:[%s8569_s0 + $0x78] sm:$0xff]  ;;  %v107_v37 = vld [vmem:[%s8569_s0 + $0x2a8] sm:$0xff]  ;;  %v4772_v41 = vpack.c.bf16 %v40_v31, %v38_v30 }
   0xa   :  { %1539 = vmatprep.subr.bf16.mxu0 %v4775_v16  ;;  %1839 = vmatpush1.bf16.msra.mxu1 %v4810_v24  ;;  %v4808_v36 = vpack.c.bf16 %v112_v33, %v110_v28  ;;  %v109_v38 = vld [vmem:[%s8569_s0 + $0x2b8] sm:$0xff]  ;;  %v106_v39 = vld [vmem:[%s8569_s0 + $0x2a0] sm:$0xff]  ;;  %v108_v40 = vld [vmem:[%s8569_s0 + $0x2b0] sm:$0xff]  ;;  %v4771_v45 = vpack.c.bf16 %v37_v35, %v35_v34 }
   0xb   :  { %1840 = vmatprep.subr.bf16.mxu1 %v4809_v32  ;;  %v34_v42 = vld [vmem:[%s8569_s0 + $0x60] sm:$0xff]  ;;  %v36_v43 = vld [vmem:[%s8569_s0 + $0x70] sm:$0xff]  ;;  %v4807_v44 = vpack.c.bf16 %v109_v38, %v107_v37  ;;  %v31_v46 = vld [vmem:[%s8569_s0 + $0x48] sm:$0xff]  ;;  %v4806_v47 = vpack.c.bf16 %v108_v40, %v106_v39 }
   0xc   :  { %v103_v48 = vld [vmem:[%s8569_s0 + $0x288] sm:$0xff]  ;;  %v105_v49 = vld [vmem:[%s8569_s0 + $0x298] sm:$0xff]  ;;  %v102_v52 = vld [vmem:[%s8569_s0 + $0x280] sm:$0xff]  ;;  %v4770_v54 = vpack.c.bf16 %v36_v43, %v34_v42 }
   0xd   :  { %1540 = vmatpush1.bf16.msra.mxu0 %v4774_v25  ;;  %v33_v50 = vld [vmem:[%s8569_s0 + $0x58] sm:$0xff]  ;;  %v4805_v51 = vpack.c.bf16 %v105_v49, %v103_v48  ;;  %v104_v53 = vld [vmem:[%s8569_s0 + $0x290] sm:$0xff]  ;;  %v99_v55 = vld [vmem:[%s8569_s0 + $0x268] sm:$0xff] }
   0xe   :  { %1541 = vmatprep.subr.bf16.mxu0 %v4773_v29  ;;  %1841 = vmatpush1.bf16.msra.mxu1 %v4808_v36  ;;  %v101_v56 = vld [vmem:[%s8569_s0 + $0x278] sm:$0xff]  ;;  %v4769_v57 = vpack.c.bf16 %v33_v50, %v31_v46  ;;  %v30_v58 = vld [vmem:[%s8569_s0 + $0x40] sm:$0xff]  ;;  %v32_v59 = vld [vmem:[%s8569_s0 + $0x50] sm:$0xff]  ;;  %v4804_v61 = vpack.c.bf16 %v104_v53, %v102_v52 }
   0xf   :  { %1842 = vmatprep.subr.bf16.mxu1 %v4807_v44  ;;  %v27_v60 = vld [vmem:[%s8569_s0 + $0x28] sm:$0xff]  ;;  %v29_v62 = vld [vmem:[%s8569_s0 + $0x38] sm:$0xff]  ;;  %v4803_v63 = vpack.c.bf16 %v101_v56, %v99_v55  ;;  %v98_v0 = vld [vmem:[%s8569_s0 + $0x260] sm:$0xff]  ;;  %v4768_v4 = vpack.c.bf16 %v32_v59, %v30_v58 }
  0x10   :  { %v100_v1 = vld [vmem:[%s8569_s0 + $0x270] sm:$0xff]  ;;  %v95_v2 = vld [vmem:[%s8569_s0 + $0x248] sm:$0xff]  ;;  %v97_v3 = vld [vmem:[%s8569_s0 + $0x258] sm:$0xff]  ;;  %v4767_v5 = vpack.c.bf16 %v29_v62, %v27_v60 }
  0x11   :  { %1542 = vmatpush1.bf16.msra.mxu0 %v4772_v41  ;;  %v26_v6 = vld [vmem:[%s8569_s0 + $0x20] sm:$0xff]  ;;  %v28_v7 = vld [vmem:[%s8569_s0 + $0x30] sm:$0xff]  ;;  %v23_v8 = vld [vmem:[%s8569_s0 + $0x8] sm:$0xff]  ;;  %v4802_v9 = vpack.c.bf16 %v100_v1, %v98_v0  ;;  %v4801_v11 = vpack.c.bf16 %v97_v3, %v95_v2 }
  0x12   :  { %1543 = vmatprep.subr.bf16.mxu0 %v4771_v45  ;;  %1843 = vmatpush1.bf16.msra.mxu1 %v4806_v47  ;;  %v25_v10 = vld [vmem:[%s8569_s0 + $0x18] sm:$0xff]  ;;  %v94_v12 = vld [vmem:[%s8569_s0 + $0x240] sm:$0xff]  ;;  %v96_v13 = vld [vmem:[%s8569_s0 + $0x250] sm:$0xff]  ;;  %v4766_v16 = vpack.c.bf16 %v28_v7, %v26_v6 }
  0x13   :  { %1844 = vmatprep.subr.bf16.mxu1 %v4805_v51  ;;  %v91_v14 = vld [vmem:[%s8569_s0 + $0x228] sm:$0xff]  ;;  %v93_v15 = vld [vmem:[%s8569_s0 + $0x238] sm:$0xff]  ;;  %v4765_v17 = vpack.c.bf16 %v25_v10, %v23_v8  ;;  %v22_v18 = vld [vmem:[%s8569_s0] sm:$0xff]  ;;  %v4800_v21 = vpack.c.bf16 %v96_v13, %v94_v12 }
  0x14   :  { %v24_v19 = vld [vmem:[%s8569_s0 + $0x10] sm:$0xff]  ;;  %v83_v20 = vld [vmem:[%s8569_s0 + $0x1e8] sm:$0xff]  ;;  %v85_v22 = vld [vmem:[%s8569_s0 + $0x1f8] sm:$0xff]  ;;  %v4799_v23 = vpack.c.bf16 %v93_v15, %v91_v14 }
  0x15   :  { %1544 = vmatpush1.bf16.msra.mxu0 %v4770_v54  ;;  %v90_v24 = vld [vmem:[%s8569_s0 + $0x220] sm:$0xff]  ;;  %v92_v25 = vld [vmem:[%s8569_s0 + $0x230] sm:$0xff]  ;;  %v87_v26 = vld [vmem:[%s8569_s0 + $0x208] sm:$0xff]  ;;  %v4764_v28 = vpack.c.bf16 %v24_v19, %v22_v18  ;;  %v4795_v29 = vpack.c.bf16 %v85_v22, %v83_v20 }
  0x16   :  { %1545 = vmatprep.subr.bf16.mxu0 %v4769_v57  ;;  %1845 = vmatpush1.bf16.msra.mxu1 %v4804_v61  ;;  %v89_v27 = vld [vmem:[%s8569_s0 + $0x218] sm:$0xff]  ;;  %v82_v30 = vld [vmem:[%s8569_s0 + $0x1e0] sm:$0xff]  ;;  %v84_v31 = vld [vmem:[%s8569_s0 + $0x1f0] sm:$0xff]  ;;  %v4798_v33 = vpack.c.bf16 %v92_v25, %v90_v24 }
  0x17   :  { %1846 = vmatprep.subr.bf16.mxu1 %v4803_v63  ;;  %v79_v32 = vld [vmem:[%s8569_s0 + $0x1c8] sm:$0xff]  ;;  %v81_v34 = vld [vmem:[%s8569_s0 + $0x1d8] sm:$0xff]  ;;  %v4797_v35 = vpack.c.bf16 %v89_v27, %v87_v26  ;;  %v86_v36 = vld [vmem:[%s8569_s0 + $0x200] sm:$0xff]  ;;  %v4794_v40 = vpack.c.bf16 %v84_v31, %v82_v30 }
  0x18   :  { %v88_v37 = vld [vmem:[%s8569_s0 + $0x210] sm:$0xff]  ;;  %v127_v38 = vld [vmem:[%s8569_s0 + $0x348] sm:$0xff]  ;;  %v129_v39 = vld [vmem:[%s8569_s0 + $0x358] sm:$0xff]  ;;  %v4793_v43 = vpack.c.bf16 %v81_v34, %v79_v32 }
  0x19   :  { %1546 = vmatpush1.bf16.msra.mxu0 %v4768_v4  ;;  %v78_v41 = vld [vmem:[%s8569_s0 + $0x1c0] sm:$0xff]  ;;  %v80_v42 = vld [vmem:[%s8569_s0 + $0x1d0] sm:$0xff]  ;;  %v75_v44 = vld [vmem:[%s8569_s0 + $0x1a8] sm:$0xff]  ;;  %v4796_v46 = vpack.c.bf16 %v88_v37, %v86_v36  ;;  %v4817_v48 = vpack.c.bf16 %v129_v39, %v127_v38 }
  0x1a   :  { %1547 = vmatprep.subr.bf16.mxu0 %v4767_v5  ;;  %1847 = vmatpush1.bf16.msra.mxu1 %v4802_v9  ;;  %v77_v45 = vld [vmem:[%s8569_s0 + $0x1b8] sm:$0xff]  ;;  %v126_v47 = vld [vmem:[%s8569_s0 + $0x340] sm:$0xff]  ;;  %v128_v49 = vld [vmem:[%s8569_s0 + $0x350] sm:$0xff]  ;;  %v4792_v54 = vpack.c.bf16 %v80_v42, %v78_v41 }
  0x1b   :  { %1848 = vmatprep.subr.bf16.mxu1 %v4801_v11  ;;  %v123_v50 = vld [vmem:[%s8569_s0 + $0x328] sm:$0xff]  ;;  %v74_v51 = vld [vmem:[%s8569_s0 + $0x1a0] sm:$0xff]  ;;  %v125_v52 = vld [vmem:[%s8569_s0 + $0x338] sm:$0xff]  ;;  %v4791_v58 = vpack.c.bf16 %v77_v45, %v75_v44  ;;  %v4816_v59 = vpack.c.bf16 %v128_v49, %v126_v47 }
  0x1c   :  { %v4873_v53 = vld [vmem:[%s8570_s2 + $0xc] ss:$16 sps:$4 sm:$0xff]   ;;  %v76_v55 = vld [vmem:[%s8569_s0 + $0x1b0] sm:$0xff]  ;;  %v122_v60 = vld [vmem:[%s8569_s0 + $0x320] sm:$0xff]  ;;  %v4815_v61 = vpack.c.bf16 %v125_v52, %v123_v50 }
  0x1d   :  { %1548 = vmatpush1.bf16.msra.mxu0 %v4766_v16  ;;  %v71_v56 = vld [vmem:[%s8569_s0 + $0x188] sm:$0xff]  ;;  %v73_v57 = vld [vmem:[%s8569_s0 + $0x198] sm:$0xff]  ;;  %v124_v62 = vld [vmem:[%s8569_s0 + $0x330] sm:$0xff]  ;;  %4683 = vmatprep.mubr.msk.bf16.mxu1 %vm1453_vm0, %v4873_v53  ;;  %v4790_v4 = vpack.c.bf16 %v76_v55, %v74_v51 }
  0x1e   :  { %1549 = vmatprep.subr.bf16.mxu0 %v4765_v17  ;;  %1849 = vmatpush1.bf16.msra.mxu1 %v4800_v21  ;;  %v4876_v63 = vld [vmem:[%s8570_s2 + $0x4] ss:$16 sps:$4 sm:$0xff]   ;;  %v119_v2 = vld [vmem:[%s8569_s0 + $0x308] sm:$0xff]  ;;  %v121_v3 = vld [vmem:[%s8569_s0 + $0x318] sm:$0xff]  ;;  %v4789_v6 = vpack.c.bf16 %v73_v57, %v71_v56  ;;  %v4814_v8 = vpack.c.bf16 %v124_v62, %v122_v60 }
  0x1f   :  { %1850 = vmatprep.subr.bf16.mxu1 %v4799_v23  ;;  %v70_v0 = vld [vmem:[%s8569_s0 + $0x180] sm:$0xff]  ;;  %v72_v1 = vld [vmem:[%s8569_s0 + $0x190] sm:$0xff]  ;;  %v67_v5 = vld [vmem:[%s8569_s0 + $0x168] sm:$0xff]  ;;  %1567 = vmatprep.mubr.bf16.mxu0 %v4876_v63  ;;  %v4813_v9 = vpack.c.bf16 %v121_v3, %v119_v2 }
  0x20   :  { %v69_v7 = vld [vmem:[%s8569_s0 + $0x178] sm:$0xff]  ;;  %v118_v10 = vld [vmem:[%s8569_s0 + $0x300] sm:$0xff]  ;;  %v120_v11 = vld [vmem:[%s8569_s0 + $0x310] sm:$0xff]  ;;  %v4788_v12 = vpack.c.bf16 %v72_v1, %v70_v0 }
  0x21   :  { %1550 = vmatpush1.bf16.msra.mxu0 %v4764_v28  ;;  %v66_v13 = vld [vmem:[%s8569_s0 + $0x160] sm:$0xff]  ;;  %v4787_v14 = vpack.c.bf16 %v69_v7, %v67_v5  ;;  %v68_v15 = vld [vmem:[%s8569_s0 + $0x170] sm:$0xff]  ;;  %v4812_v16 = vpack.c.bf16 %v120_v11, %v118_v10  ;;  %v63_v17 = vld [vmem:[%s8569_s0 + $0x148] sm:$0xff] }
  0x22   :  { %1551 = vmatprep.subr.bf16.mxu0 %v4795_v29  ;;  %1851 = vmatpush1.bf16.msra.mxu1 %v4798_v33  ;;  %v65_v18 = vld [vmem:[%s8569_s0 + $0x158] sm:$0xff]  ;;  %v62_v19 = vld [vmem:[%s8569_s0 + $0x140] sm:$0xff]  ;;  %v64_v20 = vld [vmem:[%s8569_s0 + $0x150] sm:$0xff]  ;;  %v4786_v21 = vpack.c.bf16 %v68_v15, %v66_v13 }
  0x23   :  { %1852 = vmatprep.subr.bf16.mxu1 %v4797_v35  ;;  %v4871_v22 = vld [vmem:[%s8570_s2 + $0x8] ss:$16 sps:$4 sm:$0xff]   ;;  %v4785_v23 = vpack.c.bf16 %v65_v18, %v63_v17  ;;  %v4877_v24 = vld [vmem:[%s8570_s2 + $0x2c] ss:$16 sps:$4 sm:$0xff]   ;;  %v4784_v27 = vpack.c.bf16 %v64_v20, %v62_v19  ;;  %v58_v28 = vld [vmem:[%s8569_s0 + $0x120] sm:$0xff] }
  0x24   :  { %v59_v25 = vld [vmem:[%s8569_s0 + $0x128] sm:$0xff]  ;;  %v61_v26 = vld [vmem:[%s8569_s0 + $0x138] sm:$0xff]  ;;  %v60_v30 = vld [vmem:[%s8569_s0 + $0x130] sm:$0xff] }
  0x25   :  { %1552 = vmatpush2.bf16.msra.mxu0 %v4794_v40  ;;  %v4783_v29 = vpack.c.bf16 %v61_v26, %v59_v25  ;;  %v55_v31 = vld [vmem:[%s8569_s0 + $0x108] sm:$0xff]  ;;  %v57_v32 = vld [vmem:[%s8569_s0 + $0x118] sm:$0xff]  ;;  %v54_v33 = vld [vmem:[%s8569_s0 + $0x100] sm:$0xff]  ;;  %v4782_v35 = vpack.c.bf16 %v60_v30, %v58_v28 }
  0x26   :  { %1553 = vmatprep.subr.bf16.mxu0 %v4793_v43  ;;  %1853 = vmatpush1.bf16.msra.mxu1 %v4796_v46  ;;  %v56_v34 = vld [vmem:[%s8569_s0 + $0x110] sm:$0xff]  ;;  %v4879_v36 = vld [vmem:[%s8570_s2 + $0x28] ss:$16 sps:$4 sm:$0xff]   ;;  %v4781_v37 = vpack.c.bf16 %v57_v32, %v55_v31  ;;  %v4883_v38 = vld [vmem:[%s8570_s2 + $0x4c] ss:$16 sps:$4 sm:$0xff]  }
  0x27   :  { %1864 = vmatprep.subr.bf16.mxu1 %v4817_v48  ;;  %v4780_v39 = vpack.c.bf16 %v56_v34, %v54_v33  ;;  %v4874_v40 = vld [vmem:[%s8570_s2] ss:$16 sps:$4 sm:$0xff]   ;;  %v4880_v41 = vld [vmem:[%s8570_s2 + $0x24] ss:$16 sps:$4 sm:$0xff]   ;;  %v4885_v42 = vld [vmem:[%s8570_s2 + $0x48] ss:$16 sps:$4 sm:$0xff]  }
  0x28   :  { %v4889_v43 = vld [vmem:[%s8570_s2 + $0x6c] ss:$16 sps:$4 sm:$0xff]   ;;  %v4882_v44 = vld [vmem:[%s8570_s2 + $0x20] ss:$16 sps:$4 sm:$0xff]   ;;  %v4886_v45 = vld [vmem:[%s8570_s2 + $0x44] ss:$16 sps:$4 sm:$0xff]  }
  0x29   :  { %1554 = vmatpush2.bf16.msra.mxu0 %v4792_v54  ;;  %v4891_v46 = vld [vmem:[%s8570_s2 + $0x68] ss:$16 sps:$4 sm:$0xff]   ;;  %v4895_v47 = vld [vmem:[%s8570_s2 + $0x8c] ss:$16 sps:$4 sm:$0xff]   ;;  %v4888_v48 = vld [vmem:[%s8570_s2 + $0x40] ss:$16 sps:$4 sm:$0xff]  }
  0x2a   :  { %1555 = vmatprep.subr.bf16.mxu0 %v4791_v58  ;;  %1865 = vmatpush2.bf16.msra.mxu1 %v4816_v59  ;;  %v4892_v49 = vld [vmem:[%s8570_s2 + $0x64] ss:$16 sps:$4 sm:$0xff]   ;;  %v4897_v50 = vld [vmem:[%s8570_s2 + $0x88] ss:$16 sps:$4 sm:$0xff]   ;;  %v4901_v51 = vld [vmem:[%s8570_s2 + $0xac] ss:$16 sps:$4 sm:$0xff]  }
  0x2b   :  { %1866 = vmatprep.subr.bf16.mxu1 %v4815_v61  ;;  %v4894_v52 = vld [vmem:[%s8570_s2 + $0x60] ss:$16 sps:$4 sm:$0xff]   ;;  %v4898_v53 = vld [vmem:[%s8570_s2 + $0x84] ss:$16 sps:$4 sm:$0xff]   ;;  %v4903_v54 = vld [vmem:[%s8570_s2 + $0xa8] ss:$16 sps:$4 sm:$0xff]  }
  0x2c   :  { %v4907_v55 = vld [vmem:[%s8570_s2 + $0xcc] ss:$16 sps:$4 sm:$0xff]   ;;  %v4900_v56 = vld [vmem:[%s8570_s2 + $0x80] ss:$16 sps:$4 sm:$0xff]   ;;  %v4904_v57 = vld [vmem:[%s8570_s2 + $0xa4] ss:$16 sps:$4 sm:$0xff]  }
  0x2d   :  { %1556 = vmatpush2.bf16.msra.mxu0 %v4790_v4  ;;  %v4909_v58 = vld [vmem:[%s8570_s2 + $0xc8] ss:$16 sps:$4 sm:$0xff]   ;;  %v4913_v59 = vld [vmem:[%s8570_s2 + $0xec] ss:$16 sps:$4 sm:$0xff]   ;;  %v4906_v60 = vld [vmem:[%s8570_s2 + $0xa0] ss:$16 sps:$4 sm:$0xff]  }
  0x2e   :  { %1557 = vmatprep.subr.bf16.mxu0 %v4789_v6  ;;  %1867 = vmatpush2.bf16.msra.mxu1 %v4814_v8  ;;  %v4910_v61 = vld [vmem:[%s8570_s2 + $0xc4] ss:$16 sps:$4 sm:$0xff]   ;;  %v4915_v62 = vld [vmem:[%s8570_s2 + $0xe8] ss:$16 sps:$4 sm:$0xff]   ;;  %v4919_v63 = vld [vmem:[%s8570_s2 + $0x10c] ss:$16 sps:$4 sm:$0xff]  }
  0x2f   :  { %1868 = vmatprep.subr.bf16.mxu1 %v4813_v9  ;;  %v4912_v0 = vld [vmem:[%s8570_s2 + $0xc0] ss:$16 sps:$4 sm:$0xff]   ;;  %v4916_v1 = vld [vmem:[%s8570_s2 + $0xe4] ss:$16 sps:$4 sm:$0xff]   ;;  %v4921_v2 = vld [vmem:[%s8570_s2 + $0x108] ss:$16 sps:$4 sm:$0xff]  }
  0x30   :  { %v4925_v3 = vld [vmem:[%s8570_s2 + $0x12c] ss:$16 sps:$4 sm:$0xff]   ;;  %v4918_v4 = vld [vmem:[%s8570_s2 + $0xe0] ss:$16 sps:$4 sm:$0xff]   ;;  %v4922_v5 = vld [vmem:[%s8570_s2 + $0x104] ss:$16 sps:$4 sm:$0xff]  }
  0x31   :  { %1558 = vmatpush2.bf16.msra.mxu0 %v4788_v12  ;;  %v4927_v6 = vld [vmem:[%s8570_s2 + $0x128] ss:$16 sps:$4 sm:$0xff]   ;;  %v4931_v7 = vld [vmem:[%s8570_s2 + $0x14c] ss:$16 sps:$4 sm:$0xff]   ;;  %v4924_v8 = vld [vmem:[%s8570_s2 + $0x100] ss:$16 sps:$4 sm:$0xff]  }
  0x32   :  { %1559 = vmatprep.subr.bf16.mxu0 %v4787_v14  ;;  %1869 = vmatpush2.bf16.msra.mxu1 %v4812_v16  ;;  %v4928_v9 = vld [vmem:[%s8570_s2 + $0x124] ss:$16 sps:$4 sm:$0xff]   ;;  %v4933_v10 = vld [vmem:[%s8570_s2 + $0x148] ss:$16 sps:$4 sm:$0xff]   ;;  %v4937_v11 = vld [vmem:[%s8570_s2 + $0x16c] ss:$16 sps:$4 sm:$0xff]  }
  0x33   :  { %v4930_v12 = vld [vmem:[%s8570_s2 + $0x120] ss:$16 sps:$4 sm:$0xff]   ;;  %v4934_v13 = vld [vmem:[%s8570_s2 + $0x144] ss:$16 sps:$4 sm:$0xff]   ;;  %v4939_v14 = vld [vmem:[%s8570_s2 + $0x168] ss:$16 sps:$4 sm:$0xff]  }
  0x34   :  { %v4943_v15 = vld [vmem:[%s8570_s2 + $0x18c] ss:$16 sps:$4 sm:$0xff]   ;;  %v4936_v16 = vld [vmem:[%s8570_s2 + $0x140] ss:$16 sps:$4 sm:$0xff]   ;;  %v4940_v17 = vld [vmem:[%s8570_s2 + $0x164] ss:$16 sps:$4 sm:$0xff]  }
  0x35   :  { %1560 = vmatpush2.bf16.msra.mxu0 %v4786_v21  ;;  %1871 = vmatmul.mubr.bf16.vlgmr.msra.gmra.mxu1 %v4871_v22  ;;  %v4945_v18 = vld [vmem:[%s8570_s2 + $0x188] ss:$16 sps:$4 sm:$0xff]   ;;  %v4949_v19 = vld [vmem:[%s8570_s2 + $0x1ac] ss:$16 sps:$4 sm:$0xff]   ;;  %v4942_v20 = vld [vmem:[%s8570_s2 + $0x160] ss:$16 sps:$4 sm:$0xff]  }
  0x36   :  { %1561 = vmatprep.subr.bf16.mxu0 %v4785_v23  ;;  %4684 = vmatprep.mubr.msk.bf16.mxu1 %vm1453_vm0, %v4877_v24  ;;  %v4946_v21 = vld [vmem:[%s8570_s2 + $0x184] ss:$16 sps:$4 sm:$0xff]   ;;  %v4951_v22 = vld [vmem:[%s8570_s2 + $0x1a8] ss:$16 sps:$4 sm:$0xff]   ;;  %v4955_v23 = vld [vmem:[%s8570_s2 + $0x1cc] ss:$16 sps:$4 sm:$0xff]  }
  0x37   :  { %v4948_v24 = vld [vmem:[%s8570_s2 + $0x180] ss:$16 sps:$4 sm:$0xff]   ;;  %v4952_v25 = vld [vmem:[%s8570_s2 + $0x1a4] ss:$16 sps:$4 sm:$0xff]   ;;  %v4957_v26 = vld [vmem:[%s8570_s2 + $0x1c8] ss:$16 sps:$4 sm:$0xff]  }
  0x38   :  { %v4954_v28 = vld [vmem:[%s8570_s2 + $0x1a0] ss:$16 sps:$4 sm:$0xff]   ;;  %v4963_v30 = vld [vmem:[%s8570_s2 + $0x1e8] ss:$16 sps:$4 sm:$0xff]   ;;  %v4967_v31 = vld [vmem:[%s8570_s2 + $0x20c] ss:$16 sps:$4 sm:$0xff]  }
  0x39   :  { %1562 = vmatpush2.bf16.msra.mxu0 %v4784_v27  ;;  %v4961_v27 = vld [vmem:[%s8570_s2 + $0x1ec] ss:$16 sps:$4 sm:$0xff]   ;;  %v4960_v32 = vld [vmem:[%s8570_s2 + $0x1c0] ss:$16 sps:$4 sm:$0xff]   ;;  %v4964_v33 = vld [vmem:[%s8570_s2 + $0x1e4] ss:$16 sps:$4 sm:$0xff]  }
  0x3a   :  { %1563 = vmatprep.subr.bf16.mxu0 %v4783_v29  ;;  %v4958_v29 = vld [vmem:[%s8570_s2 + $0x1c4] ss:$16 sps:$4 sm:$0xff]   ;;  %v4969_v34 = vld [vmem:[%s8570_s2 + $0x208] ss:$16 sps:$4 sm:$0xff]  }
  0x3d   :  { %1564 = vmatpush2.bf16.msra.mxu0 %v4782_v35  ;;  %1881 = vmatmul.mubr.bf16.gmra.mxu1 %v4879_v36  ;;  %v4973_v35 = vld [vmem:[%s8570_s2 + $0x22c] ss:$16 sps:$4 sm:$0xff]   ;;  %v4966_v36 = vld [vmem:[%s8570_s2 + $0x1e0] ss:$16 sps:$4 sm:$0xff]  }
  0x3e   :  { %1565 = vmatprep.subr.bf16.mxu0 %v4781_v37  ;;  %4685 = vmatprep.mubr.msk.bf16.mxu1 %vm1453_vm0, %v4883_v38  ;;  %v4970_v37 = vld [vmem:[%s8570_s2 + $0x204] ss:$16 sps:$4 sm:$0xff]   ;;  %v4975_v38 = vld [vmem:[%s8570_s2 + $0x228] ss:$16 sps:$4 sm:$0xff]  }
  0x41   :  { %1566 = vmatpush2.bf16.msra.mxu0 %v4780_v39  ;;  %v4979_v39 = vld [vmem:[%s8570_s2 + $0x24c] ss:$16 sps:$4 sm:$0xff]  }
  0x44   :  { %1568 = vmatmul.mubr.bf16.vlgmr.msra.gmra.mxu0 %v4874_v40  ;;  %v4972_v40 = vld [vmem:[%s8570_s2 + $0x200] ss:$16 sps:$4 sm:$0xff]  }
  0x45   :  { %1577 = vmatprep.mubr.bf16.mxu0 %v4880_v41  ;;  %1891 = vmatmul.mubr.bf16.gmra.mxu1 %v4885_v42  ;;  %v4976_v41 = vld [vmem:[%s8570_s2 + $0x224] ss:$16 sps:$4 sm:$0xff]   ;;  %v4981_v42 = vld [vmem:[%s8570_s2 + $0x248] ss:$16 sps:$4 sm:$0xff]  }
  0x46   :  { %4686 = vmatprep.mubr.msk.bf16.mxu1 %vm1453_vm0, %v4889_v43  ;;  %v4985_v43 = vld [vmem:[%s8570_s2 + $0x26c] ss:$16 sps:$4 sm:$0xff]  }
  0x4c   :  { %1578 = vmatmul.mubr.bf16.gmra.mxu0 %v4882_v44  ;;  %v4978_v44 = vld [vmem:[%s8570_s2 + $0x220] ss:$16 sps:$4 sm:$0xff]  }
  0x4d   :  { %1587 = vmatprep.mubr.bf16.mxu0 %v4886_v45  ;;  %1901 = vmatmul.mubr.bf16.gmra.mxu1 %v4891_v46  ;;  %v4982_v45 = vld [vmem:[%s8570_s2 + $0x244] ss:$16 sps:$4 sm:$0xff]   ;;  %v4987_v46 = vld [vmem:[%s8570_s2 + $0x268] ss:$16 sps:$4 sm:$0xff]  }
  0x4e   :  { %4687 = vmatprep.mubr.msk.bf16.mxu1 %vm1453_vm0, %v4895_v47  ;;  %v4991_v47 = vld [vmem:[%s8570_s2 + $0x28c] ss:$16 sps:$4 sm:$0xff]  }
  0x54   :  { %1588 = vmatmul.mubr.bf16.gmra.mxu0 %v4888_v48  ;;  %v4984_v48 = vld [vmem:[%s8570_s2 + $0x240] ss:$16 sps:$4 sm:$0xff]  }
  0x55   :  { %1597 = vmatprep.mubr.bf16.mxu0 %v4892_v49  ;;  %1911 = vmatmul.mubr.bf16.gmra.mxu1 %v4897_v50  ;;  %v4988_v49 = vld [vmem:[%s8570_s2 + $0x264] ss:$16 sps:$4 sm:$0xff]   ;;  %v4993_v50 = vld [vmem:[%s8570_s2 + $0x288] ss:$16 sps:$4 sm:$0xff]  }
  0x56   :  { %4688 = vmatprep.mubr.msk.bf16.mxu1 %vm1453_vm0, %v4901_v51  ;;  %v4999_v51 = vld [vmem:[%s8570_s2 + $0x2ac] ss:$16 sps:$4 sm:$0xff]  }
  0x5c   :  { %1598 = vmatmul.mubr.bf16.gmra.mxu0 %v4894_v52  ;;  %v4990_v52 = vld [vmem:[%s8570_s2 + $0x260] ss:$16 sps:$4 sm:$0xff]  }
  0x5d   :  { %1607 = vmatprep.mubr.bf16.mxu0 %v4898_v53  ;;  %1921 = vmatmul.mubr.bf16.gmra.mxu1 %v4903_v54  ;;  %v4994_v53 = vld [vmem:[%s8570_s2 + $0x284] ss:$16 sps:$4 sm:$0xff]   ;;  %v5002_v54 = vld [vmem:[%s8570_s2 + $0x2a8] ss:$16 sps:$4 sm:$0xff]  }
  0x5e   :  { %4689 = vmatprep.mubr.msk.bf16.mxu1 %vm1453_vm0, %v4907_v55  ;;  %v5005_v55 = vld [vmem:[%s8570_s2 + $0x2cc] ss:$16 sps:$4 sm:$0xff]  }
  0x64   :  { %1608 = vmatmul.mubr.bf16.gmra.mxu0 %v4900_v56  ;;  %v4996_v56 = vld [vmem:[%s8570_s2 + $0x280] ss:$16 sps:$4 sm:$0xff]  }
  0x65   :  { %1617 = vmatprep.mubr.bf16.mxu0 %v4904_v57  ;;  %1931 = vmatmul.mubr.bf16.gmra.mxu1 %v4909_v58  ;;  %v4997_v57 = vld [vmem:[%s8570_s2 + $0x2a4] ss:$16 sps:$4 sm:$0xff]   ;;  %v5008_v58 = vld [vmem:[%s8570_s2 + $0x2c8] ss:$16 sps:$4 sm:$0xff]  }
  0x66   :  { %4690 = vmatprep.mubr.msk.bf16.mxu1 %vm1453_vm0, %v4913_v59  ;;  %v5001_v59 = vld [vmem:[%s8570_s2 + $0x2a0] ss:$16 sps:$4 sm:$0xff]  }
  0x6c   :  { %1618 = vmatmul.mubr.bf16.gmra.mxu0 %v4906_v60  ;;  %v5003_v60 = vld [vmem:[%s8570_s2 + $0x2c4] ss:$16 sps:$4 sm:$0xff]  }
  0x6d   :  { %1627 = vmatprep.mubr.bf16.mxu0 %v4910_v61  ;;  %1941 = vmatmul.mubr.bf16.gmra.mxu1 %v4915_v62  ;;  %v5007_v61 = vld [vmem:[%s8570_s2 + $0x2c0] ss:$16 sps:$4 sm:$0xff]  }
  0x6e   :  { %4691 = vmatprep.mubr.msk.bf16.mxu1 %vm1453_vm0, %v4919_v63 }
  0x74   :  { %1628 = vmatmul.mubr.bf16.gmra.mxu0 %v4912_v0 }
  0x75   :  { %1637 = vmatprep.mubr.bf16.mxu0 %v4916_v1  ;;  %1951 = vmatmul.mubr.bf16.gmra.mxu1 %v4921_v2 }
  0x76   :  { %4692 = vmatprep.mubr.msk.bf16.mxu1 %vm1453_vm0, %v4925_v3 }
  0x7c   :  { %1638 = vmatmul.mubr.bf16.gmra.mxu0 %v4918_v4 }
  0x7d   :  { %1647 = vmatprep.mubr.bf16.mxu0 %v4922_v5  ;;  %1961 = vmatmul.mubr.bf16.gmra.mxu1 %v4927_v6 }
  0x7e   :  { %4693 = vmatprep.mubr.msk.bf16.mxu1 %vm1453_vm0, %v4931_v7 }
  0x84   :  { %1648 = vmatmul.mubr.bf16.gmra.mxu0 %v4924_v8 }
  0x85   :  { %1657 = vmatprep.mubr.bf16.mxu0 %v4928_v9  ;;  %1971 = vmatmul.mubr.bf16.gmra.mxu1 %v4933_v10 }
  0x86   :  { %4694 = vmatprep.mubr.msk.bf16.mxu1 %vm1453_vm0, %v4937_v11 }
  0x8c   :  { %1658 = vmatmul.mubr.bf16.gmra.mxu0 %v4930_v12 }
  0x8d   :  { %1667 = vmatprep.mubr.bf16.mxu0 %v4934_v13  ;;  %1981 = vmatmul.mubr.bf16.gmra.mxu1 %v4939_v14 }
  0x8e   :  { %4695 = vmatprep.mubr.msk.bf16.mxu1 %vm1453_vm0, %v4943_v15 }
  0x94   :  { %1668 = vmatmul.mubr.bf16.gmra.mxu0 %v4936_v16 }
  0x95   :  { %1677 = vmatprep.mubr.bf16.mxu0 %v4940_v17  ;;  %1991 = vmatmul.mubr.bf16.gmra.mxu1 %v4945_v18 }
  0x96   :  { %4696 = vmatprep.mubr.msk.bf16.mxu1 %vm1453_vm0, %v4949_v19 }
  0x9c   :  { %1678 = vmatmul.mubr.bf16.gmra.mxu0 %v4942_v20 }
  0x9d   :  { %1687 = vmatprep.mubr.bf16.mxu0 %v4946_v21  ;;  %2001 = vmatmul.mubr.bf16.gmra.mxu1 %v4951_v22 }
  0x9e   :  { %4697 = vmatprep.mubr.msk.bf16.mxu1 %vm1453_vm0, %v4955_v23 }
  0xa4   :  { %1688 = vmatmul.mubr.bf16.gmra.mxu0 %v4948_v24 }
  0xa5   :  { %1697 = vmatprep.mubr.bf16.mxu0 %v4952_v25  ;;  %2011 = vmatmul.mubr.bf16.gmra.mxu1 %v4957_v26 }
  0xa6   :  { %4698 = vmatprep.mubr.msk.bf16.mxu1 %vm1453_vm0, %v4961_v27 }
  0xac   :  { %1698 = vmatmul.mubr.bf16.gmra.mxu0 %v4954_v28 }
  0xad   :  { %1707 = vmatprep.mubr.bf16.mxu0 %v4958_v29  ;;  %2021 = vmatmul.mubr.bf16.gmra.mxu1 %v4963_v30 }
  0xae   :  { %4699 = vmatprep.mubr.msk.bf16.mxu1 %vm1453_vm0, %v4967_v31 }
  0xb4   :  { %1708 = vmatmul.mubr.bf16.gmra.mxu0 %v4960_v32  ;;  %v5009_v32 = vld [vmem:[%s8570_s2 + $0x2e4] ss:$16 sps:$4 sm:$0xff]  }
  0xb5   :  { %1717 = vmatprep.mubr.bf16.mxu0 %v4964_v33  ;;  %2031 = vmatmul.mubr.bf16.gmra.mxu1 %v4969_v34  ;;  %v5011_v33 = vld [vmem:[%s8570_s2 + $0x2ec] ss:$16 sps:$4 sm:$0xff]  }
  0xb6   :  { %4700 = vmatprep.mubr.msk.bf16.mxu1 %vm1453_vm0, %v4973_v35 }
  0xbc   :  { %1718 = vmatmul.mubr.bf16.gmra.mxu0 %v4966_v36 }
  0xbd   :  { %1727 = vmatprep.mubr.bf16.mxu0 %v4970_v37  ;;  %2041 = vmatmul.mubr.bf16.gmra.mxu1 %v4975_v38  ;;  %v5013_v38 = vld [vmem:[%s8570_s2 + $0x2e0] ss:$16 sps:$4 sm:$0xff]  }
  0xbe   :  { %4701 = vmatprep.mubr.msk.bf16.mxu1 %vm1453_vm0, %v4979_v39  ;;  %v5014_v39 = vld [vmem:[%s8570_s2 + $0x2e8] ss:$16 sps:$4 sm:$0xff]  }
  0xc4   :  { %1728 = vmatmul.mubr.bf16.gmra.mxu0 %v4972_v40 }
  0xc5   :  { %1737 = vmatprep.mubr.bf16.mxu0 %v4976_v41  ;;  %2051 = vmatmul.mubr.bf16.gmra.mxu1 %v4981_v42 }
  0xc6   :  { %4702 = vmatprep.mubr.msk.bf16.mxu1 %vm1453_vm0, %v4985_v43 }
  0xcc   :  { %1738 = vmatmul.mubr.bf16.gmra.mxu0 %v4978_v44 }
  0xcd   :  { %1747 = vmatprep.mubr.bf16.mxu0 %v4982_v45  ;;  %2061 = vmatmul.mubr.bf16.gmra.mxu1 %v4987_v46 }
  0xce   :  { %4703 = vmatprep.mubr.msk.bf16.mxu1 %vm1453_vm0, %v4991_v47 }
  0xd4   :  { %1748 = vmatmul.mubr.bf16.gmra.mxu0 %v4984_v48 }
  0xd5   :  { %1757 = vmatprep.mubr.bf16.mxu0 %v4988_v49  ;;  %2071 = vmatmul.mubr.bf16.gmra.mxu1 %v4993_v50 }
  0xd6   :  { %4704 = vmatprep.mubr.msk.bf16.mxu1 %vm1453_vm0, %v4999_v51 }
  0xdc   :  { %1758 = vmatmul.mubr.bf16.gmra.mxu0 %v4990_v52 }
  0xdd   :  { %1767 = vmatprep.mubr.bf16.mxu0 %v4994_v53  ;;  %2081 = vmatmul.mubr.bf16.gmra.mxu1 %v5002_v54 }
  0xde   :  { %4705 = vmatprep.mubr.msk.bf16.mxu1 %vm1453_vm0, %v5005_v55 }
  0xe4   :  { %1768 = vmatmul.mubr.bf16.gmra.mxu0 %v4996_v56 }
  0xe5   :  { %1777 = vmatprep.mubr.bf16.mxu0 %v4997_v57  ;;  %2091 = vmatmul.mubr.bf16.gmra.mxu1 %v5008_v58 }
  0xe6   :  { %4706 = vmatprep.mubr.msk.bf16.mxu1 %vm1453_vm0, %v5011_v33 }
  0xec   :  { %1778 = vmatmul.mubr.bf16.gmra.mxu0 %v5001_v59 }
  0xed   :  { %1787 = vmatprep.mubr.bf16.mxu0 %v5003_v60  ;;  %2101 = vmatmul.mubr.bf16.gmra.mxu1 %v5014_v39 }
  0xf4   :  { %1788 = vmatmul.mubr.bf16.gmra.mxu0 %v5007_v61 }
  0xf5   :  { %v1872_v62 = vpop.f32.mrf.mxu1  ;;  %1797 = vmatprep.mubr.bf16.mxu0 %v5009_v32 }
  0xf7   :  { %v1874_v63 = vpop.f32.mrf.mxu1 }
  0xf9   :  { %v1876_v0 = vpop.f32.mrf.mxu1 }
  0xfb   :  { %v1878_v1 = vpop.f32.mrf.mxu1 }
  0xfc   :  { %1798 = vmatmul.mubr.bf16.gmra.mxu0 %v5013_v38 }
  0xfd   :  { %v1882_v2 = vpop.f32.mrf.mxu1 }
  0xff   :  { %v1884_v3 = vpop.f32.mrf.mxu1 }
 0x101   :  { %v1886_v4 = vpop.f32.mrf.mxu1 }
 0x103   :  { %v1888_v5 = vpop.f32.mrf.mxu1 }
 0x104   :  { %v1569_v6 = vpop.f32.mrf.mxu0 }
 0x105   :  { %v1892_v7 = vpop.f32.mrf.mxu1  ;;  %v5829_v9 = vadd.f32 %v1872_v62, %v1569_v6 }
 0x106   :  { %v1571_v8 = vpop.f32.mrf.mxu0 }
 0x107   :  { %8720 = vst [vmem:[#allocation3_spill] sm:$0xff] %v5829_v9  ;;  %v5831_v10 = vadd.f32 %v1874_v63, %v1571_v8  ;;  %v1894_v11 = vpop.f32.mrf.mxu1  ;;  %v2357_v19 = vmul.f32 %v5829_v9, %v5829_v9 }
 0x108   :  { %v1573_v12 = vpop.f32.mrf.mxu0 }
 0x109   :  { %8721 = vst [vmem:[#allocation4_spill] sm:$0xff] %v5831_v10  ;;  %v5833_v13 = vadd.f32 %v1876_v0, %v1573_v12  ;;  %v2141_v14 = vadd.f32 %v5831_v10, %v5829_v9  ;;  %v2358_v15 = vmul.f32 %v5831_v10, %v5831_v10  ;;  %v1896_v16 = vpop.f32.mrf.mxu1 }
 0x10a   :  { %v1575_v17 = vpop.f32.mrf.mxu0 }
 0x10b   :  { %8722 = vst [vmem:[#allocation5_spill] sm:$0xff] %v5833_v13  ;;  %v5839_v18 = vadd.f32 %v1878_v1, %v1575_v17  ;;  %2142 = vadd.xlane.f32.xlu0 %v2141_v14  ;;  %v1898_v20 = vpop.f32.mrf.mxu1  ;;  %v2465_v23 = vadd.f32 %v2358_v15, %v2357_v19  ;;  %v2359_v24 = vmul.f32 %v5833_v13, %v5833_v13 }
 0x10c   :  { %v1579_v21 = vpop.f32.mrf.mxu0 }
 0x10d   :  { %8723 = vst [vmem:[#allocation6_spill] sm:$0xff] %v5839_v18  ;;  %v5843_v22 = vadd.f32 %v1882_v2, %v1579_v21  ;;  %v2360_v25 = vmul.f32 %v5839_v18, %v5839_v18  ;;  %v1902_v26 = vpop.f32.mrf.mxu1  ;;  %v2144_v34 = vadd.f32 %v5839_v18, %v5833_v13 }
 0x10e   :  { %v1581_v27 = vpop.f32.mrf.mxu0 }
 0x10f   :  { %8724 = vst [vmem:[#allocation7_spill] sm:$0xff] %v5843_v22  ;;  %v5849_v28 = vadd.f32 %v1884_v3, %v1581_v27  ;;  %2466 = vadd.xlane.f32.xlu0 %v2465_v23  ;;  %v2468_v29 = vadd.f32 %v2360_v25, %v2359_v24  ;;  %v1904_v30 = vpop.f32.mrf.mxu1  ;;  %v2361_v35 = vmul.f32 %v5843_v22, %v5843_v22 }
 0x110   :  { %v1583_v31 = vpop.f32.mrf.mxu0 }
 0x111   :  { %8725 = vst [vmem:[#allocation8_spill] sm:$0xff] %v5849_v28  ;;  %2469 = vadd.xlane.f32.xlu1 %v2468_v29  ;;  %v2362_v36 = vmul.f32 %v5849_v28, %v5849_v28  ;;  %v1906_v37 = vpop.f32.mrf.mxu1  ;;  %v2147_v42 = vadd.f32 %v5849_v28, %v5843_v22  ;;  %v5874_v45 = vadd.f32 %v1886_v4, %v1583_v31 }
 0x112   :  { %v1585_v40 = vpop.f32.mrf.mxu0 }
 0x113   :  { %v5870_v41 = vadd.f32 %v1888_v5, %v1585_v40  ;;  %2145 = vadd.xlane.f32.xlu0 %v2144_v34  ;;  %v1908_v43 = vpop.f32.mrf.mxu1  ;;  %8727 = vst [vmem:[#allocation10_spill] sm:$0xff] %v5874_v45  ;;  %v2471_v47 = vadd.f32 %v2362_v36, %v2361_v35  ;;  %v2363_v56 = vmul.f32 %v5874_v45, %v5874_v45 }
 0x114   :  { %v1589_v44 = vpop.f32.mrf.mxu0 }
 0x115   :  { %8726 = vst [vmem:[#allocation9_spill] sm:$0xff] %v5870_v41  ;;  %v5876_v46 = vadd.f32 %v1892_v7, %v1589_v44  ;;  %2148 = vadd.xlane.f32.xlu1 %v2147_v42  ;;  %v1912_v48 = vpop.f32.mrf.mxu1  ;;  %v2150_v51 = vadd.f32 %v5870_v41, %v5874_v45  ;;  %v2364_v52 = vmul.f32 %v5870_v41, %v5870_v41 }
 0x116   :  { %v1591_v49 = vpop.f32.mrf.mxu0 }
 0x117   :  { %8728 = vst [vmem:[#allocation11_spill] sm:$0xff] %v5876_v46  ;;  %v5878_v50 = vadd.f32 %v1894_v11, %v1591_v49  ;;  %2472 = vadd.xlane.f32.xlu0 %v2471_v47  ;;  %v1914_v53 = vpop.f32.mrf.mxu1  ;;  %v2365_v57 = vmul.f32 %v5876_v46, %v5876_v46  ;;  %v2474_v62 = vadd.f32 %v2364_v52, %v2363_v56 }
 0x118   :  { %v1593_v54 = vpop.f32.mrf.mxu0 }
 0x119   :  { %8729 = vst [vmem:[#allocation12_spill] sm:$0xff] %v5878_v50  ;;  %2151 = vadd.xlane.f32.xlu1 %v2150_v51  ;;  %v2153_v55 = vadd.f32 %v5878_v50, %v5876_v46  ;;  %v2366_v58 = vmul.f32 %v5878_v50, %v5878_v50  ;;  %v1916_v59 = vpop.f32.mrf.mxu1  ;;  %v5894_v1 = vadd.f32 %v1896_v16, %v1593_v54 }
 0x11a   :  { %v1595_v60 = vpop.f32.mrf.mxu0 }
 0x11b   :  { %v5892_v61 = vadd.f32 %v1898_v20, %v1595_v60  ;;  %2154 = vadd.xlane.f32.xlu0 %v2153_v55  ;;  %v1918_v63 = vpop.f32.mrf.mxu1  ;;  %8731 = vst [vmem:[#allocation14_spill] sm:$0xff] %v5894_v1  ;;  %v2477_v3 = vadd.f32 %v2366_v58, %v2365_v57  ;;  %v2367_v15 = vmul.f32 %v5894_v1, %v5894_v1 }
 0x11c   :  { %v1599_v0 = vpop.f32.mrf.mxu0 }
 0x11d   :  { %8730 = vst [vmem:[#allocation13_spill] sm:$0xff] %v5892_v61  ;;  %v5896_v2 = vadd.f32 %v1902_v26, %v1599_v0  ;;  %2475 = vadd.xlane.f32.xlu1 %v2474_v62  ;;  %v1922_v4 = vpop.f32.mrf.mxu1  ;;  %v2156_v7 = vadd.f32 %v5892_v61, %v5894_v1  ;;  %v2368_v8 = vmul.f32 %v5892_v61, %v5892_v61 }
 0x11e   :  { %v1601_v5 = vpop.f32.mrf.mxu0 }
 0x11f   :  { %8732 = vst [vmem:[#allocation15_spill] sm:$0xff] %v5896_v2  ;;  %v5898_v6 = vadd.f32 %v1904_v30, %v1601_v5  ;;  %2478 = vadd.xlane.f32.xlu0 %v2477_v3  ;;  %v1924_v11 = vpop.f32.mrf.mxu1  ;;  %v2369_v16 = vmul.f32 %v5896_v2, %v5896_v2  ;;  %v2480_v23 = vadd.f32 %v2368_v8, %v2367_v15 }
 0x120   :  { %v1603_v12 = vpop.f32.mrf.mxu0 }
 0x121   :  { %8733 = vst [vmem:[#allocation16_spill] sm:$0xff] %v5898_v6  ;;  %2157 = vadd.xlane.f32.xlu1 %v2156_v7  ;;  %v2159_v14 = vadd.f32 %v5898_v6, %v5896_v2  ;;  %v2370_v17 = vmul.f32 %v5898_v6, %v5898_v6  ;;  %v1926_v19 = vpop.f32.mrf.mxu1  ;;  %v5914_v26 = vadd.f32 %v1906_v37, %v1603_v12 }
 0x122   :  { %v1605_v20 = vpop.f32.mrf.mxu0 }
 0x123   :  { %v5912_v21 = vadd.f32 %v1908_v43, %v1605_v20  ;;  %2160 = vadd.xlane.f32.xlu0 %v2159_v14  ;;  %v1928_v24 = vpop.f32.mrf.mxu1  ;;  %8735 = vst [vmem:[#allocation18_spill] sm:$0xff] %v5914_v26  ;;  %v2483_v29 = vadd.f32 %v2370_v17, %v2369_v16  ;;  %v2371_v38 = vmul.f32 %v5914_v26, %v5914_v26 }
 0x124   :  { %v1609_v25 = vpop.f32.mrf.mxu0 }
 0x125   :  { %8734 = vst [vmem:[#allocation17_spill] sm:$0xff] %v5912_v21  ;;  %v5916_v27 = vadd.f32 %v1912_v48, %v1609_v25  ;;  %2481 = vadd.xlane.f32.xlu1 %v2480_v23  ;;  %v1932_v30 = vpop.f32.mrf.mxu1  ;;  %v2162_v33 = vadd.f32 %v5912_v21, %v5914_v26  ;;  %v2372_v34 = vmul.f32 %v5912_v21, %v5912_v21 }
 0x126   :  { %v1611_v31 = vpop.f32.mrf.mxu0 }
 0x127   :  { %8736 = vst [vmem:[#allocation19_spill] sm:$0xff] %v5916_v27  ;;  %v5918_v32 = vadd.f32 %v1914_v53, %v1611_v31  ;;  %2484 = vadd.xlane.f32.xlu0 %v2483_v29  ;;  %v1934_v35 = vpop.f32.mrf.mxu1  ;;  %v2373_v39 = vmul.f32 %v5916_v27, %v5916_v27  ;;  %v2486_v47 = vadd.f32 %v2372_v34, %v2371_v38 }
 0x128   :  { %v1613_v36 = vpop.f32.mrf.mxu0 }
 0x129   :  { %8737 = vst [vmem:[#allocation20_spill] sm:$0xff] %v5918_v32  ;;  %2163 = vadd.xlane.f32.xlu1 %v2162_v33  ;;  %v2165_v37 = vadd.f32 %v5918_v32, %v5916_v27  ;;  %v2374_v40 = vmul.f32 %v5918_v32, %v5918_v32  ;;  %v1936_v42 = vpop.f32.mrf.mxu1  ;;  %v5934_v51 = vadd.f32 %v1916_v59, %v1613_v36 }
 0x12a   :  { %v1615_v43 = vpop.f32.mrf.mxu0 }
 0x12b   :  { %v5932_v44 = vadd.f32 %v1918_v63, %v1615_v43  ;;  %2166 = vadd.xlane.f32.xlu0 %v2165_v37  ;;  %v1938_v48 = vpop.f32.mrf.mxu1  ;;  %8739 = vst [vmem:[#allocation22_spill] sm:$0xff] %v5934_v51  ;;  %v2489_v53 = vadd.f32 %v2374_v40, %v2373_v39  ;;  %v2375_v63 = vmul.f32 %v5934_v51, %v5934_v51 }
 0x12c   :  { %v1619_v49 = vpop.f32.mrf.mxu0 }
 0x12d   :  { %8738 = vst [vmem:[#allocation21_spill] sm:$0xff] %v5932_v44  ;;  %v5936_v52 = vadd.f32 %v1922_v4, %v1619_v49  ;;  %2487 = vadd.xlane.f32.xlu1 %v2486_v47  ;;  %v1942_v54 = vpop.f32.mrf.mxu1  ;;  %v2168_v57 = vadd.f32 %v5932_v44, %v5934_v51  ;;  %v2376_v58 = vmul.f32 %v5932_v44, %v5932_v44 }
 0x12e   :  { %v1621_v55 = vpop.f32.mrf.mxu0 }
 0x12f   :  { %8740 = vst [vmem:[#allocation23_spill] sm:$0xff] %v5936_v52  ;;  %v5938_v56 = vadd.f32 %v1924_v11, %v1621_v55  ;;  %2490 = vadd.xlane.f32.xlu0 %v2489_v53  ;;  %v1944_v60 = vpop.f32.mrf.mxu1  ;;  %v2377_v0 = vmul.f32 %v5936_v52, %v5936_v52  ;;  %v2492_v8 = vadd.f32 %v2376_v58, %v2375_v63 }
 0x130   :  { %v1623_v62 = vpop.f32.mrf.mxu0 }
 0x131   :  { %8741 = vst [vmem:[#allocation24_spill] sm:$0xff] %v5938_v56  ;;  %2169 = vadd.xlane.f32.xlu1 %v2168_v57  ;;  %v2171_v59 = vadd.f32 %v5938_v56, %v5936_v52  ;;  %v2378_v3 = vmul.f32 %v5938_v56, %v5938_v56  ;;  %v1946_v4 = vpop.f32.mrf.mxu1  ;;  %v5954_v14 = vadd.f32 %v1926_v19, %v1623_v62 }
 0x132   :  { %v1625_v5 = vpop.f32.mrf.mxu0 }
 0x133   :  { %v5952_v7 = vadd.f32 %v1928_v24, %v1625_v5  ;;  %2172 = vadd.xlane.f32.xlu0 %v2171_v59  ;;  %v1948_v11 = vpop.f32.mrf.mxu1  ;;  %8743 = vst [vmem:[#allocation26_spill] sm:$0xff] %v5954_v14  ;;  %v2495_v16 = vadd.f32 %v2378_v3, %v2377_v0 }
 0x134   :  { %v1629_v12 = vpop.f32.mrf.mxu0 }
 0x135   :  { %8742 = vst [vmem:[#allocation25_spill] sm:$0xff] %v5952_v7  ;;  %v5956_v15 = vadd.f32 %v1932_v30, %v1629_v12  ;;  %2493 = vadd.xlane.f32.xlu1 %v2492_v8  ;;  %v1952_v17 = vpop.f32.mrf.mxu1  ;;  %v2174_v25 = vadd.f32 %v5952_v7, %v5954_v14  ;;  %v2380_v24 = vmul.f32 %v5952_v7, %v5952_v7 }
 0x136   :  { %v1631_v20 = vpop.f32.mrf.mxu0  ;;  %v2379_v30 = vmul.f32 %v5954_v14, %v5954_v14 }
 0x137   :  { %8744 = vst [vmem:[#allocation27_spill] sm:$0xff] %v5956_v15  ;;  %v5958_v23 = vadd.f32 %v1934_v35, %v1631_v20  ;;  %2496 = vadd.xlane.f32.xlu0 %v2495_v16  ;;  %v1954_v29 = vpop.f32.mrf.mxu1  ;;  %v2381_v33 = vmul.f32 %v5956_v15, %v5956_v15 }
 0x138   :  { %v1633_v31 = vpop.f32.mrf.mxu0  ;;  %v2498_v38 = vadd.f32 %v2380_v24, %v2379_v30 }
 0x139   :  { %8745 = vst [vmem:[#allocation28_spill] sm:$0xff] %v5958_v23  ;;  %2175 = vadd.xlane.f32.xlu1 %v2174_v25  ;;  %v2177_v19 = vadd.f32 %v5958_v23, %v5956_v15  ;;  %v2382_v34 = vmul.f32 %v5958_v23, %v5958_v23  ;;  %v1956_v35 = vpop.f32.mrf.mxu1  ;;  %v5974_v43 = vadd.f32 %v1936_v42, %v1633_v31 }
 0x13a   :  { %v1635_v36 = vpop.f32.mrf.mxu0 }
 0x13b   :  { %v5972_v37 = vadd.f32 %v1938_v48, %v1635_v36  ;;  %2178 = vadd.xlane.f32.xlu0 %v2177_v19  ;;  %v1958_v39 = vpop.f32.mrf.mxu1  ;;  %8747 = vst [vmem:[#allocation30_spill] sm:$0xff] %v5974_v43  ;;  %v2501_v49 = vadd.f32 %v2382_v34, %v2381_v33  ;;  %v8574_v19 = vmov 0  }
 0x13c   :  { %v1639_v40 = vpop.f32.mrf.mxu0  ;;  %4821 = vset.pattern.permute.xlu0 %v8574_v19  ;;  %4822 = vset.pattern.permute.xlu1 %v8574_v19 }
 0x13d   :  { %8746 = vst [vmem:[#allocation29_spill] sm:$0xff] %v5972_v37  ;;  %v5976_v47 = vadd.f32 %v1942_v54, %v1639_v40  ;;  %2499 = vadd.xlane.f32.xlu1 %v2498_v38  ;;  %v1962_v53 = vpop.f32.mrf.mxu1  ;;  %v2180_v58 = vadd.f32 %v5972_v37, %v5974_v43  ;;  %v2384_v48 = vmul.f32 %v5972_v37, %v5972_v37 }
 0x13e   :  { %v1641_v55 = vpop.f32.mrf.mxu0  ;;  %v2383_v54 = vmul.f32 %v5974_v43, %v5974_v43 }
 0x13f   :  { %8748 = vst [vmem:[#allocation31_spill] sm:$0xff] %v5976_v47  ;;  %v5978_v57 = vadd.f32 %v1944_v60, %v1641_v55  ;;  %2502 = vadd.xlane.f32.xlu0 %v2501_v49  ;;  %v1964_v62 = vpop.f32.mrf.mxu1  ;;  %v2385_v60 = vmul.f32 %v5976_v47, %v5976_v47 }
 0x140   :  { %v1643_v59 = vpop.f32.mrf.mxu0  ;;  %v2504_v8 = vadd.f32 %v2384_v48, %v2383_v54 }
 0x141   :  { %8749 = vst [vmem:[#allocation32_spill] sm:$0xff] %v5978_v57  ;;  %2181 = vadd.xlane.f32.xlu1 %v2180_v58  ;;  %v2183_v42 = vadd.f32 %v5978_v57, %v5976_v47  ;;  %v2386_v63 = vmul.f32 %v5978_v57, %v5978_v57  ;;  %v1966_v0 = vpop.f32.mrf.mxu1  ;;  %v5994_v20 = vadd.f32 %v1946_v4, %v1643_v59 }
 0x142   :  { %v1645_v3 = vpop.f32.mrf.mxu0 }
 0x143   :  { %v5992_v5 = vadd.f32 %v1948_v11, %v1645_v3  ;;  %2184 = vadd.xlane.f32.xlu0 %v2183_v42  ;;  %v1968_v12 = vpop.f32.mrf.mxu1  ;;  %8751 = vst [vmem:[#allocation34_spill] sm:$0xff] %v5994_v20  ;;  %v2507_v24 = vadd.f32 %v2386_v63, %v2385_v60  ;;  %v2387_v38 = vmul.f32 %v5994_v20, %v5994_v20 }
 0x144   :  { %v1649_v16 = vpop.f32.mrf.mxu0 }
 0x145   :  { %8750 = vst [vmem:[#allocation33_spill] sm:$0xff] %v5992_v5  ;;  %v5996_v25 = vadd.f32 %v1952_v17, %v1649_v16  ;;  %2505 = vadd.xlane.f32.xlu1 %v2504_v8  ;;  %v1972_v31 = vpop.f32.mrf.mxu1  ;;  %v2186_v11 = vadd.f32 %v5992_v5, %v5994_v20  ;;  %v2388_v4 = vmul.f32 %v5992_v5, %v5992_v5 }
 0x146   :  { %v1651_v30 = vpop.f32.mrf.mxu0 }
 0x147   :  { %8752 = vst [vmem:[#allocation35_spill] sm:$0xff] %v5996_v25  ;;  %v6000_v33 = vadd.f32 %v1954_v29, %v1651_v30  ;;  %2508 = vadd.xlane.f32.xlu0 %v2507_v24  ;;  %v1974_v17 = vpop.f32.mrf.mxu1  ;;  %v2389_v29 = vmul.f32 %v5996_v25, %v5996_v25  ;;  %v2510_v48 = vadd.f32 %v2388_v4, %v2387_v38 }
 0x148   :  { %v1653_v34 = vpop.f32.mrf.mxu0 }
 0x149   :  { %8753 = vst [vmem:[#allocation36_spill] sm:$0xff] %v6000_v33  ;;  %2187 = vadd.xlane.f32.xlu1 %v2186_v11  ;;  %v2189_v36 = vadd.f32 %v6000_v33, %v5996_v25  ;;  %v2390_v40 = vmul.f32 %v6000_v33, %v6000_v33  ;;  %v1976_v49 = vpop.f32.mrf.mxu1  ;;  %v6016_v54 = vadd.f32 %v1956_v35, %v1653_v34 }
 0x14a   :  { %v1655_v55 = vpop.f32.mrf.mxu0 }
 0x14b   :  { %v6014_v58 = vadd.f32 %v1958_v39, %v1655_v55  ;;  %2190 = vadd.xlane.f32.xlu0 %v2189_v36  ;;  %v1978_v59 = vpop.f32.mrf.mxu1  ;;  %8755 = vst [vmem:[#allocation38_spill] sm:$0xff] %v6016_v54  ;;  %v2513_v63 = vadd.f32 %v2390_v40, %v2389_v29 }
 0x14c   :  { %v1659_v42 = vpop.f32.mrf.mxu0 }
 0x14d   :  { %8754 = vst [vmem:[#allocation37_spill] sm:$0xff] %v6014_v58  ;;  %v6018_v60 = vadd.f32 %v1962_v53, %v1659_v42  ;;  %2511 = vadd.xlane.f32.xlu1 %v2510_v48  ;;  %v1982_v3 = vpop.f32.mrf.mxu1  ;;  %v2192_v24 = vadd.f32 %v6014_v58, %v6016_v54  ;;  %v2392_v39 = vmul.f32 %v6014_v58, %v6014_v58 }
 0x14e   :  { %v1661_v8 = vpop.f32.mrf.mxu0  ;;  %v2391_v53 = vmul.f32 %v6016_v54, %v6016_v54 }
 0x14f   :  { %8756 = vst [vmem:[#allocation39_spill] sm:$0xff] %v6018_v60  ;;  %v6020_v16 = vadd.f32 %v1964_v62, %v1661_v8  ;;  %2514 = vadd.xlane.f32.xlu0 %v2513_v63  ;;  %v1984_v30 = vpop.f32.mrf.mxu1  ;;  %v2393_v62 = vmul.f32 %v6018_v60, %v6018_v60 }
 0x150   :  { %v1663_v11 = vpop.f32.mrf.mxu0  ;;  %v2516_v29 = vadd.f32 %v2392_v39, %v2391_v53 }
 0x151   :  { %8757 = vst [vmem:[#allocation40_spill] sm:$0xff] %v6020_v16  ;;  %2193 = vadd.xlane.f32.xlu1 %v2192_v24  ;;  %v2195_v35 = vadd.f32 %v6020_v16, %v6018_v60  ;;  %v2394_v4 = vmul.f32 %v6020_v16, %v6020_v16  ;;  %v1986_v34 = vpop.f32.mrf.mxu1  ;;  %v6036_v48 = vadd.f32 %v1966_v0, %v1663_v11 }
 0x152   :  { %v1665_v36 = vpop.f32.mrf.mxu0 }
 0x153   :  { %v6034_v38 = vadd.f32 %v1968_v12, %v1665_v36  ;;  %2196 = vadd.xlane.f32.xlu0 %v2195_v35  ;;  %v1988_v40 = vpop.f32.mrf.mxu1  ;;  %8759 = vst [vmem:[#allocation42_spill] sm:$0xff] %v6036_v48  ;;  %v2519_v63 = vadd.f32 %v2394_v4, %v2393_v62 }
 0x154   :  { %v1669_v55 = vpop.f32.mrf.mxu0 }
 0x155   :  { %8758 = vst [vmem:[#allocation41_spill] sm:$0xff] %v6034_v38  ;;  %v6038_v42 = vadd.f32 %v1972_v31, %v1669_v55  ;;  %2517 = vadd.xlane.f32.xlu1 %v2516_v29  ;;  %v1992_v8 = vpop.f32.mrf.mxu1  ;;  %v2198_v58 = vadd.f32 %v6034_v38, %v6036_v48  ;;  %v2396_v12 = vmul.f32 %v6034_v38, %v6034_v38 }
 0x156   :  { %v1671_v24 = vpop.f32.mrf.mxu0  ;;  %v2395_v31 = vmul.f32 %v6036_v48, %v6036_v48 }
 0x157   :  { %8760 = vst [vmem:[#allocation43_spill] sm:$0xff] %v6038_v42  ;;  %v6040_v19 = vadd.f32 %v1974_v17, %v1671_v24  ;;  %2520 = vadd.xlane.f32.xlu0 %v2519_v63  ;;  %v1994_v39 = vpop.f32.mrf.mxu1  ;;  %v2397_v17 = vmul.f32 %v6038_v42, %v6038_v42 }
 0x158   :  { %v1673_v35 = vpop.f32.mrf.mxu0  ;;  %v2522_v36 = vadd.f32 %v2396_v12, %v2395_v31 }
 0x159   :  { %8761 = vst [vmem:[#allocation44_spill] sm:$0xff] %v6040_v19  ;;  %2199 = vadd.xlane.f32.xlu1 %v2198_v58  ;;  %v2201_v0 = vadd.f32 %v6040_v19, %v6038_v42  ;;  %v2398_v11 = vmul.f32 %v6040_v19, %v6040_v19  ;;  %v1996_v53 = vpop.f32.mrf.mxu1  ;;  %v6056_v55 = vadd.f32 %v1976_v49, %v1673_v35 }
 0x15a   :  { %v1675_v62 = vpop.f32.mrf.mxu0 }
 0x15b   :  { %v6054_v4 = vadd.f32 %v1978_v59, %v1675_v62  ;;  %2202 = vadd.xlane.f32.xlu0 %v2201_v0  ;;  %v1998_v29 = vpop.f32.mrf.mxu1  ;;  %8763 = vst [vmem:[#allocation46_spill] sm:$0xff] %v6056_v55  ;;  %v2525_v24 = vadd.f32 %v2398_v11, %v2397_v17 }
 0x15c   :  { %v1679_v58 = vpop.f32.mrf.mxu0 }
 0x15d   :  { %8762 = vst [vmem:[#allocation45_spill] sm:$0xff] %v6054_v4  ;;  %v6058_v63 = vadd.f32 %v1982_v3, %v1679_v58  ;;  %2523 = vadd.xlane.f32.xlu1 %v2522_v36  ;;  %v2002_v38 = vpop.f32.mrf.mxu1  ;;  %v2204_v5 = vadd.f32 %v6054_v4, %v6056_v55  ;;  %v2400_v59 = vmul.f32 %v6054_v4, %v6054_v4 }
 0x15e   :  { %v1681_v48 = vpop.f32.mrf.mxu0  ;;  %v2399_v3 = vmul.f32 %v6056_v55, %v6056_v55 }
 0x15f   :  { %8764 = vst [vmem:[#allocation47_spill] sm:$0xff] %v6058_v63  ;;  %v6060_v54 = vadd.f32 %v1984_v30, %v1681_v48  ;;  %2526 = vadd.xlane.f32.xlu0 %v2525_v24  ;;  %v2004_v12 = vpop.f32.mrf.mxu1  ;;  %v2401_v30 = vmul.f32 %v6058_v63, %v6058_v63 }
 0x160   :  { %v1683_v0 = vpop.f32.mrf.mxu0  ;;  %v2528_v11 = vadd.f32 %v2400_v59, %v2399_v3 }
 0x161   :  { %8765 = vst [vmem:[#allocation48_spill] sm:$0xff] %v6060_v54  ;;  %2205 = vadd.xlane.f32.xlu1 %v2204_v5  ;;  %v2207_v49 = vadd.f32 %v6060_v54, %v6058_v63  ;;  %v2402_v48 = vmul.f32 %v6060_v54, %v6060_v54  ;;  %v2006_v35 = vpop.f32.mrf.mxu1  ;;  %v6076_v36 = vadd.f32 %v1986_v34, %v1683_v0 }
 0x162   :  { %v1685_v31 = vpop.f32.mrf.mxu0 }
 0x163   :  { %v6074_v17 = vadd.f32 %v1988_v40, %v1685_v31  ;;  %2208 = vadd.xlane.f32.xlu0 %v2207_v49  ;;  %v2008_v62 = vpop.f32.mrf.mxu1  ;;  %8767 = vst [vmem:[#allocation50_spill] sm:$0xff] %v6076_v36  ;;  %v2531_v24 = vadd.f32 %v2402_v48, %v2401_v30 }
 0x164   :  { %v1689_v5 = vpop.f32.mrf.mxu0 }
 0x165   :  { %8766 = vst [vmem:[#allocation49_spill] sm:$0xff] %v6074_v17  ;;  %v6078_v58 = vadd.f32 %v1992_v8, %v1689_v5  ;;  %2529 = vadd.xlane.f32.xlu1 %v2528_v11  ;;  %v2012_v4 = vpop.f32.mrf.mxu1  ;;  %v2210_v37 = vadd.f32 %v6074_v17, %v6076_v36  ;;  %v2404_v40 = vmul.f32 %v6074_v17, %v6074_v17 }
 0x166   :  { %v1691_v55 = vpop.f32.mrf.mxu0  ;;  %v2403_v8 = vmul.f32 %v6076_v36, %v6076_v36 }
 0x167   :  { %8768 = vst [vmem:[#allocation51_spill] sm:$0xff] %v6078_v58  ;;  %v6080_v20 = vadd.f32 %v1994_v39, %v1691_v55  ;;  %2532 = vadd.xlane.f32.xlu0 %v2531_v24  ;;  %v2014_v59 = vpop.f32.mrf.mxu1  ;;  %v2405_v39 = vmul.f32 %v6078_v58, %v6078_v58 }
 0x168   :  { %v1693_v49 = vpop.f32.mrf.mxu0  ;;  %v2534_v48 = vadd.f32 %v2404_v40, %v2403_v8 }
 0x169   :  { %8769 = vst [vmem:[#allocation52_spill] sm:$0xff] %v6080_v20  ;;  %2211 = vadd.xlane.f32.xlu1 %v2210_v37  ;;  %v2213_v34 = vadd.f32 %v6080_v20, %v6078_v58  ;;  %v2406_v55 = vmul.f32 %v6080_v20, %v6080_v20  ;;  %v2016_v0 = vpop.f32.mrf.mxu1  ;;  %v6096_v11 = vadd.f32 %v1996_v53, %v1693_v49 }
 0x16a   :  { %v1695_v3 = vpop.f32.mrf.mxu0 }
 0x16b   :  { %v6094_v30 = vadd.f32 %v1998_v29, %v1695_v3  ;;  %2214 = vadd.xlane.f32.xlu0 %v2213_v34  ;;  %v2018_v31 = vpop.f32.mrf.mxu1  ;;  %8771 = vst [vmem:[#allocation54_spill] sm:$0xff] %v6096_v11  ;;  %v2537_v24 = vadd.f32 %v2406_v55, %v2405_v39  ;;  %v2407_v53 = vmul.f32 %v6096_v11, %v6096_v11 }
 0x16c   :  { %v1699_v37 = vpop.f32.mrf.mxu0 }
 0x16d   :  { %8770 = vst [vmem:[#allocation53_spill] sm:$0xff] %v6094_v30  ;;  %v6098_v5 = vadd.f32 %v2002_v38, %v1699_v37  ;;  %2535 = vadd.xlane.f32.xlu1 %v2534_v48  ;;  %v2022_v17 = vpop.f32.mrf.mxu1  ;;  %v2216_v20 = vadd.f32 %v6094_v30, %v6096_v11  ;;  %v2408_v29 = vmul.f32 %v6094_v30, %v6094_v30 }
 0x16e   :  { %v1701_v36 = vpop.f32.mrf.mxu0 }
 0x16f   :  { %8772 = vst [vmem:[#allocation55_spill] sm:$0xff] %v6098_v5  ;;  %v6100_v43 = vadd.f32 %v2004_v12, %v1701_v36  ;;  %2538 = vadd.xlane.f32.xlu0 %v2537_v24  ;;  %v2024_v40 = vpop.f32.mrf.mxu1  ;;  %v2409_v12 = vmul.f32 %v6098_v5, %v6098_v5  ;;  %v2540_v55 = vadd.f32 %v2408_v29, %v2407_v53 }
 0x170   :  { %v1703_v34 = vpop.f32.mrf.mxu0 }
 0x171   :  { %8773 = vst [vmem:[#allocation56_spill] sm:$0xff] %v6100_v43  ;;  %2217 = vadd.xlane.f32.xlu1 %v2216_v20  ;;  %v2219_v38 = vadd.f32 %v6100_v43, %v6098_v5  ;;  %v2410_v36 = vmul.f32 %v6100_v43, %v6100_v43  ;;  %v6114_v49 = vpop.f32.mrf.mxu1  ;;  %v6118_v48 = vadd.f32 %v2006_v35, %v1703_v34 }
 0x172   :  { %v1705_v8 = vpop.f32.mrf.mxu0 }
 0x173   :  { %v6116_v39 = vadd.f32 %v2008_v62, %v1705_v8  ;;  %2220 = vadd.xlane.f32.xlu0 %v2219_v38  ;;  %v2028_v20 = vpop.f32.mrf.mxu1  ;;  %8775 = vst [vmem:[#allocation58_spill] sm:$0xff] %v6118_v48  ;;  %v2543_v24 = vadd.f32 %v2410_v36, %v2409_v12  ;;  %v2411_v35 = vmul.f32 %v6118_v48, %v6118_v48  ;;  %v5015_v8 = vld [vmem:[%s8570_s2 + $0x304] ss:$16 sps:$4 sm:$0xff]  }
 0x174   :  { %v1709_v3 = vpop.f32.mrf.mxu0  ;;  %1807 = vmatprep.mubr.bf16.mxu0 %v5015_v8 }
 0x175   :  { %8774 = vst [vmem:[#allocation57_spill] sm:$0xff] %v6116_v39  ;;  %v6120_v37 = vadd.f32 %v2012_v4, %v1709_v3  ;;  %2541 = vadd.xlane.f32.xlu1 %v2540_v55  ;;  %v2032_v30 = vpop.f32.mrf.mxu1  ;;  %v2222_v43 = vadd.f32 %v6116_v39, %v6118_v48  ;;  %v2412_v62 = vmul.f32 %v6116_v39, %v6116_v39  ;;  %v5017_v55 = vld [vmem:[%s8570_s2 + $0x30c] ss:$16 sps:$4 sm:$0xff]  }
 0x176   :  { %v1711_v11 = vpop.f32.mrf.mxu0  ;;  %4707 = vmatprep.mubr.msk.bf16.mxu1 %vm1453_vm0, %v5017_v55 }
 0x177   :  { %8776 = vst [vmem:[#allocation59_spill] sm:$0xff] %v6120_v37  ;;  %v6122_v5 = vadd.f32 %v2014_v59, %v1711_v11  ;;  %2544 = vadd.xlane.f32.xlu0 %v2543_v24  ;;  %v2034_v29 = vpop.f32.mrf.mxu1  ;;  %v2413_v59 = vmul.f32 %v6120_v37, %v6120_v37  ;;  %v2546_v36 = vadd.f32 %v2412_v62, %v2411_v35  ;;  %v5019_v24 = vld [vmem:[%s8570_s2 + $0x300] ss:$16 sps:$4 sm:$0xff]  }
 0x178   :  { %v1713_v38 = vpop.f32.mrf.mxu0  ;;  %1808 = vmatmul.mubr.bf16.gmra.mxu0 %v5019_v24 }
 0x179   :  { %8777 = vst [vmem:[#allocation60_spill] sm:$0xff] %v6122_v5  ;;  %2223 = vadd.xlane.f32.xlu1 %v2222_v43  ;;  %v2225_v4 = vadd.f32 %v6122_v5, %v6120_v37  ;;  %v2414_v11 = vmul.f32 %v6122_v5, %v6122_v5  ;;  %v6136_v34 = vpop.f32.mrf.mxu1 }
 0x17a   :  { %v1715_v53 = vpop.f32.mrf.mxu0 }
 0x17b   :  { %v6138_v12 = vadd.f32 %v2018_v31, %v1715_v53  ;;  %2226 = vadd.xlane.f32.xlu0 %v2225_v4  ;;  %v2038_v43 = vpop.f32.mrf.mxu1  ;;  %v5020_v31 = vld [vmem:[%s8570_s2 + $0x308] ss:$16 sps:$4 sm:$0xff]   ;;  %v6152_v4 = vadd.f32 %v2016_v0, %v1713_v38  ;;  %v2549_v35 = vadd.f32 %v2414_v11, %v2413_v59 }
 0x17c   :  { %v1719_v3 = vpop.f32.mrf.mxu0  ;;  %2111 = vmatmul.mubr.bf16.gmra.mxu1 %v5020_v31 }
 0x17d   :  { %8778 = vst [vmem:[#allocation61_spill] sm:$0xff] %v6138_v12  ;;  %8779 = vst [vmem:[#allocation62_spill] sm:$0xff] %v6152_v4  ;;  %v6154_v62 = vadd.f32 %v2022_v17, %v1719_v3  ;;  %2547 = vadd.xlane.f32.xlu1 %v2546_v36  ;;  %v2042_v53 = vpop.f32.mrf.mxu1  ;;  %v2228_v5 = vadd.f32 %v6138_v12, %v6152_v4  ;;  %v2416_v0 = vmul.f32 %v6138_v12, %v6138_v12 }
 0x17e   :  { %v1721_v39 = vpop.f32.mrf.mxu0  ;;  %v2415_v11 = vmul.f32 %v6152_v4, %v6152_v4 }
 0x17f   :  { %8780 = vst [vmem:[#allocation63_spill] sm:$0xff] %v6154_v62  ;;  %v6157_v48 = vadd.f32 %v2024_v40, %v1721_v39  ;;  %2550 = vadd.xlane.f32.xlu0 %v2549_v35  ;;  %v2044_v38 = vpop.f32.mrf.mxu1  ;;  %v2417_v40 = vmul.f32 %v6154_v62, %v6154_v62 }
 0x180   :  { %v1723_v17 = vpop.f32.mrf.mxu0  ;;  %v2552_v3 = vadd.f32 %v2416_v0, %v2415_v11 }
 0x181   :  { %8781 = vst [vmem:[#allocation64_spill] sm:$0xff] %v6157_v48  ;;  %2229 = vadd.xlane.f32.xlu1 %v2228_v5  ;;  %v2231_v59 = vadd.f32 %v6157_v48, %v6154_v62  ;;  %v2418_v39 = vmul.f32 %v6157_v48, %v6157_v48  ;;  %v2046_v36 = vpop.f32.mrf.mxu1  ;;  %v6174_v31 = vadd.f32 %v6114_v49, %v1723_v17 }
 0x182   :  { %v1725_v8 = vpop.f32.mrf.mxu0 }
 0x183   :  { %v6171_v55 = vadd.f32 %v2028_v20, %v1725_v8  ;;  %2232 = vadd.xlane.f32.xlu0 %v2231_v59  ;;  %v2048_v24 = vpop.f32.mrf.mxu1  ;;  %8783 = vst [vmem:[#allocation66_spill] sm:$0xff] %v6174_v31  ;;  %v2555_v12 = vadd.f32 %v2418_v39, %v2417_v40  ;;  %v2419_v49 = vmul.f32 %v6174_v31, %v6174_v31 }
 0x184   :  { %v1729_v5 = vpop.f32.mrf.mxu0 }
 0x185   :  { %8782 = vst [vmem:[#allocation65_spill] sm:$0xff] %v6171_v55  ;;  %v6176_v35 = vadd.f32 %v2032_v30, %v1729_v5  ;;  %2553 = vadd.xlane.f32.xlu1 %v2552_v3  ;;  %v2052_v4 = vpop.f32.mrf.mxu1  ;;  %v2234_v20 = vadd.f32 %v6171_v55, %v6174_v31  ;;  %v2420_v0 = vmul.f32 %v6171_v55, %v6171_v55 }
 0x186   :  { %v1731_v62 = vpop.f32.mrf.mxu0 }
 0x187   :  { %8784 = vst [vmem:[#allocation67_spill] sm:$0xff] %v6176_v35  ;;  %v6178_v37 = vadd.f32 %v2034_v29, %v1731_v62  ;;  %2556 = vadd.xlane.f32.xlu0 %v2555_v12  ;;  %v2054_v59 = vpop.f32.mrf.mxu1  ;;  %v2421_v29 = vmul.f32 %v6176_v35, %v6176_v35  ;;  %v2558_v39 = vadd.f32 %v2420_v0, %v2419_v49 }
 0x188   :  { %v1733_v11 = vpop.f32.mrf.mxu0 }
 0x189   :  { %8785 = vst [vmem:[#allocation68_spill] sm:$0xff] %v6178_v37  ;;  %2235 = vadd.xlane.f32.xlu1 %v2234_v20  ;;  %v2237_v30 = vadd.f32 %v6178_v37, %v6176_v35  ;;  %v2422_v12 = vmul.f32 %v6178_v37, %v6178_v37  ;;  %v2056_v62 = vpop.f32.mrf.mxu1  ;;  %v6195_v5 = vadd.f32 %v6136_v34, %v1733_v11 }
 0x18a   :  { %v1735_v17 = vpop.f32.mrf.mxu0 }
 0x18b   :  { %v6192_v40 = vadd.f32 %v2038_v43, %v1735_v17  ;;  %2238 = vadd.xlane.f32.xlu0 %v2237_v30  ;;  %v2058_v8 = vpop.f32.mrf.mxu1  ;;  %8787 = vst [vmem:[#allocation70_spill] sm:$0xff] %v6195_v5  ;;  %v2561_v55 = vadd.f32 %v2422_v12, %v2421_v29 }
 0x18c   :  { %v1739_v3 = vpop.f32.mrf.mxu0 }
 0x18d   :  { %8786 = vst [vmem:[#allocation69_spill] sm:$0xff] %v6192_v40  ;;  %v6197_v20 = vadd.f32 %v2042_v53, %v1739_v3  ;;  %2559 = vadd.xlane.f32.xlu1 %v2558_v39  ;;  %v2062_v35 = vpop.f32.mrf.mxu1  ;;  %v2240_v43 = vadd.f32 %v6192_v40, %v6195_v5  ;;  %v2424_v0 = vmul.f32 %v6192_v40, %v6192_v40 }
 0x18e   :  { %v1741_v31 = vpop.f32.mrf.mxu0  ;;  %v2423_v53 = vmul.f32 %v6195_v5, %v6195_v5 }
 0x18f   :  { %8788 = vst [vmem:[#allocation71_spill] sm:$0xff] %v6197_v20  ;;  %v6199_v48 = vadd.f32 %v2044_v38, %v1741_v31  ;;  %2562 = vadd.xlane.f32.xlu0 %v2561_v55  ;;  %v2425_v11 = vmul.f32 %v6197_v20, %v6197_v20  ;;  %v2064_v31 = vpop.f32.mrf.mxu1 }
 0x190   :  { %v1743_v30 = vpop.f32.mrf.mxu0  ;;  %v2564_v29 = vadd.f32 %v2424_v0, %v2423_v53 }
 0x191   :  { %8789 = vst [vmem:[#allocation72_spill] sm:$0xff] %v6199_v48  ;;  %2241 = vadd.xlane.f32.xlu1 %v2240_v43  ;;  %v2243_v34 = vadd.f32 %v6199_v48, %v6197_v20  ;;  %v2426_v38 = vmul.f32 %v6199_v48, %v6199_v48  ;;  %v6215_v39 = vadd.f32 %v2046_v36, %v1743_v30  ;;  %v2066_v5 = vpop.f32.mrf.mxu1 }
 0x192   :  { %v1745_v55 = vpop.f32.mrf.mxu0 }
 0x193   :  { %v6213_v49 = vadd.f32 %v2048_v24, %v1745_v55  ;;  %2244 = vadd.xlane.f32.xlu0 %v2243_v34  ;;  %8791 = vst [vmem:[#allocation74_spill] sm:$0xff] %v6215_v39  ;;  %v2567_v43 = vadd.f32 %v2426_v38, %v2425_v11  ;;  %v2427_v36 = vmul.f32 %v6215_v39, %v6215_v39  ;;  %v2068_v53 = vpop.f32.mrf.mxu1 }
 0x194   :  { %v2143_v12 = vpop.xlane.xlu0 %2142  ;;  %v1749_v17 = vpop.f32.mrf.mxu0 }
 0x195   :  { %8790 = vst [vmem:[#allocation73_spill] sm:$0xff] %v6213_v49  ;;  %v6217_v3 = vadd.f32 %v2052_v4, %v1749_v17  ;;  %2565 = vadd.xlane.f32.xlu1 %v2564_v29  ;;  %v2246_v48 = vadd.f32 %v6213_v49, %v6215_v39  ;;  %v2428_v24 = vmul.f32 %v6213_v49, %v6213_v49  ;;  %v2072_v39 = vpop.f32.mrf.mxu1 }
 0x196   :  { %v1751_v40 = vpop.f32.mrf.mxu0 }
 0x197   :  { %8792 = vst [vmem:[#allocation75_spill] sm:$0xff] %v6217_v3  ;;  %v6219_v20 = vadd.f32 %v2054_v59, %v1751_v40  ;;  %2568 = vadd.xlane.f32.xlu0 %v2567_v43  ;;  %v2429_v59 = vmul.f32 %v6217_v3, %v6217_v3  ;;  %v2570_v38 = vadd.f32 %v2428_v24, %v2427_v36 }
 0x198   :  { %v2467_v0 = vpop.xlane.xlu0 %2466  ;;  %v1753_v34 = vpop.f32.mrf.mxu0 }
 0x199   :  { %8793 = vst [vmem:[#allocation76_spill] sm:$0xff] %v6219_v20  ;;  %2247 = vadd.xlane.f32.xlu1 %v2246_v48  ;;  %v2249_v4 = vadd.f32 %v6219_v20, %v6217_v3  ;;  %v2430_v40 = vmul.f32 %v6219_v20, %v6219_v20  ;;  %v6235_v48 = vadd.f32 %v2056_v62, %v1753_v34  ;;  %v6247_v34 = vmul.f32 0.0051020407, %v2143_v12 }
 0x19a   :  { %v1755_v30 = vpop.f32.mrf.mxu0 }
 0x19b   :  { %v6233_v11 = vadd.f32 %v2058_v8, %v1755_v30  ;;  %2250 = vadd.xlane.f32.xlu0 %v2249_v4  ;;  %8795 = vst [vmem:[#allocation78_spill] sm:$0xff] %v6235_v48  ;;  %v2573_v17 = vadd.f32 %v2430_v40, %v2429_v59  ;;  %v2074_v4 = vpop.f32.mrf.mxu1  ;;  %v2627_v40 = vmul.f32 0.0051020407, %v2467_v0  ;;  %v2470_v30 = vpop.xlane.xlu1 %2469 }
 0x19c   :  { %v1759_v55 = vpop.f32.mrf.mxu0  ;;  %v2146_v29 = vpop.xlane.xlu0 %2145 }
 0x19d   :  { %8794 = vst [vmem:[#allocation77_spill] sm:$0xff] %v6233_v11  ;;  %2571 = vadd.xlane.f32.xlu1 %v2570_v38  ;;  %v6237_v43 = vadd.f32 %v2062_v35, %v1759_v55  ;;  %v2252_v20 = vadd.f32 %v6233_v11, %v6235_v48  ;;  %v2432_v8 = vmul.f32 %v6233_v11, %v6233_v11  ;;  %v6245_v24 = vmul.f32 0.0051020407, %v2146_v29 }
 0x19e   :  { %v1761_v49 = vpop.f32.mrf.mxu0  ;;  %v2431_v35 = vmul.f32 %v6235_v48, %v6235_v48  ;;  %v2681_v29 = vmul.f32 %v6247_v34, %v6247_v34  ;;  %v2628_v11 = vmul.f32 0.0051020407, %v2470_v30  ;;  %v2076_v48 = vpop.f32.mrf.mxu1 }
 0x19f   :  { %8796 = vst [vmem:[#allocation79_spill] sm:$0xff] %v6237_v43  ;;  %v6239_v3 = vadd.f32 %v2064_v31, %v1761_v49  ;;  %2574 = vadd.xlane.f32.xlu0 %v2573_v17  ;;  %v2433_v49 = vmul.f32 %v6237_v43, %v6237_v43 }
 0x1a0   :  { %v1763_v62 = vpop.f32.mrf.mxu0  ;;  %v2576_v12 = vadd.f32 %v2432_v8, %v2431_v35 }
 0x1a1   :  { %8797 = vst [vmem:[#allocation80_spill] sm:$0xff] %v6239_v3  ;;  %2253 = vadd.xlane.f32.xlu1 %v2252_v20  ;;  %v2255_v31 = vadd.f32 %v6239_v3, %v6237_v43  ;;  %v2434_v59 = vmul.f32 %v6239_v3, %v6239_v3  ;;  %v2682_v20 = vmul.f32 %v6245_v24, %v6245_v24 }
 0x1a2   :  { %v1765_v36 = vpop.f32.mrf.mxu0  ;;  %v6263_v17 = vadd.f32 %v2066_v5, %v1763_v62 }
 0x1a3   :  { %v6257_v38 = vadd.f32 %v2068_v53, %v1765_v36  ;;  %2256 = vadd.xlane.f32.xlu0 %v2255_v31  ;;  %v2579_v3 = vadd.f32 %v2434_v59, %v2433_v49  ;;  %v2735_v53 = vsub.f32 %v2627_v40, %v2681_v29  ;;  %v2736_v36 = vsub.f32 %v2628_v11, %v2682_v20 }
 0x1a4   :  { %v1769_v55 = vpop.f32.mrf.mxu0  ;;  %8799 = vst [vmem:[#allocation82_spill] sm:$0xff] %v6263_v17  ;;  %v2435_v62 = vmul.f32 %v6263_v17, %v6263_v17 }
 0x1a5   :  { %8798 = vst [vmem:[#allocation81_spill] sm:$0xff] %v6257_v38  ;;  %2577 = vadd.xlane.f32.xlu1 %v2576_v12  ;;  %v6265_v43 = vadd.f32 %v2072_v39, %v1769_v55  ;;  %v2258_v8 = vadd.f32 %v6257_v38, %v6263_v17  ;;  %v2436_v35 = vmul.f32 %v6257_v38, %v6257_v38  ;;  %v2078_v39 = vpop.f32.mrf.mxu1  ;;  %v2789_v11 = vmax.f32 %v2735_v53, 0.0 }
 0x1a6   :  { %v1771_v0 = vpop.f32.mrf.mxu0  ;;  %v2790_v12 = vmax.f32 %v2736_v36, 0.0 }
 0x1a7   :  { %8800 = vst [vmem:[#allocation83_spill] sm:$0xff] %v6265_v43  ;;  %v6271_v31 = vadd.f32 %v2074_v4, %v1771_v0  ;;  %2580 = vadd.xlane.f32.xlu0 %v2579_v3  ;;  %v2437_v59 = vmul.f32 %v6265_v43, %v6265_v43  ;;  %v2582_v3 = vadd.f32 %v2436_v35, %v2435_v62  ;;  %v2897_v29 = vadd.f32 1e-05, %v2789_v11  ;;  %v2843_v62 = vld [vmem:[%s8571_s3] sm:$0xff]  ;;  %v2149_v11 = vpop.xlane.xlu1 %2148 }
 0x1a8   :  { %v1773_v5 = vpop.f32.mrf.mxu0  ;;  %v2898_v38 = vadd.f32 1e-05, %v2790_v12 }
 0x1a9   :  { %8801 = vst [vmem:[#allocation84_spill] sm:$0xff] %v6271_v31  ;;  %2259 = vadd.xlane.f32.xlu1 %v2258_v8  ;;  %v2261_v49 = vadd.f32 %v6271_v31, %v6265_v43  ;;  %v2438_v40 = vmul.f32 %v6271_v31, %v6271_v31  ;;  %v6283_v20 = vadd.f32 %v2076_v48, %v1773_v5  ;;  %5033 = vrsqrt.f32 %v2897_v29  ;;  %v2844_v5 = vld [vmem:[%s8571_s3 + $0x8] sm:$0xff]  ;;  %v2473_v29 = vpop.xlane.xlu0 %2472 }
 0x1aa   :  { %v1775_v30 = vpop.f32.mrf.mxu0  ;;  %5035 = vrsqrt.f32 %v2898_v38  ;;  %v2082_v38 = vpop.f32.mrf.mxu1 }
 0x1ab   :  { %v6281_v4 = vadd.f32 %v2078_v39, %v1775_v30  ;;  %2262 = vadd.xlane.f32.xlu0 %v2261_v49  ;;  %8803 = vst [vmem:[#allocation86_spill] sm:$0xff] %v6283_v20  ;;  %v2585_v55 = vadd.f32 %v2438_v40, %v2437_v59  ;;  %v2439_v53 = vmul.f32 %v6283_v20, %v6283_v20 }
 0x1ac   :  { %v1779_v40 = vpop.f32.mrf.mxu0 }
 0x1ad   :  { %8802 = vst [vmem:[#allocation85_spill] sm:$0xff] %v6281_v4  ;;  %2583 = vadd.xlane.f32.xlu1 %v2582_v3  ;;  %v2264_v0 = vadd.f32 %v6281_v4, %v6283_v20  ;;  %v2440_v8 = vmul.f32 %v6281_v4, %v6281_v4  ;;  %v2084_v3 = vpop.f32.mrf.mxu1 }
 0x1ae   :  { %v1781_v12 = vpop.f32.mrf.mxu0 }
 0x1af   :  { %2586 = vadd.xlane.f32.xlu0 %v2585_v55  ;;  %v2588_v35 = vadd.f32 %v2440_v8, %v2439_v53  ;;  %v6301_v55 = vmul.f32 0.0051020407, %v2149_v11  ;;  %v2152_v8 = vpop.xlane.xlu1 %2151 }
 0x1b0   :  { %v1783_v53 = vpop.f32.mrf.mxu0 }
 0x1b1   :  { %2265 = vadd.xlane.f32.xlu1 %v2264_v0  ;;  %v2086_v0 = vpop.f32.mrf.mxu1 }
 0x1b3   :  { %v2476_v4 = vpop.xlane.xlu1 %2475 }
 0x1b4   :  { %v2630_v17 = vmul.f32 0.0051020407, %v2476_v4 }
 0x1b5   :  { %2589 = vadd.xlane.f32.xlu1 %v2588_v35  ;;  %v5025_v35 = vld [vmem:[%s8570_s2 + $0x320] ss:$16 sps:$4 sm:$0xff]  }
 0x1b6   :  { %v5034_v48 = vpop.eup %5033 }
 0x1b7   :  { %v5036_v36 = vpop.eup %5035  ;;  %v3005_v30 = vmul.f32 %v5034_v48, %v2843_v62  ;;  %v2683_v48 = vmul.f32 %v6301_v55, %v6301_v55  ;;  %v2088_v62 = vpop.f32.mrf.mxu1 }
 0x1b8   :  { %v3006_v39 = vmul.f32 %v5036_v36, %v2844_v5  ;;  %v2629_v36 = vmul.f32 0.0051020407, %v2473_v29  ;;  %v5026_v5 = vld [vmem:[%s8570_s2 + $0x328] ss:$16 sps:$4 sm:$0xff]   ;;  %v2306_v29 = vmul.f32 0.0051020407, %v2152_v8 }
 0x1b9   :  { %v3059_v59 = vmul.f32 %v3005_v30, %v6247_v34  ;;  %v5023_v34 = vld [vmem:[%s8570_s2 + $0x32c] ss:$16 sps:$4 sm:$0xff]   ;;  %v2092_v11 = vpop.f32.mrf.mxu1 }
 0x1ba   :  { %v3060_v49 = vmul.f32 %v3006_v39, %v6245_v24  ;;  %v5021_v24 = vld [vmem:[%s8570_s2 + $0x324] ss:$16 sps:$4 sm:$0xff]   ;;  %4708 = vmatprep.mubr.msk.bf16.mxu1 %vm1453_vm0, %v5023_v34  ;;  %v2684_v37 = vmul.f32 %v2306_v29, %v2306_v29 }
 0x1bb   :  { %1817 = vmatprep.mubr.bf16.mxu0 %v5021_v24  ;;  %2121 = vmatmul.mubr.bf16.gmra.mxu1 %v5026_v5  ;;  %v2094_v43 = vpop.f32.mrf.mxu1 }
 0x1bc   :  { %1818 = vmatmul.mubr.bf16.gmra.mxu0 %v5025_v35  ;;  %v2738_v8 = vsub.f32 %v2630_v17, %v2684_v37 }
 0x1c5   :  { %3493 = vperm.xlu0 %4821, %v3005_v30   ;;  %v2737_v30 = vsub.f32 %v2629_v36, %v2683_v48 }
 0x1c6   :  { %3498 = vperm.xlu1 %4822, %v3006_v39   ;;  %v1785_v39 = vpop.f32.mrf.mxu0 }
 0x1c7   :  { %v2791_v24 = vmax.f32 %v2737_v30, 0.0  ;;  %v2792_v30 = vmax.f32 %v2738_v8, 0.0 }
 0x1c8   :  { %v1789_v20 = vpop.f32.mrf.mxu0 }
 0x1c9   :  { %3167 = vrot.lane.b32.xlu0 %v3059_v59, %s5179_s11  ;;  %v6320_v59 = vadd.f32 %v2084_v3, %v1781_v12  ;;  %v6330_v3 = vadd.f32 %v2088_v62, %v1785_v39  ;;  %v2899_v12 = vadd.f32 1e-05, %v2791_v24  ;;  %v6332_v4 = vadd.f32 %v2092_v11, %v1789_v20  ;;  %v2846_v20 = vld [vmem:[%s8571_s3 + $0x18] sm:$0xff]  ;;  %v2155_v39 = vpop.xlane.xlu0 %2154 }
 0x1ca   :  { %3169 = vrot.lane.b32.xlu1 %v3060_v49, %s5179_s11  ;;  %v6318_v49 = vadd.f32 %v2082_v38, %v1779_v40  ;;  %v1791_v31 = vpop.f32.mrf.mxu0  ;;  %v6328_v40 = vadd.f32 %v2086_v0, %v1783_v53  ;;  %v2900_v53 = vadd.f32 1e-05, %v2792_v30  ;;  %v2307_v24 = vmul.f32 0.0051020407, %v2155_v39 }
 0x1cb   :  { %8805 = vst [vmem:[#allocation88_spill] sm:$0xff] %v6320_v59  ;;  %v2442_v38 = vmul.f32 %v6320_v59, %v6320_v59  ;;  %8807 = vst [vmem:[#allocation90_spill] sm:$0xff] %v6330_v3  ;;  %v6334_v48 = vadd.f32 %v2094_v43, %v1791_v31  ;;  %5037 = vrsqrt.f32 %v2899_v12  ;;  %v2845_v43 = vld [vmem:[%s8571_s3 + $0x10] sm:$0xff]  ;;  %v2444_v8 = vmul.f32 %v6330_v3, %v6330_v3 }
 0x1cc   :  { %8804 = vst [vmem:[#allocation87_spill] sm:$0xff] %v6318_v49  ;;  %v2267_v34 = vadd.f32 %v6320_v59, %v6318_v49  ;;  %v2441_v35 = vmul.f32 %v6318_v49, %v6318_v49  ;;  %8806 = vst [vmem:[#allocation89_spill] sm:$0xff] %v6328_v40  ;;  %v2270_v5 = vadd.f32 %v6330_v3, %v6328_v40  ;;  %5039 = vrsqrt.f32 %v2900_v53 }
 0x1cd   :  { %8808 = vst [vmem:[#allocation91_spill] sm:$0xff] %v6332_v4  ;;  %8809 = vst [vmem:[#allocation92_spill] sm:$0xff] %v6334_v48  ;;  %v2273_v0 = vadd.f32 %v6334_v48, %v6332_v4  ;;  %v2479_v11 = vpop.xlane.xlu0 %2478  ;;  %v2443_v12 = vmul.f32 %v6328_v40, %v6328_v40  ;;  %v2446_v30 = vmul.f32 %v6334_v48, %v6334_v48 }
 0x1ce   :  { %v2591_v36 = vadd.f32 %v2442_v38, %v2441_v35  ;;  %v2685_v35 = vmul.f32 %v2307_v24, %v2307_v24 }
 0x1d8   :  { %v5038_v37 = vpop.eup %5037 }
 0x1d9   :  { %v3007_v17 = vmul.f32 %v5038_v37, %v2845_v43  ;;  %v5040_v31 = vpop.eup %5039 }
 0x1da   :  { %v3008_v62 = vmul.f32 %v5040_v31, %v2846_v20  ;;  %v2847_v20 = vld [vmem:[%s8571_s3 + $0x20] sm:$0xff] }
 0x1db   :  { %v3061_v43 = vmul.f32 %v3007_v17, %v6301_v55  ;;  %v5027_v55 = vld [vmem:[%s8570_s2 + $0x344] ss:$16 sps:$4 sm:$0xff]  }
 0x1dc   :  { %v3062_v39 = vmul.f32 %v3008_v62, %v2306_v29  ;;  %v5031_v29 = vld [vmem:[%s8570_s2 + $0x340] ss:$16 sps:$4 sm:$0xff]   ;;  %1827 = vmatprep.mubr.bf16.mxu0 %v5027_v55 }
 0x1dd   :  { %1828 = vmatmul.mubr.bf16.gmra.mxu0 %v5031_v29 }
 0x1e8   :  { %2268 = vadd.xlane.f32.xlu0 %v2267_v34  ;;  %v2631_v34 = vmul.f32 0.0051020407, %v2479_v11 }
 0x1ea   :  { %v2739_v38 = vsub.f32 %v2631_v34, %v2685_v35  ;;  %v1793_v35 = vpop.f32.mrf.mxu0 }
 0x1ec   :  { %2592 = vadd.xlane.f32.xlu0 %v2591_v36  ;;  %v2793_v36 = vmax.f32 %v2739_v38, 0.0  ;;  %v2096_v38 = vpop.f32.mrf.mxu1 }
 0x1ed   :  { %v6378_v3 = vadd.f32 %v2096_v38, %v1793_v35  ;;  %v2161_v38 = vpop.xlane.xlu0 %2160 }
 0x1ee   :  { %2271 = vadd.xlane.f32.xlu1 %v2270_v5  ;;  %v2445_v5 = vmul.f32 %v6332_v4, %v6332_v4  ;;  %v2901_v53 = vadd.f32 1e-05, %v2793_v36 }
 0x1ef   :  { %8812 = vst [vmem:[#allocation95_spill] sm:$0xff] %v6378_v3 }
 0x1f0   :  { %2274 = vadd.xlane.f32.xlu0 %v2273_v0  ;;  %v2594_v0 = vadd.f32 %v2444_v8, %v2443_v12  ;;  %v2597_v37 = vadd.f32 %v2446_v30, %v2445_v5  ;;  %5041 = vrsqrt.f32 %v2901_v53  ;;  %v2158_v12 = vpop.xlane.xlu1 %2157  ;;  %v2098_v8 = vpop.f32.mrf.mxu1 }
 0x1f2   :  { %v2102_v30 = vpop.f32.mrf.mxu1 }
 0x1f4   :  { %v2482_v36 = vpop.xlane.xlu1 %2481 }
 0x1f5   :  { %v2632_v53 = vmul.f32 0.0051020407, %v2482_v36 }
 0x1fd   :  { %v5042_v31 = vpop.eup %5041 }
 0x1fe   :  { %v3009_v11 = vmul.f32 %v5042_v31, %v2847_v20 }
 0x1ff   :  { %3503 = vperm.xlu1 %4822, %v3007_v17   ;;  %v5029_v17 = vld [vmem:[%s8570_s2 + $0x34c] ss:$16 sps:$4 sm:$0xff]  }
 0x200   :  { %v3063_v34 = vmul.f32 %v3009_v11, %v2307_v24  ;;  %v1795_v24 = vpop.f32.mrf.mxu0  ;;  %4709 = vmatprep.mubr.msk.bf16.mxu1 %vm1453_vm0, %v5029_v17 }
 0x201   :  { %v6380_v55 = vadd.f32 %v2098_v8, %v1795_v24  ;;  %v2485_v24 = vpop.xlane.xlu0 %2484  ;;  %v2309_v8 = vmul.f32 0.0051020407, %v2161_v38 }
 0x202   :  { %v1799_v5 = vpop.f32.mrf.mxu0 }
 0x203   :  { %8813 = vst [vmem:[#allocation96_spill] sm:$0xff] %v6380_v55 }
 0x206   :  { %3508 = vperm.xlu0 %4821, %v3008_v62   ;;  %v5032_v62 = vld [vmem:[%s8570_s2 + $0x348] ss:$16 sps:$4 sm:$0xff]  }
 0x207   :  { %2131 = vmatmul.mubr.bf16.gmra.mxu1 %v5032_v62 }
 0x223   :  { %2595 = vadd.xlane.f32.xlu1 %v2594_v0  ;;  %v2308_v0 = vmul.f32 0.0051020407, %v2158_v12  ;;  %v2276_v12 = vadd.f32 %v6380_v55, %v6378_v3 }
 0x225   :  { %2598 = vadd.xlane.f32.xlu0 %v2597_v37  ;;  %v1801_v37 = vpop.f32.mrf.mxu0  ;;  %v2686_v31 = vmul.f32 %v2308_v0, %v2308_v0 }
 0x227   :  { %v2740_v20 = vsub.f32 %v2632_v53, %v2686_v31  ;;  %v2687_v53 = vmul.f32 %v2309_v8, %v2309_v8 }
 0x229   :  { %v2794_v17 = vmax.f32 %v2740_v20, 0.0 }
 0x22b   :  { %v2902_v62 = vadd.f32 1e-05, %v2794_v17  ;;  %v2447_v17 = vmul.f32 %v6378_v3, %v6378_v3 }
 0x22d   :  { %5043 = vrsqrt.f32 %v2902_v62 }
 0x234   :  { %3171 = vrot.lane.b32.xlu1 %v3061_v43, %s5179_s11  ;;  %v2104_v43 = vpop.f32.mrf.mxu1 }
 0x238   :  { %3173 = vrot.lane.b32.xlu1 %v3062_v39, %s5179_s11  ;;  %v6374_v39 = vadd.f32 %v2102_v30, %v1799_v5  ;;  %v2848_v5 = vld [vmem:[%s8571_s3 + $0x28] sm:$0xff]  ;;  %v2633_v30 = vmul.f32 0.0051020407, %v2485_v24 }
 0x23a   :  { %8810 = vst [vmem:[#allocation93_spill] sm:$0xff] %v6374_v39  ;;  %v5044_v36 = vpop.eup %5043  ;;  %v2449_v31 = vmul.f32 %v6374_v39, %v6374_v39 }
 0x23b   :  { %3175 = vrot.lane.b32.xlu0 %v3063_v34, %s5179_s11  ;;  %v6376_v34 = vadd.f32 %v2104_v43, %v1801_v37  ;;  %v3010_v35 = vmul.f32 %v5044_v36, %v2848_v5  ;;  %v2741_v37 = vsub.f32 %v2633_v30, %v2687_v53  ;;  %v2849_v5 = vld [vmem:[%s8571_s3 + $0x30] sm:$0xff]  ;;  %v1803_v53 = vpop.f32.mrf.mxu0 }
 0x23d   :  { %8811 = vst [vmem:[#allocation94_spill] sm:$0xff] %v6376_v34  ;;  %v2279_v29 = vadd.f32 %v6376_v34, %v6374_v39  ;;  %v2795_v43 = vmax.f32 %v2741_v37, 0.0  ;;  %v2450_v20 = vmul.f32 %v6376_v34, %v6376_v34  ;;  %v3064_v38 = vmul.f32 %v3010_v35, %v2308_v0  ;;  %v2106_v37 = vpop.f32.mrf.mxu1 }
 0x25a   :  { %2280 = vadd.xlane.f32.xlu0 %v2279_v29  ;;  %v2903_v29 = vadd.f32 1e-05, %v2795_v43  ;;  %v2164_v43 = vpop.xlane.xlu1 %2163 }
 0x25c   :  { %2277 = vadd.xlane.f32.xlu1 %v2276_v12  ;;  %v2603_v12 = vadd.f32 %v2450_v20, %v2449_v31  ;;  %5045 = vrsqrt.f32 %v2903_v29  ;;  %v1805_v31 = vpop.f32.mrf.mxu0  ;;  %v2108_v20 = vpop.f32.mrf.mxu1 }
 0x25e   :  { %v2112_v29 = vpop.f32.mrf.mxu1 }
 0x260   :  { %v2114_v3 = vpop.f32.mrf.mxu1 }
 0x269   :  { %v5046_v36 = vpop.eup %5045 }
 0x26a   :  { %v3011_v24 = vmul.f32 %v5046_v36, %v2849_v5  ;;  %v6408_v5 = vadd.f32 %v2108_v20, %v1805_v31 }
 0x26c   :  { %v3065_v30 = vmul.f32 %v3011_v24, %v2309_v8  ;;  %v6406_v8 = vadd.f32 %v2106_v37, %v1803_v53  ;;  %8817 = vst [vmem:[#allocation100_spill] sm:$0xff] %v6408_v5  ;;  %v2167_v53 = vpop.xlane.xlu0 %2166 }
 0x26d   :  { %3513 = vperm.xlu1 %4822, %v3009_v11   ;;  %v2448_v11 = vmul.f32 %v6380_v55, %v6380_v55  ;;  %v2311_v31 = vmul.f32 0.0051020407, %v2167_v53  ;;  %v2851_v53 = vld [vmem:[%s8571_s3 + $0x40] sm:$0xff] }
 0x26e   :  { %8816 = vst [vmem:[#allocation99_spill] sm:$0xff] %v6406_v8 }
 0x26f   :  { %v2600_v62 = vadd.f32 %v2448_v11, %v2447_v17  ;;  %v2488_v17 = vpop.xlane.xlu1 %2487  ;;  %v1809_v11 = vpop.f32.mrf.mxu0 }
 0x270   :  { %3518 = vperm.xlu0 %4821, %v3010_v35   ;;  %v6402_v35 = vadd.f32 %v2112_v29, %v1809_v11  ;;  %v2491_v37 = vpop.xlane.xlu0 %2490  ;;  %v2689_v11 = vmul.f32 %v2311_v31, %v2311_v31 }
 0x271   :  { %v1811_v55 = vpop.f32.mrf.mxu0  ;;  %v2635_v20 = vmul.f32 0.0051020407, %v2491_v37 }
 0x272   :  { %8814 = vst [vmem:[#allocation97_spill] sm:$0xff] %v6402_v35  ;;  %v6404_v36 = vadd.f32 %v2114_v3, %v1811_v55  ;;  %v2850_v3 = vld [vmem:[%s8571_s3 + $0x38] sm:$0xff] }
 0x273   :  { %v2743_v29 = vsub.f32 %v2635_v20, %v2689_v11 }
 0x274   :  { %8815 = vst [vmem:[#allocation98_spill] sm:$0xff] %v6404_v36 }
 0x28f   :  { %2604 = vadd.xlane.f32.xlu0 %v2603_v12  ;;  %v2310_v12 = vmul.f32 0.0051020407, %v2164_v43  ;;  %v2282_v43 = vadd.f32 %v6408_v5, %v6406_v8 }
 0x291   :  { %2601 = vadd.xlane.f32.xlu1 %v2600_v62  ;;  %v2634_v62 = vmul.f32 0.0051020407, %v2488_v17  ;;  %v2688_v40 = vmul.f32 %v2310_v12, %v2310_v12 }
 0x293   :  { %v2742_v0 = vsub.f32 %v2634_v62, %v2688_v40  ;;  %v2797_v62 = vmax.f32 %v2743_v29, 0.0  ;;  %v1813_v29 = vpop.f32.mrf.mxu0 }
 0x2a2   :  { %3177 = vrot.lane.b32.xlu1 %v3064_v38, %s5179_s11  ;;  %v2796_v38 = vmax.f32 %v2742_v0, 0.0  ;;  %v2453_v0 = vmul.f32 %v6402_v35, %v6402_v35 }
 0x2a4   :  { %v2904_v17 = vadd.f32 1e-05, %v2796_v38  ;;  %v2454_v38 = vmul.f32 %v6404_v36, %v6404_v36 }
 0x2a5   :  { %3179 = vrot.lane.b32.xlu0 %v3065_v30, %s5179_s11  ;;  %v2285_v30 = vadd.f32 %v6404_v36, %v6402_v35 }
 0x2a6   :  { %5047 = vrsqrt.f32 %v2904_v17  ;;  %v2609_v17 = vadd.f32 %v2454_v38, %v2453_v0  ;;  %v1815_v0 = vpop.f32.mrf.mxu0 }
 0x2b3   :  { %v5048_v40 = vpop.eup %5047 }
 0x2b4   :  { %v3012_v55 = vmul.f32 %v5048_v40, %v2850_v3 }
 0x2b6   :  { %v3066_v37 = vmul.f32 %v3012_v55, %v2310_v12 }
 0x2c4   :  { %2286 = vadd.xlane.f32.xlu0 %v2285_v30  ;;  %v2451_v30 = vmul.f32 %v6406_v8, %v6406_v8 }
 0x2c6   :  { %2283 = vadd.xlane.f32.xlu1 %v2282_v43  ;;  %v2905_v43 = vadd.f32 1e-05, %v2797_v62  ;;  %v2170_v62 = vpop.xlane.xlu1 %2169 }
 0x2c8   :  { %5049 = vrsqrt.f32 %v2905_v43 }
 0x2d5   :  { %v5050_v3 = vpop.eup %5049 }
 0x2d6   :  { %v3013_v20 = vmul.f32 %v5050_v3, %v2851_v53 }
 0x2d7   :  { %3523 = vperm.xlu1 %4822, %v3011_v24   ;;  %v2452_v24 = vmul.f32 %v6408_v5, %v6408_v5  ;;  %v2116_v5 = vpop.f32.mrf.mxu1 }
 0x2d8   :  { %v3067_v11 = vmul.f32 %v3013_v20, %v2311_v31  ;;  %v6434_v31 = vadd.f32 %v2116_v5, %v1813_v29  ;;  %v2852_v5 = vld [vmem:[%s8571_s3 + $0x48] sm:$0xff] }
 0x2d9   :  { %v2606_v40 = vadd.f32 %v2452_v24, %v2451_v30  ;;  %v2118_v38 = vpop.f32.mrf.mxu1  ;;  %v2494_v30 = vpop.xlane.xlu1 %2493 }
 0x2da   :  { %3528 = vperm.xlu0 %4821, %v3012_v55   ;;  %v1819_v24 = vpop.f32.mrf.mxu0  ;;  %8820 = vst [vmem:[#allocation103_spill] sm:$0xff] %v6434_v31  ;;  %v6436_v53 = vadd.f32 %v2118_v38, %v1815_v0 }
 0x2db   :  { %v2122_v43 = vpop.f32.mrf.mxu1 }
 0x2dc   :  { %v1821_v8 = vpop.f32.mrf.mxu0  ;;  %v6430_v55 = vadd.f32 %v2122_v43, %v1819_v24  ;;  %8821 = vst [vmem:[#allocation104_spill] sm:$0xff] %v6436_v53 }
 0x2dd   :  { %v2124_v36 = vpop.f32.mrf.mxu1 }
 0x2de   :  { %8818 = vst [vmem:[#allocation101_spill] sm:$0xff] %v6430_v55  ;;  %v6432_v3 = vadd.f32 %v2124_v36, %v1821_v8  ;;  %v1823_v58 = vpop.f32.mrf.mxu0 }
 0x2df   :  { %v2126_v7 = vpop.f32.mrf.mxu1 }
 0x2e0   :  { %8819 = vst [vmem:[#allocation102_spill] sm:$0xff] %v6432_v3  ;;  %v2291_v34 = vadd.f32 %v6432_v3, %v6430_v55 }
 0x2f9   :  { %2610 = vadd.xlane.f32.xlu0 %v2609_v17  ;;  %v2312_v17 = vmul.f32 0.0051020407, %v2170_v62  ;;  %v2288_v62 = vadd.f32 %v6436_v53, %v6434_v31 }
 0x2fb   :  { %2607 = vadd.xlane.f32.xlu1 %v2606_v40  ;;  %v2636_v40 = vmul.f32 0.0051020407, %v2494_v30  ;;  %v2690_v35 = vmul.f32 %v2312_v17, %v2312_v17 }
 0x2fd   :  { %v2744_v12 = vsub.f32 %v2636_v40, %v2690_v35 }
 0x30c   :  { %3181 = vrot.lane.b32.xlu1 %v3066_v37, %s5179_s11  ;;  %v2173_v37 = vpop.xlane.xlu0 %2172 }
 0x30d   :  { %v2313_v43 = vmul.f32 0.0051020407, %v2173_v37  ;;  %v2456_v37 = vmul.f32 %v6436_v53, %v6436_v53 }
 0x30f   :  { %3183 = vrot.lane.b32.xlu0 %v3067_v11, %s5179_s11  ;;  %v2798_v11 = vmax.f32 %v2744_v12, 0.0 }
 0x310   :  { %v2497_v35 = vpop.xlane.xlu0 %2496 }
 0x311   :  { %v2906_v30 = vadd.f32 1e-05, %v2798_v11  ;;  %v2637_v40 = vmul.f32 0.0051020407, %v2497_v35  ;;  %v2691_v11 = vmul.f32 %v2313_v43, %v2313_v43 }
 0x313   :  { %5051 = vrsqrt.f32 %v2906_v30 }
 0x314   :  { %v6442_v24 = vpop.xlane.xlu0 %2178 }
 0x315   :  { %v6551_v28 = vmul.f32 0.0051020407, %v6442_v24 }
 0x318   :  { %v6444_v36 = vpop.xlane.xlu0 %2502 }
 0x31c   :  { %v6449_v29 = vpop.xlane.xlu0 %2184 }
 0x31d   :  { %v6568_v24 = vmul.f32 0.0051020407, %v6449_v29 }
 0x320   :  { %v5052_v8 = vpop.eup %5051  ;;  %v6451_v38 = vpop.xlane.xlu0 %2508 }
 0x321   :  { %v3014_v0 = vmul.f32 %v5052_v8, %v2852_v5  ;;  %v2458_v8 = vmul.f32 %v6432_v3, %v6432_v3  ;;  %v2455_v5 = vmul.f32 %v6434_v31, %v6434_v31  ;;  %v2641_v23 = vmul.f32 0.0051020407, %v6451_v38 }
 0x32e   :  { %2292 = vadd.xlane.f32.xlu0 %v2291_v34  ;;  %v6453_v34 = vpop.xlane.xlu0 %2190 }
 0x32f   :  { %v6592_v32 = vmul.f32 0.0051020407, %v6453_v34 }
 0x330   :  { %2289 = vadd.xlane.f32.xlu1 %v2288_v62  ;;  %v2745_v62 = vsub.f32 %v2637_v40, %v2691_v11  ;;  %v2176_v40 = vpop.xlane.xlu1 %2175  ;;  %v2612_v11 = vadd.f32 %v2456_v37, %v2455_v5 }
 0x331   :  { %v2697_v34 = vmul.f32 %v6592_v32, %v6592_v32 }
 0x332   :  { %v6455_v12 = vpop.xlane.xlu0 %2514  ;;  %v2799_v39 = vmax.f32 %v2745_v62, 0.0 }
 0x334   :  { %v2907_v35 = vadd.f32 1e-05, %v2799_v39  ;;  %v2853_v39 = vld [vmem:[%s8571_s3 + $0x50] sm:$0xff] }
 0x336   :  { %v6457_v30 = vpop.xlane.xlu0 %2196  ;;  %5053 = vrsqrt.f32 %v2907_v35 }
 0x33a   :  { %v6467_v4 = vpop.xlane.xlu0 %2520 }
 0x33e   :  { %v6469_v62 = vpop.xlane.xlu0 %2202 }
 0x341   :  { %3533 = vperm.xlu1 %4822, %v3013_v20   ;;  %v2457_v20 = vmul.f32 %v6430_v55, %v6430_v55  ;;  %v2500_v55 = vpop.xlane.xlu1 %2499 }
 0x342   :  { %v6471_v59 = vpop.xlane.xlu0 %2526 }
 0x343   :  { %v2615_v48 = vadd.f32 %v2458_v8, %v2457_v20  ;;  %v5054_v31 = vpop.eup %5053  ;;  %v3068_v8 = vmul.f32 %v3014_v0, %v2312_v17  ;;  %v1825_v17 = vpop.f32.mrf.mxu0 }
 0x344   :  { %3538 = vperm.xlu0 %4821, %v3014_v0   ;;  %v3015_v53 = vmul.f32 %v5054_v31, %v2853_v39  ;;  %v2128_v31 = vpop.f32.mrf.mxu1 }
 0x345   :  { %v6473_v3 = vpop.xlane.xlu1 %2181  ;;  %v1829_v39 = vpop.f32.mrf.mxu0  ;;  %v6514_v41 = vadd.f32 %v2128_v31, %v1825_v17 }
 0x346   :  { %v6478_v20 = vpop.xlane.xlu0 %2208  ;;  %v6563_v10 = vmul.f32 0.0051020407, %v6473_v3 }
 0x347   :  { %v1831_v21 = vpop.f32.mrf.mxu0  ;;  %8825 = vst [vmem:[#allocation108_spill] sm:$0xff] %v6514_v41 }
 0x348   :  { %v2694_v3 = vmul.f32 %v6563_v10, %v6563_v10 }
 0x349   :  { %v6480_v5 = vpop.xlane.xlu1 %2505  ;;  %v1833_v13 = vpop.f32.mrf.mxu0 }
 0x34a   :  { %v6483_v37 = vpop.xlane.xlu0 %2532  ;;  %v2640_v57 = vmul.f32 0.0051020407, %v6480_v5  ;;  %v2460_v5 = vmul.f32 %v6514_v41, %v6514_v41 }
 0x34c   :  { %v2748_v29 = vsub.f32 %v2640_v57, %v2694_v3 }
 0x34d   :  { %v6486_v35 = vpop.xlane.xlu1 %2187 }
 0x34e   :  { %v6589_v52 = vmul.f32 0.0051020407, %v6486_v35  ;;  %v2802_v27 = vmax.f32 %v2748_v29, 0.0 }
 0x350   :  { %v2910_v35 = vadd.f32 1e-05, %v2802_v27  ;;  %v2645_v27 = vmul.f32 0.0051020407, %v6467_v4 }
 0x351   :  { %v6490_v49 = vpop.xlane.xlu1 %2511 }
 0x352   :  { %v2642_v57 = vmul.f32 0.0051020407, %v6490_v49 }
 0x355   :  { %v6494_v0 = vpop.xlane.xlu1 %2193 }
 0x359   :  { %v6500_v51 = vpop.xlane.xlu1 %2517 }
 0x35a   :  { %v2644_v29 = vmul.f32 0.0051020407, %v6500_v51 }
 0x35d   :  { %v6510_v42 = vpop.xlane.xlu1 %2199 }
 0x363   :  { %2616 = vadd.xlane.f32.xlu0 %v2615_v48  ;;  %v3069_v48 = vmul.f32 %v3015_v53, %v2313_v43  ;;  %v2132_v43 = vpop.f32.mrf.mxu1 }
 0x364   :  { %v6504_v61 = vadd.f32 %v2132_v43, %v1829_v39  ;;  %v2854_v43 = vld [vmem:[%s8571_s3 + $0x58] sm:$0xff] }
 0x365   :  { %2613 = vadd.xlane.f32.xlu1 %v2612_v11  ;;  %v6488_v11 = vpop.xlane.xlu0 %2214  ;;  %v2134_v26 = vpop.f32.mrf.mxu1 }
 0x366   :  { %8822 = vst [vmem:[#allocation105_spill] sm:$0xff] %v6504_v61  ;;  %v6506_v1 = vadd.f32 %v2134_v26, %v1831_v21  ;;  %v6522_v21 = vpop.xlane.xlu1 %2523 }
 0x368   :  { %8823 = vst [vmem:[#allocation106_spill] sm:$0xff] %v6506_v1  ;;  %v2297_v45 = vadd.f32 %v6506_v1, %v6504_v61 }
 0x369   :  { %v6492_v14 = vpop.xlane.xlu0 %2538 }
 0x36d   :  { %v6498_v44 = vpop.xlane.xlu0 %2220 }
 0x371   :  { %v6508_v19 = vpop.xlane.xlu0 %2544 }
 0x375   :  { %v6518_v16 = vpop.xlane.xlu0 %2226 }
 0x376   :  { %3185 = vrot.lane.b32.xlu1 %v3068_v8, %s5179_s11  ;;  %v6496_v8 = vmul.f32 0.0051020407, %v2176_v40  ;;  %v6512_v40 = vadd.f32 %v2126_v7, %v1823_v58  ;;  %v6526_v7 = vpop.xlane.xlu1 %2205 }
 0x378   :  { %v2692_v54 = vmul.f32 %v6496_v8, %v6496_v8  ;;  %8824 = vst [vmem:[#allocation107_spill] sm:$0xff] %v6512_v40  ;;  %v2459_v38 = vmul.f32 %v6512_v40, %v6512_v40 }
 0x379   :  { %3187 = vrot.lane.b32.xlu0 %v3069_v48, %s5179_s11  ;;  %v2638_v48 = vmul.f32 0.0051020407, %v2500_v55  ;;  %v6524_v26 = vpop.xlane.xlu0 %2550 }
 0x37a   :  { %v2618_v3 = vadd.f32 %v2460_v5, %v2459_v38 }
 0x37b   :  { %v2746_v63 = vsub.f32 %v2638_v48, %v2692_v54  ;;  %v2294_v54 = vadd.f32 %v6514_v41, %v6512_v40  ;;  %v2643_v40 = vmul.f32 0.0051020407, %v6455_v12  ;;  %v6608_v12 = vmul.f32 0.0051020407, %v6457_v30  ;;  %v2858_v41 = vld [vmem:[%s8571_s3 + $0x78] sm:$0xff] }
 0x37d   :  { %v2800_v55 = vmax.f32 %v2746_v63, 0.0  ;;  %v6528_v58 = vpop.xlane.xlu0 %2232  ;;  %v6530_v63 = vpop.xlane.xlu1 %2529 }
 0x37f   :  { %v2908_v39 = vadd.f32 1e-05, %v2800_v55 }
 0x381   :  { %5055 = vrsqrt.f32 %v2908_v39  ;;  %v6532_v31 = vpop.xlane.xlu0 %2556  ;;  %v6537_v48 = vpop.xlane.xlu1 %2211 }
 0x385   :  { %v6542_v55 = vpop.xlane.xlu0 %2238 }
 0x389   :  { %v6546_v39 = vpop.xlane.xlu0 %2562 }
 0x38d   :  { %v6553_v22 = vpop.xlane.xlu0 %2244 }
 0x38e   :  { %v5056_v17 = vpop.eup %5055 }
 0x391   :  { %v6560_v25 = vpop.xlane.xlu0 %2568 }
 0x395   :  { %v6580_v15 = vpop.xlane.xlu0 %2250 }
 0x398   :  { %2298 = vadd.xlane.f32.xlu0 %v2297_v45  ;;  %v6539_v45 = vmul.f32 %v5056_v17, %v2854_v43  ;;  %v2693_v17 = vmul.f32 %v6551_v28, %v6551_v28 }
 0x399   :  { %v6596_v2 = vpop.xlane.xlu0 %2574 }
 0x39a   :  { %2295 = vadd.xlane.f32.xlu1 %v2294_v54  ;;  %v6544_v54 = vpop.xlane.xlu1 %2535 }
 0x39e   :  { %v6548_v60 = vpop.xlane.xlu1 %2217 }
 0x3a2   :  { %v6555_v33 = vpop.xlane.xlu1 %2541 }
 0x3a6   :  { %v6565_v9 = vpop.xlane.xlu1 %2223 }
 0x3aa   :  { %v6582_v56 = vpop.xlane.xlu1 %2547 }
 0x3ab   :  { %3543 = vperm.xlu1 %4822, %v3015_v53   ;;  %v2639_v53 = vmul.f32 0.0051020407, %v6444_v36  ;;  %v2461_v36 = vmul.f32 %v6504_v61, %v6504_v61 }
 0x3ad   :  { %v2747_v43 = vsub.f32 %v2639_v53, %v2693_v17  ;;  %v2462_v53 = vmul.f32 %v6506_v1, %v6506_v1  ;;  %v2695_v17 = vmul.f32 %v6568_v24, %v6568_v24 }
 0x3ae   :  { %3548 = vperm.xlu0 %4821, %v6539_v45  }
 0x3af   :  { %v2801_v47 = vmax.f32 %v2747_v43, 0.0  ;;  %v2749_v61 = vsub.f32 %v2641_v23, %v2695_v17  ;;  %v2621_v1 = vadd.f32 %v2462_v53, %v2461_v36  ;;  %v2696_v23 = vmul.f32 %v6589_v52, %v6589_v52 }
 0x3b0   :  { %v2751_v53 = vsub.f32 %v2643_v40, %v2697_v34  ;;  %v6626_v34 = vmul.f32 0.0051020407, %v6469_v62 }
 0x3b1   :  { %v2909_v43 = vadd.f32 1e-05, %v2801_v47  ;;  %v2803_v6 = vmax.f32 %v2749_v61, 0.0  ;;  %v6600_v47 = vpop.xlane.xlu1 %2229  ;;  %v2750_v36 = vsub.f32 %v2642_v57, %v2696_v23  ;;  %v6605_v61 = vmul.f32 0.0051020407, %v6494_v0 }
 0x3b2   :  { %v2805_v5 = vmax.f32 %v2751_v53, 0.0  ;;  %v2699_v0 = vmul.f32 %v6608_v12, %v6608_v12  ;;  %v3070_v53 = vmul.f32 %v6539_v45, %v6496_v8 }
 0x3b3   :  { %5057 = vrsqrt.f32 %v2909_v43  ;;  %v2911_v49 = vadd.f32 1e-05, %v2803_v6  ;;  %v2804_v17 = vmax.f32 %v2750_v36, 0.0  ;;  %v2698_v6 = vmul.f32 %v6605_v61, %v6605_v61 }
 0x3b4   :  { %5059 = vrsqrt.f32 %v2910_v35  ;;  %v2913_v43 = vadd.f32 1e-05, %v2805_v5  ;;  %v2753_v57 = vsub.f32 %v2645_v27, %v2699_v0  ;;  %v6633_v35 = vld [vmem:[%s8571_s3 + $0x60] sm:$0xff]  ;;  %v2646_v36 = vmul.f32 0.0051020407, %v6522_v21 }
 0x3b5   :  { %v6613_v38 = vpop.xlane.xlu1 %2553  ;;  %5061 = vrsqrt.f32 %v2911_v49  ;;  %v2912_v30 = vadd.f32 1e-05, %v2804_v17  ;;  %v2752_v40 = vsub.f32 %v2644_v29, %v2698_v6  ;;  %8826 = vst [vmem:[#allocation109_spill] sm:$0xff] %v6633_v35  ;;  %v2701_v5 = vmul.f32 %v6626_v34, %v6626_v34 }
 0x3b6   :  { %v2807_v17 = vmax.f32 %v2753_v57, 0.0  ;;  %v2856_v57 = vld [vmem:[%s8571_s3 + $0x68] sm:$0xff] }
 0x3b7   :  { %5063 = vrsqrt.f32 %v2912_v30  ;;  %v2806_v49 = vmax.f32 %v2752_v40, 0.0 }
 0x3b8   :  { %5065 = vrsqrt.f32 %v2913_v43  ;;  %v2915_v45 = vadd.f32 1e-05, %v2807_v17  ;;  %v6654_v43 = vmul.f32 0.0051020407, %v6526_v7  ;;  %v2648_v7 = vmul.f32 0.0051020407, %v6530_v63 }
 0x3b9   :  { %v6628_v4 = vpop.xlane.xlu1 %2235 }
 0x3bd   :  { %v6649_v0 = vpop.xlane.xlu1 %2559 }
 0x3c0   :  { %v5058_v23 = vpop.eup %5057 }
 0x3c1   :  { %v6642_v29 = vmul.f32 %v5058_v23, %v6633_v35  ;;  %v5060_v8 = vpop.eup %5059  ;;  %v6662_v23 = vld [vmem:[%s8571_s3 + $0x70] sm:$0xff] }
 0x3c2   :  { %v5062_v40 = vpop.eup %5061  ;;  %8827 = vst [vmem:[#allocation110_spill] sm:$0xff] %v6662_v23  ;;  %v6672_v17 = vmul.f32 %v5060_v8, %v2856_v57  ;;  %v6685_v8 = vmul.f32 0.0051020407, %v6537_v48  ;;  %v2650_v48 = vmul.f32 0.0051020407, %v6544_v54 }
 0x3c3   :  { %v3071_v30 = vmul.f32 %v6642_v29, %v6551_v28 }
 0x3cd   :  { %2622 = vadd.xlane.f32.xlu0 %v2621_v1  ;;  %v6610_v1 = vpop.xlane.xlu0 %2256 }
 0x3cf   :  { %2619 = vadd.xlane.f32.xlu1 %v2618_v3  ;;  %v6621_v3 = vmul.f32 0.0051020407, %v6510_v42  ;;  %v2647_v42 = vmul.f32 0.0051020407, %v6471_v59  ;;  %v2914_v59 = vadd.f32 1e-05, %v2806_v49 }
 0x3d0   :  { %v6665_v49 = vmul.f32 0.0051020407, %v6478_v20  ;;  %v2702_v20 = vmul.f32 %v6654_v43, %v6654_v43 }
 0x3d1   :  { %v6623_v51 = vpop.xlane.xlu0 %2580  ;;  %v2700_v62 = vmul.f32 %v6621_v3, %v6621_v3  ;;  %v2755_v6 = vsub.f32 %v2647_v42, %v2701_v5  ;;  %5067 = vrsqrt.f32 %v2914_v59  ;;  %v2649_v42 = vmul.f32 0.0051020407, %v6483_v37  ;;  %v6679_v5 = vpop.xlane.xlu1 %2241 }
 0x3d2   :  { %5069 = vrsqrt.f32 %v2915_v45  ;;  %v2703_v59 = vmul.f32 %v6665_v49, %v6665_v49  ;;  %v2756_v37 = vsub.f32 %v2648_v7, %v2702_v20  ;;  %v2651_v7 = vmul.f32 0.0051020407, %v6492_v14 }
 0x3d3   :  { %v2754_v27 = vsub.f32 %v2646_v36, %v2700_v62  ;;  %v2809_v28 = vmax.f32 %v2755_v6, 0.0  ;;  %v6675_v62 = vmul.f32 %v5062_v40, %v6662_v23  ;;  %v5064_v6 = vpop.eup %5063  ;;  %v2704_v20 = vmul.f32 %v6685_v8, %v6685_v8 }
 0x3d4   :  { %v2757_v45 = vsub.f32 %v2649_v42, %v2703_v59  ;;  %v5066_v57 = vpop.eup %5065  ;;  %v6709_v59 = vmul.f32 %v5064_v6, %v2858_v41  ;;  %v6722_v6 = vmul.f32 0.0051020407, %v6548_v60 }
 0x3d5   :  { %v6646_v21 = vpop.xlane.xlu0 %2262  ;;  %v2808_v36 = vmax.f32 %v2754_v27, 0.0  ;;  %v2917_v63 = vadd.f32 1e-05, %v2809_v28  ;;  %v3073_v40 = vmul.f32 %v6675_v62, %v6568_v24  ;;  %v6700_v28 = vld [vmem:[%s8571_s3 + $0x80] sm:$0xff]  ;;  %v2810_v24 = vmax.f32 %v2756_v37, 0.0 }
 0x3d6   :  { %8829 = vst [vmem:[#allocation112_spill] sm:$0xff] %v6700_v28  ;;  %v2811_v42 = vmax.f32 %v2757_v45, 0.0  ;;  %8831 = vst [vmem:[#allocation114_spill] sm:$0xff] %v6722_v6 }
 0x3d7   :  { %v2916_v27 = vadd.f32 1e-05, %v2808_v36  ;;  %v6692_v36 = vmul.f32 0.0051020407, %v6488_v11  ;;  %v6705_v11 = vpop.xlane.xlu1 %2565  ;;  %v2918_v14 = vadd.f32 1e-05, %v2810_v24 }
 0x3d8   :  { %v2919_v45 = vadd.f32 1e-05, %v2811_v42  ;;  %v6732_v24 = vld [vmem:[%s8571_s3 + $0x90] sm:$0xff]  ;;  %v6735_v42 = vmul.f32 0.0051020407, %v6498_v44  ;;  %v2706_v44 = vmul.f32 %v6722_v6, %v6722_v6 }
 0x3d9   :  { %5071 = vrsqrt.f32 %v2916_v27  ;;  %v2705_v54 = vmul.f32 %v6692_v36, %v6692_v36  ;;  %v2758_v27 = vsub.f32 %v2650_v48, %v2704_v20  ;;  %v2860_v48 = vld [vmem:[%s8571_s3 + $0x88] sm:$0xff]  ;;  %8832 = vst [vmem:[#allocation115_spill] sm:$0xff] %v6732_v24  ;;  %v2652_v20 = vmul.f32 0.0051020407, %v6555_v33 }
 0x3da   :  { %5073 = vrsqrt.f32 %v2917_v63 }
 0x3db   :  { %v2759_v63 = vsub.f32 %v2651_v7, %v2705_v54  ;;  %v2812_v7 = vmax.f32 %v2758_v27, 0.0  ;;  %5075 = vrsqrt.f32 %v2918_v14  ;;  %v2653_v54 = vmul.f32 0.0051020407, %v6508_v19  ;;  %v2136_v27 = vpop.f32.mrf.mxu1 }
 0x3dc   :  { %5077 = vrsqrt.f32 %v2919_v45  ;;  %v6780_v35 = vadd.f32 %v2136_v27, %v1833_v13 }
 0x3dd   :  { %v2813_v60 = vmax.f32 %v2759_v63, 0.0  ;;  %v2760_v63 = vsub.f32 %v2652_v20, %v2706_v44  ;;  %v1835_v20 = vpop.f32.mrf.mxu0  ;;  %v2138_v44 = vpop.f32.mrf.mxu1 }
 0x3de   :  { %v5068_v37 = vpop.eup %5067  ;;  %8835 = vst [vmem:[#allocation118_spill] sm:$0xff] %v6780_v35 }
 0x3df   :  { %v5070_v41 = vpop.eup %5069  ;;  %v6742_v46 = vmul.f32 %v5068_v37, %v2860_v48  ;;  %v2921_v14 = vadd.f32 1e-05, %v2813_v60  ;;  %v2862_v37 = vld [vmem:[%s8571_s3 + $0x98] sm:$0xff]  ;;  %v6767_v60 = vmul.f32 0.0051020407, %v6565_v9 }
 0x3e0   :  { %3189 = vrot.lane.b32.xlu1 %v3070_v53, %s5179_s11  ;;  %v6670_v53 = vpop.xlane.xlu0 %2586  ;;  %v6745_v18 = vmul.f32 %v5070_v41, %v6732_v24  ;;  %v6764_v24 = vld [vmem:[%s8571_s3 + $0xa0] sm:$0xff]  ;;  %v2655_v9 = vmul.f32 0.0051020407, %v6524_v26 }
 0x3e1   :  { %8833 = vst [vmem:[#allocation116_spill] sm:$0xff] %v6764_v24  ;;  %8834 = vst [vmem:[#allocation117_spill] sm:$0xff] %v6767_v60 }
 0x3e3   :  { %3191 = vrot.lane.b32.xlu0 %v3071_v30, %s5179_s11 }
 0x3e4   :  { %v6687_v30 = vpop.permute.xlu0 %3493 }
 0x3e5   :  { %8828 = vst [vmem:[#allocation111_spill] sm:$0xff] %v6687_v30  ;;  %v6712_v30 = vmul.f32 %v5066_v57, %v6700_v28  ;;  %v6724_v57 = vpop.xlane.xlu1 %2247  ;;  %v2920_v28 = vadd.f32 1e-05, %v2812_v7  ;;  %v3077_v7 = vmul.f32 %v6745_v18, %v6608_v12  ;;  %v2814_v12 = vmax.f32 %v2760_v63, 0.0 }
 0x3e6   :  { %v5072_v33 = vpop.eup %5071 }
 0x3e7   :  { %3558 = vperm.xlu0 %4821, %v6672_v17   ;;  %v3075_v50 = vmul.f32 %v6712_v30, %v6592_v32  ;;  %v5074_v45 = vpop.eup %5073  ;;  %5079 = vrsqrt.f32 %v2920_v28  ;;  %v6782_v28 = vadd.f32 %v2138_v44, %v1835_v20  ;;  %v6801_v44 = vmul.f32 0.0051020407, %v6600_v47 }
 0x3e8   :  { %5081 = vrsqrt.f32 %v2921_v14  ;;  %v6777_v23 = vmul.f32 %v5074_v45, %v6764_v24  ;;  %v2922_v14 = vadd.f32 1e-05, %v2814_v12  ;;  %v6806_v12 = vld [vmem:[%s8571_s3 + $0xb0] sm:$0xff]  ;;  %v2657_v24 = vmul.f32 0.0051020407, %v6532_v31 }
 0x3e9   :  { %v6752_v19 = vpop.xlane.xlu1 %2571  ;;  %8836 = vst [vmem:[#allocation119_spill] sm:$0xff] %v6782_v28  ;;  %v2300_v45 = vadd.f32 %v6782_v28, %v6780_v35  ;;  %8837 = vst [vmem:[#allocation120_spill] sm:$0xff] %v6801_v44 }
 0x3ea   :  { %v3079_v27 = vmul.f32 %v6777_v23, %v6626_v34  ;;  %8838 = vst [vmem:[#allocation121_spill] sm:$0xff] %v6806_v12  ;;  %5083 = vrsqrt.f32 %v2922_v14 }
 0x3eb   :  { %3195 = vrot.lane.b32.xlu0 %v3073_v40, %s5179_s11  ;;  %v6716_v40 = vpop.permute.xlu0 %3167 }
 0x3ec   :  { %8830 = vst [vmem:[#allocation113_spill] sm:$0xff] %v6716_v40  ;;  %v6770_v40 = vmul.f32 0.0051020407, %v6518_v16  ;;  %v2708_v16 = vmul.f32 %v6767_v60, %v6767_v60 }
 0x3ef   :  { %3568 = vperm.xlu0 %4821, %v6709_v59   ;;  %v6737_v32 = vpop.xlane.xlu0 %2268 }
 0x3f3   :  { %3199 = vrot.lane.b32.xlu0 %v3075_v50, %s5179_s11  ;;  %v2707_v50 = vmul.f32 %v6735_v42, %v6735_v42  ;;  %v6757_v48 = vpop.xlane.xlu0 %2592 }
 0x3f5   :  { %v2761_v41 = vsub.f32 %v2653_v54, %v2707_v50  ;;  %v6773_v54 = vmul.f32 %v5072_v33, %v2862_v37  ;;  %v2654_v50 = vmul.f32 0.0051020407, %v6582_v56  ;;  %v2709_v56 = vmul.f32 %v6770_v40, %v6770_v40  ;;  %v5076_v37 = vpop.eup %5075 }
 0x3f6   :  { %v5078_v20 = vpop.eup %5077 }
 0x3f7   :  { %3578 = vperm.xlu0 %4821, %v6742_v46   ;;  %v2815_v6 = vmax.f32 %v2761_v41, 0.0  ;;  %v6788_v33 = vpop.xlane.xlu0 %2274  ;;  %v2762_v63 = vsub.f32 %v2654_v50, %v2708_v16  ;;  %v2763_v13 = vsub.f32 %v2655_v9, %v2709_v56  ;;  %v2864_v41 = vld [vmem:[%s8571_s3 + $0xa8] sm:$0xff]  ;;  %v2656_v50 = vmul.f32 0.0051020407, %v6613_v38  ;;  %v5080_v38 = vpop.eup %5079 }
 0x3f8   :  { %v6817_v47 = vmul.f32 %v5076_v37, %v2864_v41 }
 0x3f9   :  { %v2923_v26 = vadd.f32 1e-05, %v2815_v6  ;;  %v6809_v6 = vmul.f32 0.0051020407, %v6528_v58  ;;  %v2816_v34 = vmax.f32 %v2762_v63, 0.0  ;;  %v2817_v56 = vmax.f32 %v2763_v13, 0.0 }
 0x3fa   :  { %v6821_v58 = vmul.f32 %v5078_v20, %v6806_v12  ;;  %v2867_v12 = vld [vmem:[%s8571_s3 + $0xc0] sm:$0xff] }
 0x3fb   :  { %3203 = vrot.lane.b32.xlu0 %v3077_v7, %s5179_s11  ;;  %v6786_v7 = vpop.xlane.xlu1 %2253  ;;  %v6815_v16 = vpop.permute.xlu0 %3508  ;;  %5085 = vrsqrt.f32 %v2923_v26  ;;  %v2711_v14 = vmul.f32 %v6809_v6, %v6809_v6  ;;  %v2924_v63 = vadd.f32 1e-05, %v2816_v34  ;;  %v2925_v13 = vadd.f32 1e-05, %v2817_v56 }
 0x3fc   :  { %8839 = vst [vmem:[#allocation122_spill] sm:$0xff] %v6815_v16  ;;  %v5082_v26 = vpop.eup %5081  ;;  %v3081_v31 = vmul.f32 %v6821_v58, %v6665_v49  ;;  %v2866_v16 = vld [vmem:[%s8571_s3 + $0xb8] sm:$0xff] }
 0x3fd   :  { %v2765_v41 = vsub.f32 %v2657_v24, %v2711_v14  ;;  %5087 = vrsqrt.f32 %v2924_v63  ;;  %v6841_v24 = vmul.f32 %v5080_v38, %v2866_v16  ;;  %v6843_v56 = vmul.f32 %v5082_v26, %v2867_v12  ;;  %v5084_v63 = vpop.eup %5083 }
 0x3fe   :  { %5089 = vrsqrt.f32 %v2925_v13  ;;  %v2658_v16 = vmul.f32 0.0051020407, %v6649_v0  ;;  %v2659_v26 = vmul.f32 0.0051020407, %v6546_v39  ;;  %v2868_v13 = vld [vmem:[%s8571_s3 + $0xc8] sm:$0xff] }
 0x3ff   :  { %3588 = vperm.xlu0 %4821, %v6773_v54   ;;  %v6813_v9 = vpop.xlane.xlu1 %2577  ;;  %v6828_v37 = vpop.xlane.xlu0 %2598  ;;  %8840 = vst [vmem:[#allocation123_spill] sm:$0xff] %v6843_v56  ;;  %v3083_v12 = vmul.f32 %v6843_v56, %v6692_v36  ;;  %v6874_v36 = vmul.f32 %v5084_v63, %v2868_v13 }
 0x403   :  { %3207 = vrot.lane.b32.xlu0 %v3079_v27, %s5179_s11  ;;  %v2710_v27 = vmul.f32 %v6801_v44, %v6801_v44  ;;  %v6832_v20 = vpop.xlane.xlu1 %2259  ;;  %v6845_v49 = vpop.permute.xlu0 %3175  ;;  %v6852_v44 = vmul.f32 0.0051020407, %v6542_v55  ;;  %v2869_v55 = vld [vmem:[%s8571_s3 + $0xd0] sm:$0xff] }
 0x404   :  { %2301 = vadd.xlane.f32.xlu1 %v2300_v45 }
 0x405   :  { %v2764_v45 = vsub.f32 %v2656_v50, %v2710_v27  ;;  %v2819_v50 = vmax.f32 %v2765_v41, 0.0  ;;  %v6848_v27 = vmul.f32 0.0051020407, %v6628_v4  ;;  %v2713_v0 = vmul.f32 %v6852_v44, %v6852_v44 }
 0x407   :  { %3598 = vperm.xlu0 %4821, %v6817_v47   ;;  %v2818_v34 = vmax.f32 %v2764_v45, 0.0  ;;  %8841 = vst [vmem:[#allocation124_spill] sm:$0xff] %v6848_v27  ;;  %v2927_v45 = vadd.f32 1e-05, %v2819_v50  ;;  %v6860_v4 = vpop.xlane.xlu0 %2280  ;;  %v2712_v41 = vmul.f32 %v6848_v27, %v6848_v27  ;;  %v2767_v50 = vsub.f32 %v2659_v26, %v2713_v0 }
 0x408   :  { %v5086_v38 = vpop.eup %5085  ;;  %v6882_v27 = vmul.f32 0.0051020407, %v6679_v5  ;;  %v2871_v5 = vld [vmem:[%s8571_s3 + $0xe0] sm:$0xff] }
 0x409   :  { %v2926_v14 = vadd.f32 1e-05, %v2818_v34  ;;  %v2766_v39 = vsub.f32 %v2658_v16, %v2712_v41  ;;  %v6876_v34 = vmul.f32 %v5086_v38, %v2869_v55  ;;  %v2821_v63 = vmax.f32 %v2767_v50, 0.0  ;;  %v2870_v38 = vld [vmem:[%s8571_s3 + $0xd8] sm:$0xff] }
 0x40a   :  { %8842 = vst [vmem:[#allocation125_spill] sm:$0xff] %v6882_v27  ;;  %v2660_v16 = vmul.f32 0.0051020407, %v6705_v11  ;;  %v2714_v26 = vmul.f32 %v6882_v27, %v6882_v27  ;;  %v6903_v11 = vmul.f32 0.0051020407, %v6553_v22 }
 0x40b   :  { %3211 = vrot.lane.b32.xlu0 %v3081_v31, %s5179_s11  ;;  %v6854_v31 = vpop.xlane.xlu1 %2583  ;;  %5091 = vrsqrt.f32 %v2926_v14  ;;  %v6884_v14 = vpop.permute.xlu0 %3518  ;;  %v2820_v56 = vmax.f32 %v2766_v39, 0.0  ;;  %v2929_v39 = vadd.f32 1e-05, %v2821_v63  ;;  %v2873_v63 = vld [vmem:[%s8571_s3 + $0xf0] sm:$0xff] }
 0x40c   :  { %5093 = vrsqrt.f32 %v2927_v45  ;;  %8843 = vst [vmem:[#allocation126_spill] sm:$0xff] %v6884_v14  ;;  %v2768_v50 = vsub.f32 %v2660_v16, %v2714_v26  ;;  %v2661_v14 = vmul.f32 0.0051020407, %v6560_v25  ;;  %v2715_v27 = vmul.f32 %v6903_v11, %v6903_v11  ;;  %v2872_v25 = vld [vmem:[%s8571_s3 + $0xe8] sm:$0xff] }
 0x40d   :  { %v2928_v55 = vadd.f32 1e-05, %v2820_v56 }
 0x40e   :  { %v2769_v16 = vsub.f32 %v2661_v14, %v2715_v27  ;;  %v6942_v14 = vmul.f32 0.0051020407, %v6580_v15 }
 0x40f   :  { %3608 = vperm.xlu0 %4821, %v6841_v24   ;;  %v6878_v60 = vpop.xlane.xlu1 %2265  ;;  %5095 = vrsqrt.f32 %v2928_v55 }
 0x410   :  { %5097 = vrsqrt.f32 %v2929_v39 }
 0x413   :  { %3215 = vrot.lane.b32.xlu0 %v3083_v12, %s5179_s11  ;;  %v5088_v12 = vpop.eup %5087  ;;  %v6898_v13 = vpop.xlane.xlu1 %2589 }
 0x414   :  { %v5090_v45 = vpop.eup %5089  ;;  %v6905_v41 = vmul.f32 %v5088_v12, %v2870_v38  ;;  %v2822_v12 = vmax.f32 %v2768_v50, 0.0  ;;  %v2823_v50 = vmax.f32 %v2769_v16, 0.0 }
 0x415   :  { %3553 = vperm.xlu1 %4822, %v6642_v29   ;;  %v3085_v29 = vmul.f32 %v6876_v34, %v6735_v42  ;;  %v6900_v42 = vpop.xlane.xlu0 %2604  ;;  %v6907_v0 = vmul.f32 %v5090_v45, %v2871_v5 }
 0x416   :  { %v2930_v55 = vadd.f32 1e-05, %v2822_v12 }
 0x417   :  { %3618 = vperm.xlu0 %4821, %v6874_v36   ;;  %8844 = vst [vmem:[#allocation127_spill] sm:$0xff] %v6907_v0  ;;  %v3087_v56 = vmul.f32 %v6907_v0, %v6770_v40  ;;  %v6915_v38 = vpop.permute.xlu1 %3498  ;;  %v6927_v40 = vmul.f32 0.0051020407, %v6724_v57 }
 0x418   :  { %8845 = vst [vmem:[#allocation128_spill] sm:$0xff] %v6915_v38  ;;  %v2662_v38 = vmul.f32 0.0051020407, %v6752_v19  ;;  %5099 = vrsqrt.f32 %v2930_v55 }
 0x419   :  { %v6917_v45 = vpop.permute.xlu0 %3179  ;;  %8846 = vst [vmem:[#allocation129_spill] sm:$0xff] %v6927_v40  ;;  %v2716_v27 = vmul.f32 %v6927_v40, %v6927_v40 }
 0x41b   :  { %3219 = vrot.lane.b32.xlu0 %v3085_v29, %s5179_s11  ;;  %v5092_v29 = vpop.eup %5091  ;;  %v3170_v0 = vpop.permute.xlu1 %3169 }
 0x41c   :  { %v5094_v22 = vpop.eup %5093  ;;  %v6929_v5 = vmul.f32 %v5092_v29, %v2872_v25  ;;  %v2931_v29 = vadd.f32 1e-05, %v2823_v50  ;;  %v8699_v25 = vmov 1   ;;  %v6962_v50 = vld [vmem:[%s8571_s3 + $0x100] sm:$0xff] }
 0x41d   :  { %v6931_v26 = vmul.f32 %v5094_v22, %v2873_v63  ;;  %v6933_v39 = vpop.xlane.xlu0 %2286  ;;  %v2663_v22 = vmul.f32 0.0051020407, %v6596_v2  ;;  %v5096_v15 = vpop.eup %5095  ;;  %v2874_v2 = vld [vmem:[%s8571_s3 + $0xf8] sm:$0xff]  ;;  %8848 = vst [vmem:[#allocation131_spill] sm:$0xff] %v6962_v50 }
 0x41e   :  { %v5098_v16 = vpop.eup %5097  ;;  %5101 = vrsqrt.f32 %v2931_v29  ;;  %v2463_v29 = vmul.f32 %v6780_v35, %v6780_v35 }
 0x41f   :  { %3628 = vperm.xlu0 %4821, %v6905_v41   ;;  %v3089_v57 = vmul.f32 %v6931_v26, %v6809_v6  ;;  %v6946_v19 = vpop.xlane.xlu1 %2271  ;;  %v5141_v6 = vld [vmem:[%s8571_s3 + $0x8] sm:$0xff] }
 0x420   :  { %v3330_v63 = vsub.f32 %v5141_v6, %v3170_v0  ;;  %v6967_v0 = vmul.f32 0.0051020407, %v6786_v7  ;;  %v2664_v7 = vmul.f32 0.0051020407, %v6813_v9  ;;  %v2876_v9 = vld [vmem:[%s8571_s3 + $0x108] sm:$0xff] }
 0x421   :  { %v6948_v12 = vpop.permute.xlu0 %3528 }
 0x422   :  { %8847 = vst [vmem:[#allocation130_spill] sm:$0xff] %v6948_v12  ;;  %8849 = vst [vmem:[#allocation132_spill] sm:$0xff] %v6967_v0 }
 0x423   :  { %3223 = vrot.lane.b32.xlu0 %v3087_v56, %s5179_s11  ;;  %v2770_v56 = vsub.f32 %v2662_v38, %v2716_v27  ;;  %v2717_v38 = vmul.f32 %v6942_v14, %v6942_v14  ;;  %v6969_v6 = vpop.permute.xlu1 %3503 }
 0x424   :  { %8850 = vst [vmem:[#allocation133_spill] sm:$0xff] %v6969_v6  ;;  %v2718_v6 = vmul.f32 %v6967_v0, %v6967_v0 }
 0x425   :  { %v2824_v55 = vmax.f32 %v2770_v56, 0.0  ;;  %v2771_v27 = vsub.f32 %v2663_v22, %v2717_v38  ;;  %v2464_v56 = vmul.f32 %v6782_v28, %v6782_v28  ;;  %v8851_v22 = vmov 0  }
 0x426   :  { %v2772_v28 = vsub.f32 %v2664_v7, %v2718_v6  ;;  %v7011_v6 = vld [vmem:[%s8571_s3 + $0x110] sm:$0xff]  ;;  %v5142_v7 = vld [vmem:[%s8571_s3 + $0x20] sm:$0xff] }
 0x427   :  { %3638 = vperm.xlu0 %4821, %v6929_v5   ;;  %v2932_v12 = vadd.f32 1e-05, %v2824_v55  ;;  %v2825_v38 = vmax.f32 %v2771_v27, 0.0  ;;  %v6985_v35 = vpop.xlane.xlu1 %2595  ;;  %v6992_v55 = vmul.f32 0.0051020407, %v6610_v1  ;;  %8852 = vst [vmem:[#allocation134_spill] sm:$0xff] %v7011_v6 }
 0x429   :  { %5103 = vrsqrt.f32 %v2932_v12  ;;  %v2933_v27 = vadd.f32 1e-05, %v2825_v38  ;;  %v2719_v12 = vmul.f32 %v6992_v55, %v6992_v55  ;;  %v7014_v38 = vmul.f32 0.0051020407, %v6832_v20 }
 0x42b   :  { %3227 = vrot.lane.b32.xlu0 %v3089_v57, %s5179_s11  ;;  %v6964_v57 = vpop.xlane.xlu0 %2610  ;;  %5105 = vrsqrt.f32 %v2933_v27  ;;  %8853 = vst [vmem:[#allocation135_spill] sm:$0xff] %v7014_v38 }
 0x42c   :  { %4825 = vset.pattern.permute.xlu0 %v8699_v25  ;;  %v6978_v25 = vmul.f32 %v5098_v16, %v6962_v50  ;;  %v2624_v16 = vadd.f32 %v2464_v56, %v2463_v29  ;;  %v2665_v50 = vmul.f32 0.0051020407, %v6623_v51  ;;  %v2826_v29 = vmax.f32 %v2772_v28, 0.0  ;;  %v7005_v56 = vpop.permute.xlu1 %3171 }
 0x42e   :  { %v2773_v51 = vsub.f32 %v2665_v50, %v2719_v12  ;;  %v2666_v50 = vmul.f32 0.0051020407, %v6854_v31  ;;  %v2720_v12 = vmul.f32 %v7014_v38, %v7014_v38  ;;  %v2878_v31 = vld [vmem:[%s8571_s3 + $0x118] sm:$0xff] }
 0x42f   :  { %3984 = vperm.xlu0 %4825, %v3330_v63   ;;  %v6975_v63 = vmul.f32 %v5096_v15, %v2874_v2  ;;  %v6987_v40 = vpop.permute.xlu0 %3183  ;;  %v3091_v15 = vmul.f32 %v6978_v25, %v6852_v44  ;;  %v5100_v2 = vpop.eup %5099 }
 0x430   :  { %v7001_v44 = vmul.f32 %v5100_v2, %v2876_v9  ;;  %v5102_v1 = vpop.eup %5101  ;;  %v8855_v9 = vmov 1   ;;  %v2827_v27 = vmax.f32 %v2773_v51, 0.0  ;;  %v7027_v20 = vpop.permute.xlu1 %3173 }
 0x431   :  { %v7021_v28 = vmul.f32 %v5102_v1, %v7011_v6  ;;  %v7034_v1 = vmul.f32 0.0051020407, %v6646_v21  ;;  %v3072_v21 = vmul.f32 %v6672_v17, %v6563_v10  ;;  %v7062_v10 = vmul.f32 0.0051020407, %v6878_v60 }
 0x432   :  { %v2935_v51 = vadd.f32 1e-05, %v2827_v27  ;;  %v2668_v60 = vmul.f32 0.0051020407, %v6898_v13  ;;  %v2880_v13 = vld [vmem:[%s8571_s3 + $0x128] sm:$0xff] }
 0x433   :  { %4826 = vset.pattern.permute.xlu0 %v8851_v22  ;;  %v6999_v0 = vpop.xlane.xlu0 %2292 }
 0x434   :  { %3648 = vperm.xlu0 %4826, %v6975_v63   ;;  %v7043_v6 = vpop.xlane.xlu1 %2277 }
 0x437   :  { %v7023_v2 = vpop.permute.xlu0 %3538 }
 0x438   :  { %3231 = vrot.lane.b32.xlu0 %v3091_v15, %s5179_s11  ;;  %v3333_v15 = vsub.f32 %v5142_v7, %v6845_v49  ;;  %8854 = vst [vmem:[#allocation136_spill] sm:$0xff] %v7023_v2  ;;  %v3093_v49 = vmul.f32 %v7021_v28, %v6903_v11  ;;  %v5104_v7 = vpop.eup %5103  ;;  %v2667_v2 = vmul.f32 0.0051020407, %v6670_v53  ;;  %v7057_v53 = vld [vmem:[%s8571_s3 + $0x120] sm:$0xff]  ;;  %v7064_v17 = vpop.permute.xlu1 %3513 }
 0x439   :  { %2625 = vadd.xlane.f32.xlu1 %v2624_v16  ;;  %v2934_v16 = vadd.f32 1e-05, %v2826_v29  ;;  %v7046_v11 = vmul.f32 %v5104_v7, %v2878_v31  ;;  %v5106_v38 = vpop.eup %5105 }
 0x43a   :  { %v7071_v31 = vmul.f32 %v5106_v38, %v7057_v53 }
 0x43b   :  { %5107 = vrsqrt.f32 %v2934_v16  ;;  %v7036_v29 = vpop.xlane.xlu0 %2616  ;;  %v2721_v16 = vmul.f32 %v7034_v1, %v7034_v1 }
 0x43c   :  { %3658 = vperm.xlu0 %4826, %v7001_v44   ;;  %5109 = vrsqrt.f32 %v2935_v51  ;;  %v3095_v38 = vmul.f32 %v7071_v31, %v6942_v14 }
 0x440   :  { %4830 = vset.pattern.permute.xlu0 %v8855_v9 }
 0x441   :  { %3999 = vperm.xlu0 %4830, %v3333_v15   ;;  %v2774_v15 = vsub.f32 %v2666_v50, %v2720_v12  ;;  %v2775_v50 = vsub.f32 %v2667_v2, %v2721_v16  ;;  %v7059_v12 = vpop.permute.xlu0 %3187  ;;  %v7082_v16 = vpop.xlane.xlu1 %2601 }
 0x443   :  { %v2828_v27 = vmax.f32 %v2774_v15, 0.0  ;;  %v2829_v2 = vmax.f32 %v2775_v50, 0.0  ;;  %v2669_v50 = vmul.f32 0.0051020407, %v6757_v48  ;;  %v7109_v48 = vld [vmem:[%s8571_s3 + $0x130] sm:$0xff] }
 0x445   :  { %3235 = vrot.lane.b32.xlu0 %v3093_v49, %s5179_s11  ;;  %v5143_v49 = vld [vmem:[%s8571_s3 + $0x30] sm:$0xff]  ;;  %v2936_v51 = vadd.f32 1e-05, %v2828_v27  ;;  %v7076_v15 = vpop.xlane.xlu0 %2298 }
 0x446   :  { %4833 = vset.pattern.permute.xlu0 %v8851_v22  ;;  %v3335_v7 = vsub.f32 %v5143_v49, %v6917_v45  ;;  %v2722_v45 = vmul.f32 %v7062_v10, %v7062_v10 }
 0x447   :  { %5111 = vrsqrt.f32 %v2936_v51 }
 0x448   :  { %v5108_v27 = vpop.eup %5107 }
 0x449   :  { %3668 = vperm.xlu0 %4833, %v7046_v11   ;;  %v7096_v14 = vpop.permute.xlu0 %3548  ;;  %v7098_v49 = vmul.f32 %v5108_v27, %v2880_v13 }
 0x44a   :  { %3193 = vrot.lane.b32.xlu1 %v3072_v21, %s5179_s11  ;;  %v3074_v21 = vmul.f32 %v6709_v59, %v6589_v52  ;;  %v2937_v52 = vadd.f32 1e-05, %v2829_v2  ;;  %v2776_v59 = vsub.f32 %v2668_v60, %v2722_v45  ;;  %8856 = vst [vmem:[#allocation137_spill] sm:$0xff] %v7096_v14  ;;  %v7103_v2 = vpop.permute.xlu1 %3177 }
 0x44c   :  { %5113 = vrsqrt.f32 %v2937_v52  ;;  %v2830_v51 = vmax.f32 %v2776_v59, 0.0 }
 0x44d   :  { %4834 = vset.pattern.permute.xlu0 %v8855_v9 }
 0x44e   :  { %3563 = vperm.xlu1 %4822, %v6675_v62   ;;  %4009 = vperm.xlu0 %4834, %v3335_v7   ;;  %v7087_v62 = vmul.f32 0.0051020407, %v6737_v32  ;;  %v5110_v7 = vpop.eup %5109  ;;  %v2938_v52 = vadd.f32 1e-05, %v2830_v51  ;;  %v7126_v59 = vpop.xlane.xlu1 %2283 }
 0x44f   :  { %v7124_v13 = vmul.f32 %v5110_v7, %v7109_v48 }
 0x450   :  { %v2723_v32 = vmul.f32 %v7087_v62, %v7087_v62  ;;  %5115 = vrsqrt.f32 %v2938_v52 }
 0x452   :  { %3197 = vrot.lane.b32.xlu1 %v3074_v21, %s5179_s11  ;;  %3239 = vrot.lane.b32.xlu0 %v3095_v38, %s5179_s11  ;;  %v2777_v60 = vsub.f32 %v2669_v50, %v2723_v32  ;;  %v3076_v21 = vmul.f32 %v6742_v46, %v6605_v61  ;;  %v5144_v38 = vld [vmem:[%s8571_s3 + $0x40] sm:$0xff]  ;;  %v2670_v61 = vmul.f32 0.0051020407, %v6985_v35  ;;  %v3097_v50 = vmul.f32 %v7124_v13, %v6992_v55  ;;  %v2882_v35 = vld [vmem:[%s8571_s3 + $0x138] sm:$0xff] }
 0x453   :  { %4837 = vset.pattern.permute.xlu0 %v8851_v22  ;;  %v3337_v27 = vsub.f32 %v5144_v38, %v6987_v40  ;;  %v2671_v55 = vmul.f32 0.0051020407, %v6828_v37 }
 0x454   :  { %v2831_v46 = vmax.f32 %v2777_v60, 0.0  ;;  %v5112_v32 = vpop.eup %5111 }
 0x455   :  { %v7153_v38 = vmul.f32 %v5112_v32, %v2882_v35 }
 0x456   :  { %3573 = vperm.xlu1 %4822, %v6712_v30   ;;  %3678 = vperm.xlu0 %4837, %v7098_v49   ;;  %v7113_v45 = vpop.xlane.xlu0 %2622  ;;  %v7116_v30 = vmul.f32 0.0051020407, %v6946_v19  ;;  %v7131_v19 = vmul.f32 0.0051020407, %v6788_v33  ;;  %v2939_v51 = vadd.f32 1e-05, %v2831_v46  ;;  %v3078_v33 = vmul.f32 %v6773_v54, %v6621_v3 }
 0x457   :  { %v7161_v3 = vld [vmem:[%s8571_s3 + $0x140] sm:$0xff] }
 0x458   :  { %v2724_v40 = vmul.f32 %v7116_v30, %v7116_v30  ;;  %5117 = vrsqrt.f32 %v2939_v51 }
 0x459   :  { %v5114_v52 = vpop.eup %5113 }
 0x45a   :  { %3201 = vrot.lane.b32.xlu1 %v3076_v21, %s5179_s11  ;;  %4838 = vset.pattern.permute.xlu0 %v8855_v9  ;;  %v7138_v7 = vpop.permute.xlu0 %3191  ;;  %v2778_v60 = vsub.f32 %v2670_v61, %v2724_v40  ;;  %v7149_v21 = vpop.permute.xlu1 %3523  ;;  %v7165_v61 = vmul.f32 0.0051020407, %v7043_v6  ;;  %v5145_v40 = vld [vmem:[%s8571_s3 + $0x50] sm:$0xff]  ;;  %v7174_v35 = vmul.f32 %v5114_v52, %v7161_v3  ;;  %v2672_v6 = vmul.f32 0.0051020407, %v7082_v16 }
 0x45b   :  { %4019 = vperm.xlu0 %4838, %v3337_v27  }
 0x45c   :  { %v2832_v46 = vmax.f32 %v2778_v60, 0.0  ;;  %v3099_v52 = vmul.f32 %v7174_v35, %v7034_v1 }
 0x45e   :  { %3583 = vperm.xlu1 %4822, %v6745_v18   ;;  %v2725_v18 = vmul.f32 %v7131_v19, %v7131_v19  ;;  %v2608_v37 = vpop.xlane.xlu1 %2607  ;;  %v2940_v51 = vadd.f32 1e-05, %v2832_v46 }
 0x45f   :  { %3243 = vrot.lane.b32.xlu0 %v3097_v50, %s5179_s11  ;;  %v3339_v50 = vsub.f32 %v5145_v40, %v7059_v12  ;;  %v2726_v12 = vmul.f32 %v7165_v61, %v7165_v61 }
 0x460   :  { %4841 = vset.pattern.permute.xlu0 %v8851_v22  ;;  %v2779_v54 = vsub.f32 %v2671_v55, %v2725_v18  ;;  %5119 = vrsqrt.f32 %v2940_v51  ;;  %v3082_v51 = vmul.f32 %v6841_v24, %v6685_v8  ;;  %v8860_v8 = vld [vmem:[#allocation109_spill] sm:$0xff] }
 0x461   :  { %v2780_v16 = vsub.f32 %v2672_v6, %v2726_v12  ;;  %v7217_v12 = vmul.f32 0.0051020407, %v7126_v59  ;;  %v3341_v24 = vsub.f32 %v8860_v8, %v7138_v7 }
 0x462   :  { %3205 = vrot.lane.b32.xlu1 %v3078_v33, %s5179_s11  ;;  %v7155_v27 = vpop.permute.xlu0 %3558  ;;  %v2833_v60 = vmax.f32 %v2779_v54, 0.0  ;;  %v7181_v33 = vmul.f32 0.0051020407, %v6860_v4  ;;  %v7186_v18 = vpop.permute.xlu1 %3181  ;;  %v2673_v54 = vmul.f32 0.0051020407, %v6900_v42  ;;  %v7211_v42 = vld [vmem:[%s8571_s3 + $0x150] sm:$0xff] }
 0x463   :  { %8857 = vst [vmem:[#allocation138_spill] sm:$0xff] %v7155_v27  ;;  %3688 = vperm.xlu0 %4841, %v7153_v38   ;;  %v2728_v7 = vmul.f32 %v7217_v12, %v7217_v12 }
 0x464   :  { %v2941_v4 = vadd.f32 1e-05, %v2833_v60  ;;  %v2727_v46 = vmul.f32 %v7181_v33, %v7181_v33  ;;  %v2834_v60 = vmax.f32 %v2780_v16, 0.0  ;;  %v2674_v16 = vmul.f32 0.0051020407, %v2608_v37 }
 0x466   :  { %3593 = vperm.xlu1 %4822, %v6777_v23   ;;  %v7171_v32 = vpop.permute.xlu0 %3195  ;;  %v3080_v23 = vmul.f32 %v6817_v47, %v6654_v43  ;;  %v5116_v43 = vpop.eup %5115  ;;  %v2884_v47 = vld [vmem:[%s8571_s3 + $0x148] sm:$0xff]  ;;  %5121 = vrsqrt.f32 %v2941_v4 }
 0x467   :  { %4842 = vset.pattern.permute.xlu0 %v8855_v9  ;;  %v2290_v1 = vpop.xlane.xlu1 %2289 }
 0x468   :  { %4029 = vperm.xlu0 %4842, %v3339_v50   ;;  %v7203_v50 = vmul.f32 %v5116_v43, %v2884_v47  ;;  %v2942_v43 = vadd.f32 1e-05, %v2834_v60 }
 0x46a   :  { %3209 = vrot.lane.b32.xlu1 %v3080_v23, %s5179_s11  ;;  %v7188_v55 = vpop.permute.xlu0 %3568  ;;  %v5118_v23 = vpop.eup %5117  ;;  %5123 = vrsqrt.f32 %v2942_v43 }
 0x46b   :  { %8858 = vst [vmem:[#allocation139_spill] sm:$0xff] %v7188_v55  ;;  %v7224_v47 = vpop.permute.xlu1 %3533 }
 0x46c   :  { %3247 = vrot.lane.b32.xlu0 %v3099_v52, %s5179_s11  ;;  %v7222_v52 = vmul.f32 %v5118_v23, %v7211_v42  ;;  %v8862_v23 = vld [vmem:[#allocation114_spill] sm:$0xff] }
 0x46d   :  { %4845 = vset.pattern.permute.xlu0 %v8851_v22  ;;  %v3084_v60 = vmul.f32 %v6874_v36, %v8862_v23  ;;  %v5120_v8 = vpop.eup %5119 }
 0x46e   :  { %3603 = vperm.xlu1 %4822, %v6821_v58   ;;  %v7201_v40 = vpop.permute.xlu0 %3199  ;;  %v2781_v58 = vsub.f32 %v2673_v54, %v2727_v46  ;;  %v8861_v46 = vld [vmem:[#allocation123_spill] sm:$0xff]  ;;  %v7229_v54 = vmul.f32 0.0051020407, %v6933_v39 }
 0x46f   :  { %v2614_v37 = vpop.xlane.xlu1 %2613 }
 0x470   :  { %3698 = vperm.xlu0 %4845, %v7203_v50   ;;  %v2835_v4 = vmax.f32 %v2781_v58, 0.0  ;;  %v2886_v58 = vld [vmem:[%s8571_s3 + $0x158] sm:$0xff] }
 0x471   :  { %v7250_v36 = vmul.f32 %v5120_v8, %v2886_v58  ;;  %v7265_v8 = vmul.f32 0.0051020407, %v2290_v1  ;;  %v8866_v58 = vld [vmem:[#allocation110_spill] sm:$0xff] }
 0x472   :  { %3213 = vrot.lane.b32.xlu1 %v3082_v51, %s5179_s11  ;;  %v7214_v6 = vpop.permute.xlu0 %3578  ;;  %v3101_v51 = vmul.f32 %v7222_v52, %v7087_v62  ;;  %v2943_v39 = vadd.f32 1e-05, %v2835_v4  ;;  %v2675_v62 = vmul.f32 0.0051020407, %v6964_v57  ;;  %v7257_v4 = vld [vmem:[%s8571_s3 + $0x160] sm:$0xff] }
 0x473   :  { %8859 = vst [vmem:[#allocation140_spill] sm:$0xff] %v7214_v6  ;;  %v5122_v43 = vpop.eup %5121  ;;  %v7259_v57 = vpop.permute.xlu1 %3185  ;;  %8865 = vst [vmem:[#allocation123_spill] sm:$0xff] %v7265_v8 }
 0x474   :  { %4846 = vset.pattern.permute.xlu0 %v8855_v9  ;;  %5125 = vrsqrt.f32 %v2943_v39  ;;  %v3343_v39 = vsub.f32 %v8866_v58, %v7171_v32  ;;  %v2730_v32 = vmul.f32 %v7265_v8, %v7265_v8  ;;  %v2677_v58 = vmul.f32 0.0051020407, %v7036_v29  ;;  %v7308_v29 = vld [vmem:[%s8571_s3 + $0x170] sm:$0xff] }
 0x475   :  { %4039 = vperm.xlu0 %4846, %v3341_v24   ;;  %v2782_v24 = vsub.f32 %v2674_v16, %v2728_v7 }
 0x476   :  { %3613 = vperm.xlu1 %4822, %v8861_v46   ;;  %v7231_v59 = vpop.permute.xlu0 %3203  ;;  %v2729_v46 = vmul.f32 %v7229_v54, %v7229_v54 }
 0x477   :  { %v2836_v23 = vmax.f32 %v2782_v24, 0.0 }
 0x478   :  { %v2783_v16 = vsub.f32 %v2675_v62, %v2729_v46  ;;  %v2676_v62 = vmul.f32 0.0051020407, %v2614_v37  ;;  %v2888_v37 = vld [vmem:[%s8571_s3 + $0x168] sm:$0xff] }
 0x479   :  { %3251 = vrot.lane.b32.xlu0 %v3101_v51, %s5179_s11  ;;  %v8864_v51 = vld [vmem:[#allocation117_spill] sm:$0xff]  ;;  %v2944_v24 = vadd.f32 1e-05, %v2836_v23  ;;  %v8868_v23 = vld [vmem:[#allocation127_spill] sm:$0xff] }
 0x47a   :  { %3217 = vrot.lane.b32.xlu1 %v3084_v60, %s5179_s11  ;;  %v7247_v6 = vpop.permute.xlu0 %3588  ;;  %4849 = vset.pattern.permute.xlu0 %v8851_v22  ;;  %v3086_v60 = vmul.f32 %v6905_v41, %v8864_v51  ;;  %v2837_v46 = vmax.f32 %v2783_v16, 0.0  ;;  %v7277_v41 = vmul.f32 0.0051020407, %v6999_v0  ;;  %v2784_v51 = vsub.f32 %v2676_v62, %v2730_v32 }
 0x47b   :  { %8863 = vst [vmem:[#allocation109_spill] sm:$0xff] %v7247_v6  ;;  %v2296_v6 = vpop.xlane.xlu1 %2295  ;;  %5127 = vrsqrt.f32 %v2944_v24 }
 0x47c   :  { %v2945_v16 = vadd.f32 1e-05, %v2837_v46  ;;  %v2838_v62 = vmax.f32 %v2784_v51, 0.0  ;;  %v7314_v51 = vmul.f32 0.0051020407, %v2296_v6 }
 0x47d   :  { %3708 = vperm.xlu0 %4849, %v7250_v36  }
 0x47e   :  { %3623 = vperm.xlu1 %4822, %v6876_v34   ;;  %v7261_v7 = vpop.permute.xlu0 %3207  ;;  %v7270_v34 = vmul.f32 %v5122_v43, %v7257_v4  ;;  %v5124_v43 = vpop.eup %5123  ;;  %5129 = vrsqrt.f32 %v2945_v16  ;;  %v2732_v6 = vmul.f32 %v7314_v51, %v7314_v51 }
 0x47f   :  { %v7296_v24 = vpop.permute.xlu1 %3543 }
 0x480   :  { %v3103_v1 = vmul.f32 %v7270_v34, %v7131_v19  ;;  %v8869_v19 = vld [vmem:[#allocation120_spill] sm:$0xff] }
 0x481   :  { %4850 = vset.pattern.permute.xlu0 %v8855_v9  ;;  %v5126_v46 = vpop.eup %5125 }
 0x482   :  { %3221 = vrot.lane.b32.xlu1 %v3086_v60, %s5179_s11  ;;  %4049 = vperm.xlu0 %4850, %v3343_v39   ;;  %v7274_v55 = vpop.permute.xlu0 %3598  ;;  %v2731_v60 = vmul.f32 %v7277_v41, %v7277_v41  ;;  %v3088_v39 = vmul.f32 %v6929_v5, %v8869_v19  ;;  %v5146_v5 = vld [vmem:[%s8571_s3] sm:$0xff]  ;;  %v8872_v19 = vld [vmem:[#allocation112_spill] sm:$0xff] }
 0x483   :  { %8867 = vst [vmem:[#allocation114_spill] sm:$0xff] %v7274_v55  ;;  %v2620_v16 = vpop.xlane.xlu1 %2619  ;;  %v2946_v55 = vadd.f32 1e-05, %v2838_v62  ;;  %v2890_v62 = vld [vmem:[%s8571_s3 + $0x178] sm:$0xff] }
 0x484   :  { %v2678_v8 = vmul.f32 0.0051020407, %v2620_v16 }
 0x485   :  { %5131 = vrsqrt.f32 %v2946_v55 }
 0x486   :  { %3633 = vperm.xlu1 %4822, %v8868_v23   ;;  %3255 = vrot.lane.b32.xlu0 %v3103_v1, %s5179_s11  ;;  %v7288_v0 = vpop.permute.xlu0 %3211  ;;  %v7298_v23 = vmul.f32 %v5124_v43, %v2888_v37  ;;  %v8871_v1 = vld [vmem:[#allocation113_spill] sm:$0xff]  ;;  %v2785_v37 = vsub.f32 %v2677_v58, %v2731_v60  ;;  %v7325_v60 = vmul.f32 0.0051020407, %v7076_v15 }
 0x487   :  { %4853 = vset.pattern.permute.xlu0 %v8851_v22  ;;  %v3329_v43 = vsub.f32 %v5146_v5, %v8871_v1  ;;  %v2786_v5 = vsub.f32 %v2678_v8, %v2732_v6 }
 0x488   :  { %v2839_v14 = vmax.f32 %v2785_v37, 0.0  ;;  %v5128_v58 = vpop.eup %5127  ;;  %v2733_v1 = vmul.f32 %v7325_v60, %v7325_v60 }
 0x489   :  { %v7345_v37 = vmul.f32 %v5128_v58, %v2890_v62  ;;  %v2840_v8 = vmax.f32 %v2786_v5, 0.0 }
 0x48a   :  { %3225 = vrot.lane.b32.xlu1 %v3088_v39, %s5179_s11  ;;  %3718 = vperm.xlu0 %4853, %v7298_v23   ;;  %v7302_v32 = vpop.permute.xlu0 %3608  ;;  %v3345_v39 = vsub.f32 %v8872_v19, %v7201_v40  ;;  %v2947_v15 = vadd.f32 1e-05, %v2839_v14 }
 0x48b   :  { %8870 = vst [vmem:[#allocation117_spill] sm:$0xff] %v7302_v32  ;;  %4823 = vset.pattern.permute.xlu1 %v8855_v9  ;;  %v7319_v32 = vmul.f32 %v5126_v46, %v7308_v29  ;;  %v5130_v14 = vpop.eup %5129  ;;  %v2948_v62 = vadd.f32 1e-05, %v2840_v8  ;;  %v7393_v8 = vld [vmem:[%s8571_s3 + $0x190] sm:$0xff] }
 0x48c   :  { %5133 = vrsqrt.f32 %v2947_v15 }
 0x48d   :  { %v3105_v40 = vmul.f32 %v7319_v32, %v7181_v33  ;;  %v8873_v33 = vld [vmem:[#allocation124_spill] sm:$0xff]  ;;  %5135 = vrsqrt.f32 %v2948_v62  ;;  %v8879_v62 = vld [vmem:[#allocation125_spill] sm:$0xff] }
 0x48e   :  { %3979 = vperm.xlu1 %4823, %v3329_v43   ;;  %4854 = vset.pattern.permute.xlu0 %v8855_v9  ;;  %v7322_v27 = vpop.permute.xlu0 %3215  ;;  %v2679_v43 = vmul.f32 0.0051020407, %v7113_v45  ;;  %v3090_v55 = vmul.f32 %v6975_v63, %v8873_v33  ;;  %v7355_v45 = vld [vmem:[%s8571_s3 + $0x180] sm:$0xff]  ;;  %v5147_v63 = vld [vmem:[%s8571_s3 + $0x10] sm:$0xff]  ;;  %v5148_v33 = vld [vmem:[%s8571_s3 + $0x18] sm:$0xff] }
 0x48f   :  { %4059 = vperm.xlu0 %4854, %v3345_v39   ;;  %v3331_v16 = vsub.f32 %v5147_v63, %v7005_v56  ;;  %v8874_v39 = vld [vmem:[#allocation115_spill] sm:$0xff]  ;;  %v7366_v58 = vmul.f32 %v5130_v14, %v7355_v45  ;;  %v8876_v63 = vld [vmem:[#allocation5_spill] sm:$0xff] }
 0x490   :  { %v2787_v19 = vsub.f32 %v2679_v43, %v2733_v1  ;;  %v3347_v6 = vsub.f32 %v8874_v39, %v7231_v59  ;;  %v2892_v59 = vld [vmem:[%s8571_s3 + $0x188] sm:$0xff] }
 0x491   :  { %v3107_v56 = vmul.f32 %v7366_v58, %v7229_v54 }
 0x492   :  { %4824 = vset.pattern.permute.xlu1 %v8851_v22  ;;  %v7332_v46 = vpop.permute.xlu0 %3618  ;;  %v2841_v15 = vmax.f32 %v2787_v19, 0.0  ;;  %v5132_v1 = vpop.eup %5131 }
 0x493   :  { %3643 = vperm.xlu1 %4824, %v6931_v26   ;;  %3259 = vrot.lane.b32.xlu0 %v3105_v40, %s5179_s11  ;;  %v7386_v14 = vmul.f32 %v5132_v1, %v2892_v59  ;;  %v3386_v1 = vld [vmem:[%s8572_s1 + $0x18] sm:$0xff]  ;;  %v8880_v59 = vld [vmem:[#allocation116_spill] sm:$0xff] }
 0x494   :  { %4857 = vset.pattern.permute.xlu0 %v8851_v22  ;;  %v2949_v43 = vadd.f32 1e-05, %v2841_v15  ;;  %v3092_v15 = vmul.f32 %v7001_v44, %v8879_v62 }
 0x496   :  { %v7347_v26 = vpop.permute.xlu0 %3219  ;;  %5137 = vrsqrt.f32 %v2949_v43  ;;  %v3349_v43 = vsub.f32 %v8880_v59, %v7261_v7  ;;  %v2894_v7 = vld [vmem:[%s8571_s3 + $0x198] sm:$0xff] }
 0x497   :  { %3229 = vrot.lane.b32.xlu1 %v3090_v55, %s5179_s11  ;;  %3728 = vperm.xlu0 %4857, %v7345_v37   ;;  %v3332_v55 = vsub.f32 %v5148_v33, %v7027_v20  ;;  %v8878_v20 = vld [vmem:[#allocation6_spill] sm:$0xff] }
 0x498   :  { %4827 = vset.pattern.permute.xlu1 %v8855_v9 }
 0x49a   :  { %v7363_v40 = vpop.permute.xlu0 %3628 }
 0x49b   :  { %3989 = vperm.xlu1 %4827, %v3331_v16   ;;  %4858 = vset.pattern.permute.xlu0 %v8855_v9  ;;  %v8877_v16 = vld [vmem:[#allocation128_spill] sm:$0xff] }
 0x49c   :  { %4069 = vperm.xlu0 %4858, %v3347_v6   ;;  %v3763_v19 = vmul.f32 %v8877_v16, %v8876_v63  ;;  %v3764_v39 = vmul.f32 %v8877_v16, %v8878_v20 }
 0x49e   :  { %v7369_v5 = vpop.permute.xlu0 %3223 }
 0x49f   :  { %4828 = vset.pattern.permute.xlu1 %v8851_v22 }
 0x4a0   :  { %3653 = vperm.xlu1 %4828, %v6978_v25   ;;  %3263 = vrot.lane.b32.xlu0 %v3107_v56, %s5179_s11  ;;  %v5134_v25 = vpop.eup %5133  ;;  %v3385_v56 = vld [vmem:[%s8572_s1 + $0x10] sm:$0xff] }
 0x4a1   :  { %4861 = vset.pattern.permute.xlu0 %v8851_v22  ;;  %v7412_v33 = vmul.f32 %v5134_v25, %v7393_v8  ;;  %v3871_v44 = vadd.f32 %v3763_v19, %v3385_v56  ;;  %v7446_v56 = vpop.permute.xlu1 %3189 }
 0x4a2   :  { %v7384_v54 = vpop.permute.xlu0 %3638 }
 0x4a3   :  { %8875 = vst [vmem:[#allocation110_spill] sm:$0xff] %v7384_v54  ;;  %v3109_v62 = vmul.f32 %v7412_v33, %v7277_v41  ;;  %v5136_v54 = vpop.eup %5135 }
 0x4a4   :  { %4829 = vset.pattern.permute.xlu1 %v8855_v9  ;;  %3738 = vperm.xlu0 %4861, %v7386_v14   ;;  %v7437_v19 = vmul.f32 %v5136_v54, %v2894_v7  ;;  %v8882_v54 = vld [vmem:[#allocation121_spill] sm:$0xff]  ;;  %v3391_v7 = vld [vmem:[%s8572_s1 + $0x40] sm:$0xff] }
 0x4a5   :  { %3994 = vperm.xlu1 %4829, %v3332_v55   ;;  %v3872_v55 = vadd.f32 %v3764_v39, %v3386_v1  ;;  %v5138_v39 = vpop.eup %5137 }
 0x4a6   :  { %v7399_v6 = vpop.permute.xlu0 %3227 }
 0x4a8   :  { %4862 = vset.pattern.permute.xlu0 %v8855_v9 }
 0x4a9   :  { %3233 = vrot.lane.b32.xlu1 %v3092_v15, %s5179_s11  ;;  %4079 = vperm.xlu0 %4862, %v3349_v43   ;;  %v7444_v15 = vld [vmem:[%s8571_s3 + $0x1a0] sm:$0xff]  ;;  %v3351_v43 = vsub.f32 %v8882_v54, %v7288_v0 }
 0x4aa   :  { %4831 = vset.pattern.permute.xlu1 %v8851_v22  ;;  %v3985_v63 = vpop.permute.xlu0 %3984 }
 0x4ab   :  { %v4249_v16 = vadd.f32 %v3985_v63, %v3871_v44  ;;  %v4250_v20 = vadd.f32 %v3985_v63, %v3872_v55  ;;  %v7455_v44 = vmul.f32 %v5138_v39, %v7444_v15  ;;  %v8883_v55 = vld [vmem:[#allocation11_spill] sm:$0xff] }
 0x4ac   :  { %v3769_v63 = vmul.f32 %v7064_v17, %v8883_v55 }
 0x4ad   :  { %3663 = vperm.xlu1 %4831, %v7021_v28   ;;  %4357 = vst [vmem:[%s8573_s4 + $0x10] sm:$0xff] %v4249_v16  ;;  %4358 = vst [vmem:[%s8573_s4 + $0x18] sm:$0xff] %v4250_v20  ;;  %3267 = vrot.lane.b32.xlu0 %v3109_v62, %s5179_s11  ;;  %v5149_v28 = vld [vmem:[%s8571_s3 + $0x28] sm:$0xff]  ;;  %v3111_v0 = vmul.f32 %v7455_v44, %v7325_v60 }
 0x4ae   :  { %4865 = vset.pattern.permute.xlu0 %v8851_v22  ;;  %v3334_v41 = vsub.f32 %v5149_v28, %v7103_v2  ;;  %v8881_v2 = vld [vmem:[#allocation129_spill] sm:$0xff]  ;;  %v8884_v16 = vld [vmem:[#allocation12_spill] sm:$0xff]  ;;  %v5150_v60 = vld [vmem:[%s8571_s3 + $0x38] sm:$0xff] }
 0x4af   :  { %v7435_v25 = vpop.permute.xlu0 %3648  ;;  %v3094_v59 = vmul.f32 %v7046_v11, %v8881_v2  ;;  %v3770_v20 = vmul.f32 %v7064_v17, %v8884_v16  ;;  %v2302_v11 = vpop.xlane.xlu1 %2301  ;;  %v3392_v28 = vld [vmem:[%s8572_s1 + $0x48] sm:$0xff]  ;;  %v3336_v39 = vsub.f32 %v5150_v60, %v7186_v18 }
 0x4b0   :  { %v8885_v18 = vld [vmem:[#allocation132_spill] sm:$0xff] }
 0x4b1   :  { %4832 = vset.pattern.permute.xlu1 %v8855_v9  ;;  %3748 = vperm.xlu0 %4865, %v7437_v19   ;;  %v3878_v17 = vadd.f32 %v3770_v20, %v3392_v28  ;;  %v8887_v28 = vld [vmem:[#allocation16_spill] sm:$0xff] }
 0x4b2   :  { %4004 = vperm.xlu1 %4832, %v3334_v41   ;;  %v3877_v41 = vadd.f32 %v3769_v63, %v3391_v7  ;;  %v3096_v63 = vmul.f32 %v7098_v49, %v8885_v18  ;;  %v3395_v49 = vld [vmem:[%s8572_s1 + $0x60] sm:$0xff] }
 0x4b3   :  { %v7448_v1 = vpop.permute.xlu0 %3231 }
 0x4b5   :  { %4866 = vset.pattern.permute.xlu0 %v8855_v9 }
 0x4b6   :  { %3237 = vrot.lane.b32.xlu1 %v3094_v59, %s5179_s11  ;;  %4089 = vperm.xlu0 %4866, %v3351_v43   ;;  %v7481_v59 = vpop.permute.xlu1 %3553 }
 0x4b7   :  { %4835 = vset.pattern.permute.xlu1 %v8851_v22  ;;  %v7464_v62 = vpop.permute.xlu0 %3658 }
 0x4ba   :  { %3673 = vperm.xlu1 %4835, %v7071_v31   ;;  %3271 = vrot.lane.b32.xlu0 %v3111_v0, %s5179_s11  ;;  %v7484_v31 = vmul.f32 0.0051020407, %v2302_v11  ;;  %v8886_v0 = vld [vmem:[#allocation15_spill] sm:$0xff] }
 0x4bb   :  { %4869 = vset.pattern.permute.xlu0 %v8851_v22  ;;  %v3773_v7 = vmul.f32 %v7149_v21, %v8886_v0 }
 0x4bc   :  { %v4000_v2 = vpop.permute.xlu0 %3999  ;;  %v2734_v20 = vmul.f32 %v7484_v31, %v7484_v31 }
 0x4bd   :  { %v4255_v54 = vadd.f32 %v4000_v2, %v3877_v41  ;;  %v4256_v43 = vadd.f32 %v4000_v2, %v3878_v17  ;;  %v3774_v41 = vmul.f32 %v7149_v21, %v8887_v28  ;;  %v3396_v2 = vld [vmem:[%s8572_s1 + $0x68] sm:$0xff]  ;;  %v3881_v18 = vadd.f32 %v3773_v7, %v3395_v49  ;;  %v8888_v7 = vld [vmem:[#allocation135_spill] sm:$0xff] }
 0x4be   :  { %4836 = vset.pattern.permute.xlu1 %v8855_v9  ;;  %v5151_v21 = vld [vmem:[%s8571_s3 + $0x48] sm:$0xff] }
 0x4bf   :  { %4014 = vperm.xlu1 %4836, %v3336_v39   ;;  %4363 = vst [vmem:[%s8573_s4 + $0x40] sm:$0xff] %v4255_v54  ;;  %4364 = vst [vmem:[%s8573_s4 + $0x48] sm:$0xff] %v4256_v43 }
 0x4c0   :  { %v7492_v55 = vpop.permute.xlu0 %3235 }
 0x4c2   :  { %v2626_v16 = vpop.xlane.xlu1 %2625 }
 0x4c3   :  { %v2680_v11 = vmul.f32 0.0051020407, %v2626_v16  ;;  %3241 = vrot.lane.b32.xlu1 %v3096_v63, %s5179_s11  ;;  %v3882_v63 = vadd.f32 %v3774_v41, %v3396_v2  ;;  %v3338_v16 = vsub.f32 %v5151_v21, %v7259_v57  ;;  %v3098_v41 = vmul.f32 %v7153_v38, %v8888_v7  ;;  %v8890_v2 = vld [vmem:[#allocation20_spill] sm:$0xff] }
 0x4c4   :  { %4839 = vset.pattern.permute.xlu1 %v8851_v22  ;;  %v7504_v60 = vpop.permute.xlu0 %3668  ;;  %v3400_v38 = vld [vmem:[%s8572_s1 + $0x88] sm:$0xff] }
 0x4c5   :  { %v2788_v17 = vsub.f32 %v2680_v11, %v2734_v20 }
 0x4c6   :  { %v7506_v39 = vpop.permute.xlu1 %3193 }
 0x4c7   :  { %v2842_v54 = vmax.f32 %v2788_v17, 0.0  ;;  %3683 = vperm.xlu1 %4839, %v7124_v13   ;;  %v8889_v17 = vld [vmem:[#allocation19_spill] sm:$0xff] }
 0x4c8   :  { %v3777_v49 = vmul.f32 %v7224_v47, %v8889_v17 }
 0x4c9   :  { %v2950_v43 = vadd.f32 1e-05, %v2842_v54  ;;  %v4010_v20 = vpop.permute.xlu0 %4009  ;;  %v3778_v54 = vmul.f32 %v7224_v47, %v8890_v2  ;;  %v2896_v47 = vld [vmem:[%s8571_s3 + $0x1a8] sm:$0xff] }
 0x4ca   :  { %v7519_v11 = vpop.permute.xlu1 %3563  ;;  %v4259_v0 = vadd.f32 %v4010_v20, %v3881_v18  ;;  %v4260_v28 = vadd.f32 %v4010_v20, %v3882_v63  ;;  %v3399_v63 = vld [vmem:[%s8572_s1 + $0x80] sm:$0xff] }
 0x4cb   :  { %5139 = vrsqrt.f32 %v2950_v43  ;;  %4840 = vset.pattern.permute.xlu1 %v8855_v9  ;;  %v3885_v21 = vadd.f32 %v3777_v49, %v3399_v63  ;;  %v5153_v63 = vld [vmem:[%s8571_s3 + $0xc0] sm:$0xff] }
 0x4cc   :  { %4024 = vperm.xlu1 %4840, %v3338_v16   ;;  %4367 = vst [vmem:[%s8573_s4 + $0x60] sm:$0xff] %v4259_v0  ;;  %4368 = vst [vmem:[%s8573_s4 + $0x68] sm:$0xff] %v4260_v28  ;;  %v3886_v16 = vadd.f32 %v3778_v54, %v3400_v38  ;;  %v5152_v0 = vld [vmem:[%s8571_s3 + $0x58] sm:$0xff]  ;;  %v3100_v54 = vmul.f32 %v7203_v50, %v7062_v10  ;;  %v3353_v38 = vsub.f32 %v5153_v63, %v7322_v27  ;;  %v3403_v10 = vld [vmem:[%s8572_s1 + $0xa0] sm:$0xff] }
 0x4cd   :  { %v7528_v13 = vpop.permute.xlu0 %3239  ;;  %v3340_v28 = vsub.f32 %v5152_v0, %v7446_v56  ;;  %v8892_v0 = vld [vmem:[#allocation24_spill] sm:$0xff]  ;;  %v5154_v50 = vld [vmem:[%s8571_s3 + $0xd0] sm:$0xff] }
 0x4ce   :  { %v7530_v57 = vpop.permute.xlu1 %3197  ;;  %v3404_v27 = vld [vmem:[%s8572_s1 + $0xa8] sm:$0xff] }
 0x4d0   :  { %3245 = vrot.lane.b32.xlu1 %v3098_v41, %s5179_s11 }
 0x4d1   :  { %4843 = vset.pattern.permute.xlu1 %v8851_v22  ;;  %v7540_v43 = vpop.permute.xlu0 %3678 }
 0x4d2   :  { %v7542_v18 = vpop.permute.xlu1 %3573 }
 0x4d4   :  { %3693 = vperm.xlu1 %4843, %v7174_v35  }
 0x4d6   :  { %v7551_v20 = vpop.permute.xlu1 %3201  ;;  %v4020_v7 = vpop.permute.xlu0 %4019 }
 0x4d7   :  { %v4263_v17 = vadd.f32 %v4020_v7, %v3885_v21  ;;  %v4264_v2 = vadd.f32 %v4020_v7, %v3886_v16  ;;  %v8891_v16 = vld [vmem:[#allocation23_spill] sm:$0xff] }
 0x4d8   :  { %v5140_v41 = vpop.eup %5139  ;;  %4844 = vset.pattern.permute.xlu1 %v8855_v9 }
 0x4d9   :  { %4034 = vperm.xlu1 %4844, %v3340_v28   ;;  %v7561_v35 = vmul.f32 %v5140_v41, %v2896_v47  ;;  %4371 = vst [vmem:[%s8573_s4 + $0x80] sm:$0xff] %v4263_v17  ;;  %4372 = vst [vmem:[%s8573_s4 + $0x88] sm:$0xff] %v4264_v2  ;;  %v3781_v47 = vmul.f32 %v7296_v24, %v8891_v16  ;;  %v3782_v28 = vmul.f32 %v7296_v24, %v8892_v0 }
 0x4da   :  { %v7569_v49 = vpop.permute.xlu1 %3583  ;;  %v7571_v56 = vpop.permute.xlu0 %3243  ;;  %v3355_v24 = vsub.f32 %v5154_v50, %v7347_v26  ;;  %v5156_v26 = vld [vmem:[%s8571_s3 + $0xe0] sm:$0xff] }
 0x4db   :  { %3758 = vperm.xlu0 %4869, %v7561_v35   ;;  %v3889_v17 = vadd.f32 %v3781_v47, %v3403_v10  ;;  %v3890_v2 = vadd.f32 %v3782_v28, %v3404_v27  ;;  %v3357_v0 = vsub.f32 %v5156_v26, %v7369_v5  ;;  %v3102_v28 = vmul.f32 %v7250_v36, %v7116_v30  ;;  %v5157_v5 = vld [vmem:[%s8571_s3 + $0xf0] sm:$0xff]  ;;  %v8893_v50 = vld [vmem:[#allocation27_spill] sm:$0xff]  ;;  %v3408_v36 = vld [vmem:[%s8572_s1 + $0xc8] sm:$0xff] }
 0x4dc   :  { %v3359_v10 = vsub.f32 %v5157_v5, %v7399_v6  ;;  %v3407_v30 = vld [vmem:[%s8572_s1 + $0xc0] sm:$0xff] }
 0x4dd   :  { %3249 = vrot.lane.b32.xlu1 %v3100_v54, %s5179_s11  ;;  %v5155_v54 = vld [vmem:[%s8571_s3 + $0x68] sm:$0xff]  ;;  %v8895_v6 = vld [vmem:[#allocation131_spill] sm:$0xff] }
 0x4de   :  { %v7581_v21 = vpop.permute.xlu1 %3205  ;;  %4847 = vset.pattern.permute.xlu1 %v8851_v22  ;;  %v7588_v7 = vpop.permute.xlu0 %3688  ;;  %v3342_v63 = vsub.f32 %v5155_v54, %v7506_v39 }
 0x4df   :  { %4870 = vset.pattern.permute.xlu0 %v8855_v9 }
 0x4e0   :  { %4099 = vperm.xlu0 %4870, %v3353_v38  }
 0x4e1   :  { %3703 = vperm.xlu1 %4847, %v7222_v52  }
 0x4e2   :  { %v7602_v41 = vpop.permute.xlu1 %3593 }
 0x4e3   :  { %v4030_v38 = vpop.permute.xlu0 %4029 }
 0x4e4   :  { %4109 = vperm.xlu0 %4870, %v3355_v24   ;;  %v4267_v16 = vadd.f32 %v4030_v38, %v3889_v17  ;;  %v4268_v52 = vadd.f32 %v4030_v38, %v3890_v2  ;;  %v3785_v24 = vmul.f32 %v7481_v59, %v8893_v50  ;;  %v8894_v17 = vld [vmem:[#allocation28_spill] sm:$0xff] }
 0x4e5   :  { %4848 = vset.pattern.permute.xlu1 %v8855_v9  ;;  %v3786_v2 = vmul.f32 %v7481_v59, %v8894_v17  ;;  %v8897_v17 = vld [vmem:[#allocation31_spill] sm:$0xff] }
 0x4e6   :  { %4044 = vperm.xlu1 %4848, %v3342_v63   ;;  %v7613_v47 = vpop.permute.xlu1 %3209  ;;  %4375 = vst [vmem:[%s8573_s4 + $0xa0] sm:$0xff] %v4267_v16  ;;  %4376 = vst [vmem:[%s8573_s4 + $0xa8] sm:$0xff] %v4268_v52  ;;  %v3361_v63 = vsub.f32 %v8895_v6, %v7448_v1  ;;  %v3893_v16 = vadd.f32 %v3785_v24, %v3407_v30  ;;  %v5158_v52 = vld [vmem:[%s8571_s3 + $0x78] sm:$0xff]  ;;  %v8898_v30 = vld [vmem:[#allocation32_spill] sm:$0xff] }
 0x4e7   :  { %v3248_v39 = vpop.permute.xlu0 %3247  ;;  %v3894_v59 = vadd.f32 %v3786_v2, %v3408_v36  ;;  %v3344_v26 = vsub.f32 %v5158_v52, %v7530_v57  ;;  %v3365_v57 = vsub.f32 %v7057_v53, %v7528_v13  ;;  %v3789_v2 = vmul.f32 %v7519_v11, %v8897_v17  ;;  %v3411_v53 = vld [vmem:[%s8572_s1 + $0xe0] sm:$0xff]  ;;  %v3412_v13 = vld [vmem:[%s8572_s1 + $0xe8] sm:$0xff] }
 0x4e8   :  { %4119 = vperm.xlu0 %4870, %v3357_v0   ;;  %v3790_v36 = vmul.f32 %v7519_v11, %v8898_v30  ;;  %v3383_v30 = vld [vmem:[%s8572_s1] sm:$0xff] }
 0x4ea   :  { %3253 = vrot.lane.b32.xlu1 %v3102_v28, %s5179_s11  ;;  %v7628_v27 = vpop.permute.xlu1 %3603  ;;  %v8896_v28 = vld [vmem:[#allocation134_spill] sm:$0xff]  ;;  %v3898_v11 = vadd.f32 %v3790_v36, %v3412_v13  ;;  %v3384_v36 = vld [vmem:[%s8572_s1 + $0x8] sm:$0xff] }
 0x4eb   :  { %4851 = vset.pattern.permute.xlu1 %v8851_v22  ;;  %v7635_v54 = vpop.permute.xlu0 %3698  ;;  %v3363_v5 = vsub.f32 %v8896_v28, %v7492_v55  ;;  %v3104_v55 = vmul.f32 %v7298_v23, %v7165_v61  ;;  %v3367_v61 = vsub.f32 %v7109_v48, %v7571_v56  ;;  %v3369_v56 = vsub.f32 %v7161_v3, %v3248_v39  ;;  %v8899_v28 = vld [vmem:[#allocation3_spill] sm:$0xff] }
 0x4ec   :  { %4129 = vperm.xlu0 %4870, %v3359_v10   ;;  %v3106_v39 = vmul.f32 %v7345_v37, %v7217_v12 }
 0x4ee   :  { %3713 = vperm.xlu1 %4851, %v7270_v34   ;;  %v7646_v38 = vpop.permute.xlu1 %3213 }
 0x4f0   :  { %4139 = vperm.xlu0 %4870, %v3361_v63   ;;  %v4040_v0 = vpop.permute.xlu0 %4039  ;;  %v3897_v63 = vadd.f32 %v3789_v2, %v3411_v53 }
 0x4f1   :  { %v4271_v10 = vadd.f32 %v4040_v0, %v3893_v16  ;;  %v4272_v50 = vadd.f32 %v4040_v0, %v3894_v59  ;;  %v5159_v16 = vld [vmem:[%s8571_s3 + $0x88] sm:$0xff] }
 0x4f2   :  { %4852 = vset.pattern.permute.xlu1 %v8855_v9  ;;  %v7655_v34 = vpop.permute.xlu1 %3613  ;;  %v3346_v48 = vsub.f32 %v5159_v16, %v7551_v20  ;;  %v5160_v16 = vld [vmem:[%s8571_s3 + $0x98] sm:$0xff] }
 0x4f3   :  { %4054 = vperm.xlu1 %4852, %v3344_v26   ;;  %4379 = vst [vmem:[%s8573_s4 + $0xc0] sm:$0xff] %v4271_v10  ;;  %4380 = vst [vmem:[%s8573_s4 + $0xc8] sm:$0xff] %v4272_v50  ;;  %v8901_v50 = vld [vmem:[#allocation4_spill] sm:$0xff] }
 0x4f4   :  { %4149 = vperm.xlu0 %4870, %v3363_v5   ;;  %v3252_v1 = vpop.permute.xlu0 %3251  ;;  %v8900_v5 = vld [vmem:[#allocation111_spill] sm:$0xff] }
 0x4f5   :  { %v3761_v10 = vmul.f32 %v8900_v5, %v8899_v28 }
 0x4f6   :  { %v7667_v24 = vpop.permute.xlu1 %3217 }
 0x4f7   :  { %3257 = vrot.lane.b32.xlu1 %v3104_v55, %s5179_s11  ;;  %v3762_v55 = vmul.f32 %v8900_v5, %v8901_v50  ;;  %v8905_v5 = vld [vmem:[#allocation7_spill] sm:$0xff] }
 0x4f8   :  { %4159 = vperm.xlu0 %4870, %v3365_v57   ;;  %4855 = vset.pattern.permute.xlu1 %v8851_v22  ;;  %v7675_v6 = vpop.permute.xlu0 %3708  ;;  %v8902_v57 = vld [vmem:[#allocation35_spill] sm:$0xff] }
 0x4f9   :  { %v3870_v53 = vadd.f32 %v3762_v55, %v3384_v36  ;;  %v8907_v55 = vld [vmem:[#allocation8_spill] sm:$0xff] }
 0x4fa   :  { %v7679_v23 = vpop.permute.xlu1 %3623 }
 0x4fb   :  { %3723 = vperm.xlu1 %4855, %v7319_v32   ;;  %v3371_v32 = vsub.f32 %v7211_v42, %v3252_v1  ;;  %v3793_v42 = vmul.f32 %v7542_v18, %v8902_v57  ;;  %v8903_v1 = vld [vmem:[#allocation36_spill] sm:$0xff] }
 0x4fc   :  { %4169 = vperm.xlu0 %4870, %v3367_v61   ;;  %v3794_v17 = vmul.f32 %v7542_v18, %v8903_v1  ;;  %v3415_v61 = vld [vmem:[%s8572_s1 + $0x100] sm:$0xff]  ;;  %v3869_v18 = vadd.f32 %v3761_v10, %v3383_v30  ;;  %v8906_v10 = vld [vmem:[#allocation133_spill] sm:$0xff] }
 0x4fd   :  { %v4050_v59 = vpop.permute.xlu0 %4049  ;;  %v3901_v13 = vadd.f32 %v3793_v42, %v3415_v61  ;;  %v3765_v50 = vmul.f32 %v8906_v10, %v8905_v5  ;;  %v3766_v57 = vmul.f32 %v8906_v10, %v8907_v55  ;;  %v3387_v1 = vld [vmem:[%s8572_s1 + $0x20] sm:$0xff]  ;;  %v3110_v5 = vmul.f32 %v7437_v19, %v7314_v51  ;;  %v3389_v10 = vld [vmem:[%s8572_s1 + $0x30] sm:$0xff]  ;;  %v8914_v19 = vld [vmem:[#allocation44_spill] sm:$0xff] }
 0x4fe   :  { %v7693_v52 = vpop.permute.xlu1 %3221  ;;  %v4275_v26 = vadd.f32 %v4050_v59, %v3897_v63  ;;  %v4276_v0 = vadd.f32 %v4050_v59, %v3898_v11  ;;  %v3419_v61 = vld [vmem:[%s8572_s1 + $0x120] sm:$0xff] }
 0x4ff   :  { %4856 = vset.pattern.permute.xlu1 %v8855_v9 }
 0x500   :  { %4179 = vperm.xlu0 %4870, %v3369_v56   ;;  %4064 = vperm.xlu1 %4856, %v3346_v48   ;;  %4383 = vst [vmem:[%s8573_s4 + $0xe0] sm:$0xff] %v4275_v26  ;;  %4384 = vst [vmem:[%s8573_s4 + $0xe8] sm:$0xff] %v4276_v0  ;;  %v3348_v48 = vsub.f32 %v5160_v16, %v7581_v21 }
 0x501   :  { %v3256_v3 = vpop.permute.xlu0 %3255 }
 0x502   :  { %v7703_v20 = vpop.permute.xlu1 %3633  ;;  %v3373_v2 = vsub.f32 %v7257_v4, %v3256_v3  ;;  %v3416_v4 = vld [vmem:[%s8572_s1 + $0x108] sm:$0xff]  ;;  %v8904_v3 = vld [vmem:[#allocation123_spill] sm:$0xff] }
 0x503   :  { %v3902_v63 = vadd.f32 %v3794_v17, %v3416_v4  ;;  %v3420_v4 = vld [vmem:[%s8572_s1 + $0x128] sm:$0xff] }
 0x504   :  { %4189 = vperm.xlu0 %4870, %v3371_v32   ;;  %3261 = vrot.lane.b32.xlu1 %v3106_v39, %s5179_s11  ;;  %v3108_v39 = vmul.f32 %v7386_v14, %v8904_v3  ;;  %v8908_v14 = vld [vmem:[#allocation39_spill] sm:$0xff]  ;;  %v8912_v3 = vld [vmem:[#allocation9_spill] sm:$0xff] }
 0x505   :  { %4859 = vset.pattern.permute.xlu1 %v8851_v22  ;;  %v7718_v12 = vpop.permute.xlu0 %3718  ;;  %v3797_v17 = vmul.f32 %v7569_v49, %v8908_v14  ;;  %v3802_v14 = vmul.f32 %v7602_v41, %v8914_v19 }
 0x506   :  { %v7720_v37 = vpop.permute.xlu1 %3225 }
 0x507   :  { %v3905_v16 = vadd.f32 %v3797_v17, %v3419_v61 }
 0x508   :  { %4199 = vperm.xlu0 %4870, %v3373_v2   ;;  %3733 = vperm.xlu1 %4859, %v7366_v58   ;;  %v8909_v2 = vld [vmem:[#allocation40_spill] sm:$0xff] }
 0x509   :  { %v3798_v30 = vmul.f32 %v7569_v49, %v8909_v2  ;;  %v5161_v49 = vld [vmem:[%s8571_s3 + $0xa8] sm:$0xff] }
 0x50a   :  { %v3980_v11 = vpop.permute.xlu1 %3979  ;;  %v4060_v56 = vpop.permute.xlu0 %4059 }
 0x50b   :  { %v4247_v59 = vadd.f32 %v3980_v11, %v3869_v18  ;;  %v4248_v26 = vadd.f32 %v3980_v11, %v3870_v53  ;;  %v4279_v0 = vadd.f32 %v4060_v56, %v3901_v13  ;;  %v4280_v32 = vadd.f32 %v4060_v56, %v3902_v63 }
 0x50c   :  { %4860 = vset.pattern.permute.xlu1 %v8855_v9  ;;  %v3873_v18 = vadd.f32 %v3765_v50, %v3387_v1  ;;  %v3350_v56 = vsub.f32 %v5161_v49, %v7613_v47  ;;  %v3390_v50 = vld [vmem:[%s8572_s1 + $0x38] sm:$0xff] }
 0x50d   :  { %4355 = vst [vmem:[%s8573_s4] sm:$0xff] %v4247_v59  ;;  %4356 = vst [vmem:[%s8573_s4 + $0x8] sm:$0xff] %v4248_v26  ;;  %4074 = vperm.xlu1 %4860, %v3348_v48   ;;  %v3906_v48 = vadd.f32 %v3798_v30, %v3420_v4  ;;  %v3424_v4 = vld [vmem:[%s8572_s1 + $0x148] sm:$0xff] }
 0x50e   :  { %4387 = vst [vmem:[%s8573_s4 + $0x100] sm:$0xff] %v4279_v0  ;;  %4388 = vst [vmem:[%s8573_s4 + $0x108] sm:$0xff] %v4280_v32  ;;  %v7752_v58 = vpop.permute.xlu1 %3643  ;;  %v3260_v21 = vpop.permute.xlu0 %3259  ;;  %v8910_v0 = vld [vmem:[#allocation10_spill] sm:$0xff] }
 0x50f   :  { %v3375_v28 = vsub.f32 %v7308_v29, %v3260_v21  ;;  %v3388_v29 = vld [vmem:[%s8572_s1 + $0x28] sm:$0xff]  ;;  %v8911_v32 = vld [vmem:[#allocation122_spill] sm:$0xff] }
 0x510   :  { %v3874_v53 = vadd.f32 %v3766_v57, %v3388_v29  ;;  %v3767_v21 = vmul.f32 %v8911_v32, %v8910_v0  ;;  %v3768_v47 = vmul.f32 %v8911_v32, %v8912_v3  ;;  %v8913_v29 = vld [vmem:[#allocation43_spill] sm:$0xff]  ;;  %v3394_v0 = vld [vmem:[%s8572_s1 + $0x58] sm:$0xff] }
 0x511   :  { %3265 = vrot.lane.b32.xlu1 %v3108_v39, %s5179_s11  ;;  %4209 = vperm.xlu0 %4870, %v3375_v28   ;;  %v3801_v51 = vmul.f32 %v7602_v41, %v8913_v29  ;;  %v3910_v41 = vadd.f32 %v3802_v14, %v3424_v4  ;;  %v3428_v29 = vld [vmem:[%s8572_s1 + $0x168] sm:$0xff]  ;;  %v8921_v4 = vld [vmem:[#allocation130_spill] sm:$0xff] }
 0x512   :  { %v7762_v42 = vpop.permute.xlu1 %3229  ;;  %4863 = vset.pattern.permute.xlu1 %v8851_v22  ;;  %v7775_v36 = vpop.permute.xlu0 %3728  ;;  %v3875_v57 = vadd.f32 %v3767_v21, %v3389_v10  ;;  %v3876_v1 = vadd.f32 %v3768_v47, %v3390_v50  ;;  %v8918_v47 = vld [vmem:[#allocation47_spill] sm:$0xff] }
 0x515   :  { %3743 = vperm.xlu1 %4863, %v7412_v33  }
 0x516   :  { %v3990_v13 = vpop.permute.xlu1 %3989 }
 0x517   :  { %v4251_v63 = vadd.f32 %v3990_v13, %v3873_v18  ;;  %v4252_v11 = vadd.f32 %v3990_v13, %v3874_v53  ;;  %v4070_v59 = vpop.permute.xlu0 %4069  ;;  %v5162_v53 = vld [vmem:[%s8571_s3 + $0xb8] sm:$0xff] }
 0x518   :  { %v4283_v33 = vadd.f32 %v4070_v59, %v3905_v16  ;;  %v4284_v26 = vadd.f32 %v4070_v59, %v3906_v48  ;;  %v3352_v13 = vsub.f32 %v5162_v53, %v7646_v38  ;;  %v8915_v16 = vld [vmem:[#allocation14_spill] sm:$0xff] }
 0x519   :  { %4359 = vst [vmem:[%s8573_s4 + $0x20] sm:$0xff] %v4251_v63  ;;  %4360 = vst [vmem:[%s8573_s4 + $0x28] sm:$0xff] %v4252_v11  ;;  %4864 = vset.pattern.permute.xlu1 %v8855_v9  ;;  %v8916_v48 = vld [vmem:[#allocation126_spill] sm:$0xff] }
 0x51a   :  { %4084 = vperm.xlu1 %4864, %v3350_v56   ;;  %4391 = vst [vmem:[%s8573_s4 + $0x120] sm:$0xff] %v4283_v33  ;;  %4392 = vst [vmem:[%s8573_s4 + $0x128] sm:$0xff] %v4284_v26  ;;  %v3771_v49 = vmul.f32 %v8916_v48, %v8915_v16  ;;  %v8917_v56 = vld [vmem:[#allocation13_spill] sm:$0xff]  ;;  %v3398_v16 = vld [vmem:[%s8572_s1 + $0x78] sm:$0xff] }
 0x51b   :  { %v7805_v39 = vpop.permute.xlu1 %3653  ;;  %v3264_v28 = vpop.permute.xlu0 %3263  ;;  %v3772_v59 = vmul.f32 %v8916_v48, %v8917_v56  ;;  %v3393_v26 = vld [vmem:[%s8572_s1 + $0x50] sm:$0xff]  ;;  %v5166_v48 = vld [vmem:[%s8571_s3 + $0xf8] sm:$0xff] }
 0x51c   :  { %v3377_v55 = vsub.f32 %v7355_v45, %v3264_v28  ;;  %v3423_v45 = vld [vmem:[%s8572_s1 + $0x140] sm:$0xff]  ;;  %v3879_v21 = vadd.f32 %v3771_v49, %v3393_v26  ;;  %v3805_v28 = vmul.f32 %v7628_v27, %v8918_v47  ;;  %v3360_v49 = vsub.f32 %v5166_v48, %v7762_v42  ;;  %v8924_v47 = vld [vmem:[#allocation136_spill] sm:$0xff] }
 0x51d   :  { %v3880_v3 = vadd.f32 %v3772_v59, %v3394_v0  ;;  %v5167_v0 = vld [vmem:[%s8571_s3 + $0x108] sm:$0xff] }
 0x51e   :  { %3269 = vrot.lane.b32.xlu1 %v3110_v5, %s5179_s11  ;;  %4219 = vperm.xlu0 %4870, %v3377_v55   ;;  %v8919_v5 = vld [vmem:[#allocation48_spill] sm:$0xff] }
 0x51f   :  { %4867 = vset.pattern.permute.xlu1 %v8851_v22  ;;  %v7822_v17 = vpop.permute.xlu0 %3738  ;;  %v3909_v22 = vadd.f32 %v3801_v51, %v3423_v45  ;;  %v8920_v45 = vld [vmem:[#allocation18_spill] sm:$0xff] }
 0x520   :  { %v3995_v2 = vpop.permute.xlu1 %3994 }
 0x521   :  { %v4253_v30 = vadd.f32 %v3995_v2, %v3875_v57  ;;  %v4254_v61 = vadd.f32 %v3995_v2, %v3876_v1  ;;  %v3427_v1 = vld [vmem:[%s8572_s1 + $0x160] sm:$0xff] }
 0x522   :  { %3753 = vperm.xlu1 %4867, %v7455_v44   ;;  %v3913_v51 = vadd.f32 %v3805_v28, %v3427_v1 }
 0x523   :  { %4361 = vst [vmem:[%s8573_s4 + $0x30] sm:$0xff] %v4253_v30  ;;  %4362 = vst [vmem:[%s8573_s4 + $0x38] sm:$0xff] %v4254_v61 }
 0x524   :  { %v7837_v18 = vpop.permute.xlu1 %3233  ;;  %v4080_v63 = vpop.permute.xlu0 %4079 }
 0x525   :  { %v4287_v44 = vadd.f32 %v4080_v63, %v3909_v22  ;;  %v4288_v11 = vadd.f32 %v4080_v63, %v3910_v41  ;;  %v3775_v22 = vmul.f32 %v8921_v4, %v8920_v45  ;;  %v8922_v41 = vld [vmem:[#allocation17_spill] sm:$0xff] }
 0x526   :  { %4868 = vset.pattern.permute.xlu1 %v8855_v9  ;;  %v3112_v9 = vmul.f32 %v7561_v35, %v7484_v31  ;;  %v3806_v31 = vmul.f32 %v7628_v27, %v8919_v5  ;;  %v5163_v35 = vld [vmem:[%s8571_s3 + $0xc8] sm:$0xff]  ;;  %v5164_v27 = vld [vmem:[%s8571_s3 + $0xd8] sm:$0xff]  ;;  %v3776_v53 = vmul.f32 %v8921_v4, %v8922_v41  ;;  %v8925_v5 = vld [vmem:[#allocation21_spill] sm:$0xff] }
 0x527   :  { %4094 = vperm.xlu1 %4868, %v3352_v13   ;;  %4395 = vst [vmem:[%s8573_s4 + $0x140] sm:$0xff] %v4287_v44  ;;  %4396 = vst [vmem:[%s8573_s4 + $0x148] sm:$0xff] %v4288_v11  ;;  %v3354_v10 = vsub.f32 %v5163_v35, %v7667_v24  ;;  %v3356_v24 = vsub.f32 %v5164_v27, %v7693_v52  ;;  %v5165_v13 = vld [vmem:[%s8571_s3 + $0xe8] sm:$0xff]  ;;  %v3397_v11 = vld [vmem:[%s8572_s1 + $0x70] sm:$0xff] }
 0x528   :  { %v7854_v38 = vpop.permute.xlu1 %3663  ;;  %v3268_v33 = vpop.permute.xlu0 %3267  ;;  %v3914_v19 = vadd.f32 %v3806_v31, %v3428_v29  ;;  %v3358_v63 = vsub.f32 %v5165_v13, %v7720_v37  ;;  %v3883_v56 = vadd.f32 %v3775_v22, %v3397_v11  ;;  %v3884_v59 = vadd.f32 %v3776_v53, %v3398_v16  ;;  %v3401_v35 = vld [vmem:[%s8572_s1 + $0x90] sm:$0xff]  ;;  %v3406_v53 = vld [vmem:[%s8572_s1 + $0xb8] sm:$0xff] }
 0x529   :  { %v3379_v32 = vsub.f32 %v7393_v8, %v3268_v33  ;;  %v8928_v45 = vld [vmem:[#allocation25_spill] sm:$0xff] }
 0x52a   :  { %v3405_v41 = vld [vmem:[%s8572_s1 + $0xb0] sm:$0xff] }
 0x52b   :  { %3273 = vrot.lane.b32.xlu1 %v3112_v9, %s5179_s11  ;;  %4229 = vperm.xlu0 %4870, %v3379_v32   ;;  %v5168_v32 = vld [vmem:[%s8571_s3 + $0x118] sm:$0xff] }
 0x52c   :  { %v7874_v50 = vpop.permute.xlu0 %3748 }
 0x52d   :  { %v4005_v8 = vpop.permute.xlu1 %4004 }
 0x52e   :  { %v4257_v55 = vadd.f32 %v4005_v8, %v3879_v21  ;;  %v4258_v57 = vadd.f32 %v4005_v8, %v3880_v3  ;;  %v8923_v3 = vld [vmem:[#allocation22_spill] sm:$0xff]  ;;  %v5169_v8 = vld [vmem:[%s8571_s3 + $0x128] sm:$0xff] }
 0x52f   :  { %4104 = vperm.xlu1 %4868, %v3354_v10   ;;  %v3779_v28 = vmul.f32 %v8924_v47, %v8923_v3  ;;  %v3402_v10 = vld [vmem:[%s8572_s1 + $0x98] sm:$0xff] }
 0x530   :  { %4365 = vst [vmem:[%s8573_s4 + $0x50] sm:$0xff] %v4257_v55  ;;  %4366 = vst [vmem:[%s8573_s4 + $0x58] sm:$0xff] %v4258_v57 }
 0x531   :  { %v3238_v14 = vpop.permute.xlu1 %3237  ;;  %v4090_v2 = vpop.permute.xlu0 %4089  ;;  %v3887_v57 = vadd.f32 %v3779_v28, %v3401_v35  ;;  %v8933_v35 = vld [vmem:[#allocation30_spill] sm:$0xff] }
 0x532   :  { %v4291_v30 = vadd.f32 %v4090_v2, %v3913_v51  ;;  %v4292_v61 = vadd.f32 %v4090_v2, %v3914_v19  ;;  %v3364_v21 = vsub.f32 %v5168_v32, %v3238_v14  ;;  %v5170_v19 = vld [vmem:[%s8571_s3 + $0x138] sm:$0xff]  ;;  %v8932_v32 = vld [vmem:[#allocation56_spill] sm:$0xff] }
 0x533   :  { %4114 = vperm.xlu1 %4868, %v3356_v24   ;;  %v8926_v2 = vld [vmem:[#allocation26_spill] sm:$0xff] }
 0x534   :  { %4399 = vst [vmem:[%s8573_s4 + $0x160] sm:$0xff] %v4291_v30  ;;  %4400 = vst [vmem:[%s8573_s4 + $0x168] sm:$0xff] %v4292_v61  ;;  %v8927_v30 = vld [vmem:[#allocation137_spill] sm:$0xff] }
 0x535   :  { %v7906_v52 = vpop.permute.xlu1 %3673  ;;  %v3272_v44 = vpop.permute.xlu0 %3271  ;;  %v3783_v61 = vmul.f32 %v8927_v30, %v8926_v2  ;;  %v3784_v4 = vmul.f32 %v8927_v30, %v8928_v45  ;;  %v3439_v45 = vld [vmem:[%s8572_s1 + $0x1c0] sm:$0xff] }
 0x536   :  { %v3381_v37 = vsub.f32 %v7444_v15, %v3272_v44  ;;  %v3362_v15 = vsub.f32 %v5167_v0, %v7837_v18  ;;  %v3780_v18 = vmul.f32 %v8924_v47, %v8925_v5  ;;  %v3435_v5 = vld [vmem:[%s8572_s1 + $0x1a0] sm:$0xff] }
 0x537   :  { %4124 = vperm.xlu1 %4868, %v3358_v63   ;;  %v3891_v13 = vadd.f32 %v3783_v61, %v3405_v41  ;;  %v3892_v63 = vadd.f32 %v3784_v4, %v3406_v53  ;;  %v3440_v41 = vld [vmem:[%s8572_s1 + $0x1c8] sm:$0xff] }
 0x538   :  { %4239 = vperm.xlu0 %4870, %v3381_v37   ;;  %v3888_v1 = vadd.f32 %v3780_v18, %v3402_v10  ;;  %v8929_v37 = vld [vmem:[#allocation51_spill] sm:$0xff]  ;;  %v3436_v18 = vld [vmem:[%s8572_s1 + $0x1a8] sm:$0xff]  ;;  %v8934_v10 = vld [vmem:[#allocation138_spill] sm:$0xff] }
 0x539   :  { %v3809_v48 = vmul.f32 %v7655_v34, %v8929_v37 }
 0x53a   :  { %v4015_v33 = vpop.permute.xlu1 %4014 }
 0x53b   :  { %v4261_v9 = vadd.f32 %v4015_v33, %v3883_v56  ;;  %v4262_v26 = vadd.f32 %v4015_v33, %v3884_v59  ;;  %4134 = vperm.xlu1 %4868, %v3360_v49   ;;  %v8930_v49 = vld [vmem:[#allocation52_spill] sm:$0xff]  ;;  %v3431_v33 = vld [vmem:[%s8572_s1 + $0x180] sm:$0xff] }
 0x53c   :  { %v3810_v56 = vmul.f32 %v7655_v34, %v8930_v49  ;;  %v5171_v34 = vld [vmem:[%s8571_s3 + $0x148] sm:$0xff]  ;;  %v3917_v3 = vadd.f32 %v3809_v48, %v3431_v33 }
 0x53d   :  { %4369 = vst [vmem:[%s8573_s4 + $0x70] sm:$0xff] %v4261_v9  ;;  %4370 = vst [vmem:[%s8573_s4 + $0x78] sm:$0xff] %v4262_v26  ;;  %v3432_v9 = vld [vmem:[%s8572_s1 + $0x188] sm:$0xff] }
 0x53e   :  { %v3242_v42 = vpop.permute.xlu1 %3241  ;;  %v3918_v47 = vadd.f32 %v3810_v56, %v3432_v9  ;;  %v8939_v48 = vld [vmem:[#allocation64_spill] sm:$0xff] }
 0x53f   :  { %4144 = vperm.xlu1 %4868, %v3362_v15   ;;  %v3366_v55 = vsub.f32 %v5169_v8, %v3242_v42  ;;  %v8931_v15 = vld [vmem:[#allocation55_spill] sm:$0xff]  ;;  %v3787_v8 = vmul.f32 %v8934_v10, %v8933_v35  ;;  %v3822_v49 = vmul.f32 %v7752_v58, %v8939_v48 }
 0x540   :  { %v3813_v42 = vmul.f32 %v7679_v23, %v8931_v15 }
 0x542   :  { %v7936_v31 = vpop.permute.xlu1 %3683  ;;  %v3921_v30 = vadd.f32 %v3813_v42, %v3435_v5  ;;  %v5172_v5 = vld [vmem:[%s8571_s3 + $0x158] sm:$0xff] }
 0x543   :  { %4154 = vperm.xlu1 %4868, %v3364_v21   ;;  %v3814_v21 = vmul.f32 %v7679_v23, %v8932_v32 }
 0x545   :  { %v3922_v61 = vadd.f32 %v3814_v21, %v3436_v18  ;;  %v8940_v21 = vld [vmem:[#allocation67_spill] sm:$0xff] }
 0x547   :  { %4164 = vperm.xlu1 %4868, %v3366_v55   ;;  %v4025_v29 = vpop.permute.xlu1 %4024  ;;  %v8935_v55 = vld [vmem:[#allocation29_spill] sm:$0xff] }
 0x548   :  { %v4265_v27 = vadd.f32 %v4025_v29, %v3887_v57  ;;  %v4266_v24 = vadd.f32 %v4025_v29, %v3888_v1  ;;  %v3788_v57 = vmul.f32 %v8934_v10, %v8935_v55 }
 0x54a   :  { %4373 = vst [vmem:[%s8573_s4 + $0x90] sm:$0xff] %v4265_v27  ;;  %4374 = vst [vmem:[%s8573_s4 + $0x98] sm:$0xff] %v4266_v24  ;;  %v8936_v27 = vld [vmem:[#allocation59_spill] sm:$0xff] }
 0x54b   :  { %v3246_v51 = vpop.permute.xlu1 %3245  ;;  %v3817_v24 = vmul.f32 %v7703_v20, %v8936_v27 }
 0x54c   :  { %v3368_v14 = vsub.f32 %v5170_v19, %v3246_v51  ;;  %v3409_v51 = vld [vmem:[%s8572_s1 + $0xd0] sm:$0xff]  ;;  %v3410_v19 = vld [vmem:[%s8572_s1 + $0xd8] sm:$0xff] }
 0x54d   :  { %v3925_v37 = vadd.f32 %v3817_v24, %v3439_v45  ;;  %v8944_v24 = vld [vmem:[#allocation33_spill] sm:$0xff] }
 0x54e   :  { %4174 = vperm.xlu1 %4868, %v3368_v14   ;;  %v8937_v14 = vld [vmem:[#allocation60_spill] sm:$0xff] }
 0x54f   :  { %v7960_v22 = vpop.permute.xlu1 %3693  ;;  %v3818_v2 = vmul.f32 %v7703_v20, %v8937_v14  ;;  %v8945_v14 = vld [vmem:[#allocation71_spill] sm:$0xff] }
 0x551   :  { %v3926_v9 = vadd.f32 %v3818_v2, %v3440_v41  ;;  %v3829_v2 = vmul.f32 %v7854_v38, %v8945_v14  ;;  %v3413_v41 = vld [vmem:[%s8572_s1 + $0xf0] sm:$0xff] }
 0x554   :  { %v4035_v44 = vpop.permute.xlu1 %4034 }
 0x555   :  { %v4269_v11 = vadd.f32 %v4035_v44, %v3891_v13  ;;  %v4270_v16 = vadd.f32 %v4035_v44, %v3892_v63  ;;  %v3895_v13 = vadd.f32 %v3787_v8, %v3409_v51  ;;  %v3896_v63 = vadd.f32 %v3788_v57, %v3410_v19  ;;  %v8938_v44 = vld [vmem:[#allocation63_spill] sm:$0xff] }
 0x556   :  { %v7972_v59 = vpop.permute.xlu0 %3758  ;;  %v3447_v8 = vld [vmem:[%s8572_s1 + $0x200] sm:$0xff] }
 0x557   :  { %4377 = vst [vmem:[%s8573_s4 + $0xb0] sm:$0xff] %v4269_v11  ;;  %4378 = vst [vmem:[%s8573_s4 + $0xb8] sm:$0xff] %v4270_v16  ;;  %v3821_v11 = vmul.f32 %v7752_v58, %v8938_v44  ;;  %v3444_v58 = vld [vmem:[%s8572_s1 + $0x1e8] sm:$0xff] }
 0x558   :  { %v3250_v26 = vpop.permute.xlu1 %3249  ;;  %v3930_v35 = vadd.f32 %v3822_v49, %v3444_v58  ;;  %v8948_v49 = vld [vmem:[#allocation76_spill] sm:$0xff] }
 0x559   :  { %v3370_v0 = vsub.f32 %v5171_v34, %v3250_v26  ;;  %v3443_v26 = vld [vmem:[%s8572_s1 + $0x1e0] sm:$0xff] }
 0x55a   :  { %v3929_v32 = vadd.f32 %v3821_v11, %v3443_v26 }
 0x55b   :  { %v4100_v28 = vpop.permute.xlu0 %4099  ;;  %4184 = vperm.xlu1 %4868, %v3370_v0  }
 0x55c   :  { %v4295_v1 = vadd.f32 %v4100_v28, %v3917_v3  ;;  %v4296_v23 = vadd.f32 %v4100_v28, %v3918_v47  ;;  %v8003_v29 = vpop.permute.xlu1 %3703  ;;  %v3825_v3 = vmul.f32 %v7805_v39, %v8940_v21  ;;  %v8941_v47 = vld [vmem:[#allocation68_spill] sm:$0xff]  ;;  %v8949_v21 = vld [vmem:[#allocation79_spill] sm:$0xff] }
 0x55d   :  { %v3826_v28 = vmul.f32 %v7805_v39, %v8941_v47  ;;  %v3448_v39 = vld [vmem:[%s8572_s1 + $0x208] sm:$0xff] }
 0x55e   :  { %4403 = vst [vmem:[%s8573_s4 + $0x180] sm:$0xff] %v4295_v1  ;;  %4404 = vst [vmem:[%s8573_s4 + $0x188] sm:$0xff] %v4296_v23  ;;  %v8942_v1 = vld [vmem:[#allocation34_spill] sm:$0xff]  ;;  %v8943_v23 = vld [vmem:[#allocation139_spill] sm:$0xff]  ;;  %v3933_v45 = vadd.f32 %v3825_v3, %v3447_v8  ;;  %v3837_v3 = vmul.f32 %v7936_v31, %v8949_v21 }
 0x55f   :  { %v4110_v4 = vpop.permute.xlu0 %4109  ;;  %v3791_v27 = vmul.f32 %v8943_v23, %v8942_v1  ;;  %v3792_v51 = vmul.f32 %v8943_v23, %v8944_v24  ;;  %v8950_v47 = vld [vmem:[#allocation80_spill] sm:$0xff]  ;;  %v8951_v23 = vld [vmem:[#allocation38_spill] sm:$0xff]  ;;  %v8958_v21 = vld [vmem:[#allocation91_spill] sm:$0xff] }
 0x560   :  { %v4299_v20 = vadd.f32 %v4110_v4, %v3921_v30  ;;  %v4300_v53 = vadd.f32 %v4110_v4, %v3922_v61  ;;  %v8946_v30 = vld [vmem:[#allocation72_spill] sm:$0xff]  ;;  %v3934_v4 = vadd.f32 %v3826_v28, %v3448_v39  ;;  %v3838_v28 = vmul.f32 %v7936_v31, %v8950_v47  ;;  %v3459_v31 = vld [vmem:[%s8572_s1 + $0x260] sm:$0xff] }
 0x561   :  { %v4045_v16 = vpop.permute.xlu1 %4044  ;;  %v3830_v61 = vmul.f32 %v7854_v38, %v8946_v30  ;;  %v3451_v38 = vld [vmem:[%s8572_s1 + $0x220] sm:$0xff]  ;;  %v3899_v11 = vadd.f32 %v3791_v27, %v3413_v41  ;;  %v8952_v27 = vld [vmem:[#allocation140_spill] sm:$0xff]  ;;  %v3945_v41 = vadd.f32 %v3837_v3, %v3459_v31 }
 0x562   :  { %4407 = vst [vmem:[%s8573_s4 + $0x1a0] sm:$0xff] %v4299_v20  ;;  %4408 = vst [vmem:[%s8573_s4 + $0x1a8] sm:$0xff] %v4300_v53  ;;  %v4273_v56 = vadd.f32 %v4045_v16, %v3895_v13  ;;  %v4274_v33 = vadd.f32 %v4045_v16, %v3896_v63  ;;  %v3414_v20 = vld [vmem:[%s8572_s1 + $0xf8] sm:$0xff]  ;;  %v3452_v13 = vld [vmem:[%s8572_s1 + $0x228] sm:$0xff]  ;;  %v3795_v24 = vmul.f32 %v8952_v27, %v8951_v23 }
 0x563   :  { %v4120_v34 = vpop.permute.xlu0 %4119  ;;  %v3900_v16 = vadd.f32 %v3792_v51, %v3414_v20  ;;  %v3938_v26 = vadd.f32 %v3830_v61, %v3452_v13  ;;  %v8953_v51 = vld [vmem:[#allocation37_spill] sm:$0xff]  ;;  %v8955_v61 = vld [vmem:[#allocation84_spill] sm:$0xff]  ;;  %v3463_v13 = vld [vmem:[%s8572_s1 + $0x280] sm:$0xff] }
 0x564   :  { %4381 = vst [vmem:[%s8573_s4 + $0xd0] sm:$0xff] %v4273_v56  ;;  %4382 = vst [vmem:[%s8573_s4 + $0xd8] sm:$0xff] %v4274_v33  ;;  %v4303_v0 = vadd.f32 %v4120_v34, %v3925_v37  ;;  %v4304_v15 = vadd.f32 %v4120_v34, %v3926_v9  ;;  %v8947_v37 = vld [vmem:[#allocation75_spill] sm:$0xff]  ;;  %v3834_v56 = vmul.f32 %v7906_v52, %v8948_v49  ;;  %v8959_v47 = vld [vmem:[#allocation92_spill] sm:$0xff] }
 0x565   :  { %v3254_v42 = vpop.permute.xlu1 %3253  ;;  %v3833_v48 = vmul.f32 %v7906_v52, %v8947_v37  ;;  %v3937_v9 = vadd.f32 %v3829_v2, %v3451_v38  ;;  %v3456_v52 = vld [vmem:[%s8572_s1 + $0x248] sm:$0xff]  ;;  %v3796_v14 = vmul.f32 %v8952_v27, %v8953_v51  ;;  %v8954_v2 = vld [vmem:[#allocation83_spill] sm:$0xff]  ;;  %v3418_v38 = vld [vmem:[%s8572_s1 + $0x118] sm:$0xff] }
 0x566   :  { %4411 = vst [vmem:[%s8573_s4 + $0x1c0] sm:$0xff] %v4303_v0  ;;  %4412 = vst [vmem:[%s8573_s4 + $0x1c8] sm:$0xff] %v4304_v15  ;;  %v3372_v18 = vsub.f32 %v5172_v5, %v3254_v42  ;;  %v3455_v15 = vld [vmem:[%s8572_s1 + $0x240] sm:$0xff]  ;;  %v3841_v30 = vmul.f32 %v7960_v22, %v8954_v2  ;;  %v8960_v27 = vld [vmem:[#allocation42_spill] sm:$0xff] }
 0x567   :  { %v4130_v10 = vpop.permute.xlu0 %4129  ;;  %v3904_v37 = vadd.f32 %v3796_v14, %v3418_v38  ;;  %v8962_v14 = vld [vmem:[#allocation41_spill] sm:$0xff] }
 0x568   :  { %v4307_v55 = vadd.f32 %v4130_v10, %v3929_v32  ;;  %v4308_v57 = vadd.f32 %v4130_v10, %v3930_v35  ;;  %4194 = vperm.xlu1 %4868, %v3372_v18   ;;  %v3941_v18 = vadd.f32 %v3833_v48, %v3455_v15  ;;  %v3942_v35 = vadd.f32 %v3834_v56, %v3456_v52  ;;  %v5173_v10 = vld [vmem:[%s8571_s3 + $0x168] sm:$0xff]  ;;  %v8956_v48 = vld [vmem:[#allocation87_spill] sm:$0xff] }
 0x569   :  { %v8072_v19 = vpop.permute.xlu1 %3713  ;;  %v3845_v49 = vmul.f32 %v8003_v29, %v8956_v48  ;;  %v8957_v56 = vld [vmem:[#allocation88_spill] sm:$0xff] }
 0x56a   :  { %4415 = vst [vmem:[%s8573_s4 + $0x1e0] sm:$0xff] %v4307_v55  ;;  %4416 = vst [vmem:[%s8573_s4 + $0x1e8] sm:$0xff] %v4308_v57  ;;  %v3460_v55 = vld [vmem:[%s8572_s1 + $0x268] sm:$0xff]  ;;  %v3849_v3 = vmul.f32 %v8072_v19, %v8958_v21 }
 0x56b   :  { %v4140_v53 = vpop.permute.xlu0 %4139  ;;  %v3946_v20 = vadd.f32 %v3838_v28, %v3460_v55  ;;  %v3850_v28 = vmul.f32 %v8072_v19, %v8959_v47  ;;  %v5174_v55 = vld [vmem:[%s8571_s3 + $0x178] sm:$0xff]  ;;  %v3425_v47 = vld [vmem:[%s8572_s1 + $0x150] sm:$0xff] }
 0x56c   :  { %v4311_v63 = vadd.f32 %v4140_v53, %v3933_v45  ;;  %v4312_v44 = vadd.f32 %v4140_v53, %v3934_v4  ;;  %v3842_v45 = vmul.f32 %v7960_v22, %v8955_v61  ;;  %v3417_v53 = vld [vmem:[%s8572_s1 + $0x110] sm:$0xff] }
 0x56e   :  { %4419 = vst [vmem:[%s8573_s4 + $0x200] sm:$0xff] %v4311_v63  ;;  %4420 = vst [vmem:[%s8573_s4 + $0x208] sm:$0xff] %v4312_v44  ;;  %v4055_v33 = vpop.permute.xlu1 %4054  ;;  %v3464_v63 = vld [vmem:[%s8572_s1 + $0x288] sm:$0xff] }
 0x56f   :  { %v4277_v34 = vadd.f32 %v4055_v33, %v3899_v11  ;;  %v4278_v58 = vadd.f32 %v4055_v33, %v3900_v16  ;;  %v4150_v0 = vpop.permute.xlu0 %4149  ;;  %v3903_v16 = vadd.f32 %v3795_v24, %v3417_v53  ;;  %v3846_v33 = vmul.f32 %v8003_v29, %v8957_v56  ;;  %v3468_v29 = vld [vmem:[%s8572_s1 + $0x2a8] sm:$0xff]  ;;  %v8961_v24 = vld [vmem:[#allocation109_spill] sm:$0xff]  ;;  %v3422_v53 = vld [vmem:[%s8572_s1 + $0x138] sm:$0xff] }
 0x570   :  { %v4315_v42 = vadd.f32 %v4150_v0, %v3937_v9  ;;  %v4316_v32 = vadd.f32 %v4150_v0, %v3938_v26  ;;  %v3949_v9 = vadd.f32 %v3841_v30, %v3463_v13  ;;  %v3950_v26 = vadd.f32 %v3842_v45, %v3464_v63  ;;  %v3467_v0 = vld [vmem:[%s8572_s1 + $0x2a0] sm:$0xff]  ;;  %v8963_v13 = vld [vmem:[#allocation93_spill] sm:$0xff]  ;;  %v3476_v56 = vld [vmem:[%s8572_s1 + $0x2e8] sm:$0xff] }
 0x571   :  { %4385 = vst [vmem:[%s8573_s4 + $0xf0] sm:$0xff] %v4277_v34  ;;  %4386 = vst [vmem:[%s8573_s4 + $0xf8] sm:$0xff] %v4278_v58  ;;  %v3799_v51 = vmul.f32 %v8961_v24, %v8960_v27  ;;  %v3800_v2 = vmul.f32 %v8961_v24, %v8962_v14  ;;  %v5176_v14 = vld [vmem:[%s8571_s3 + $0x198] sm:$0xff] }
 0x572   :  { %4423 = vst [vmem:[%s8573_s4 + $0x220] sm:$0xff] %v4315_v42  ;;  %4424 = vst [vmem:[%s8573_s4 + $0x228] sm:$0xff] %v4316_v32  ;;  %v3258_v5 = vpop.permute.xlu1 %3257 }
 0x573   :  { %v3374_v8 = vsub.f32 %v5173_v10, %v3258_v5  ;;  %v4160_v39 = vpop.permute.xlu0 %4159  ;;  %v3953_v5 = vadd.f32 %v3845_v49, %v3467_v0  ;;  %v3471_v10 = vld [vmem:[%s8572_s1 + $0x2c0] sm:$0xff] }
 0x574   :  { %v4319_v57 = vadd.f32 %v4160_v39, %v3941_v18  ;;  %v4320_v1 = vadd.f32 %v4160_v39, %v3942_v35  ;;  %v3954_v18 = vadd.f32 %v3846_v33, %v3468_v29  ;;  %v3475_v49 = vld [vmem:[%s8572_s1 + $0x2e0] sm:$0xff] }
 0x575   :  { %4204 = vperm.xlu1 %4868, %v3374_v8   ;;  %v3472_v8 = vld [vmem:[%s8572_s1 + $0x2c8] sm:$0xff] }
 0x576   :  { %4427 = vst [vmem:[%s8573_s4 + $0x240] sm:$0xff] %v4319_v57  ;;  %4428 = vst [vmem:[%s8573_s4 + $0x248] sm:$0xff] %v4320_v1  ;;  %v3724_v4 = vpop.permute.xlu1 %3723  ;;  %v3957_v1 = vadd.f32 %v3849_v3, %v3471_v10  ;;  %v3958_v23 = vadd.f32 %v3850_v28, %v3472_v8  ;;  %v3426_v28 = vld [vmem:[%s8572_s1 + $0x158] sm:$0xff] }
 0x577   :  { %v4170_v22 = vpop.permute.xlu0 %4169  ;;  %v3853_v63 = vmul.f32 %v3724_v4, %v8963_v13  ;;  %v8969_v10 = vld [vmem:[#allocation98_spill] sm:$0xff]  ;;  %v3429_v13 = vld [vmem:[%s8572_s1 + $0x170] sm:$0xff] }
 0x578   :  { %v4323_v44 = vadd.f32 %v4170_v22, %v3945_v41  ;;  %v4324_v11 = vadd.f32 %v4170_v22, %v3946_v20  ;;  %v3421_v20 = vld [vmem:[%s8572_s1 + $0x130] sm:$0xff]  ;;  %v3908_v22 = vadd.f32 %v3800_v2, %v3422_v53 }
 0x579   :  { %v3907_v38 = vadd.f32 %v3799_v51, %v3421_v20  ;;  %v8972_v53 = vld [vmem:[#allocation49_spill] sm:$0xff] }
 0x57a   :  { %4431 = vst [vmem:[%s8573_s4 + $0x260] sm:$0xff] %v4323_v44  ;;  %4432 = vst [vmem:[%s8573_s4 + $0x268] sm:$0xff] %v4324_v11  ;;  %v8964_v44 = vld [vmem:[#allocation94_spill] sm:$0xff] }
 0x57b   :  { %v4180_v34 = vpop.permute.xlu0 %4179  ;;  %v4065_v58 = vpop.permute.xlu1 %4064  ;;  %v3854_v11 = vmul.f32 %v3724_v4, %v8964_v44  ;;  %v3961_v4 = vadd.f32 %v3853_v63, %v3475_v49  ;;  %v3430_v63 = vld [vmem:[%s8572_s1 + $0x178] sm:$0xff] }
 0x57c   :  { %v4327_v15 = vadd.f32 %v4180_v34, %v3949_v9  ;;  %v4328_v52 = vadd.f32 %v4180_v34, %v3950_v26  ;;  %v4281_v42 = vadd.f32 %v4065_v58, %v3903_v16  ;;  %v4282_v32 = vadd.f32 %v4065_v58, %v3904_v37  ;;  %v5175_v34 = vld [vmem:[%s8571_s3 + $0x188] sm:$0xff] }
 0x57d   :  { %v3962_v33 = vadd.f32 %v3854_v11, %v3476_v56 }
 0x57e   :  { %4435 = vst [vmem:[%s8573_s4 + $0x280] sm:$0xff] %v4327_v15  ;;  %4436 = vst [vmem:[%s8573_s4 + $0x288] sm:$0xff] %v4328_v52  ;;  %v8965_v15 = vld [vmem:[#allocation46_spill] sm:$0xff] }
 0x57f   :  { %4389 = vst [vmem:[%s8573_s4 + $0x110] sm:$0xff] %v4281_v42  ;;  %4390 = vst [vmem:[%s8573_s4 + $0x118] sm:$0xff] %v4282_v32  ;;  %v4190_v35 = vpop.permute.xlu0 %4189  ;;  %v3262_v19 = vpop.permute.xlu1 %3261  ;;  %v8966_v52 = vld [vmem:[#allocation114_spill] sm:$0xff]  ;;  %v8967_v32 = vld [vmem:[#allocation45_spill] sm:$0xff] }
 0x580   :  { %v4331_v39 = vadd.f32 %v4190_v35, %v3953_v5  ;;  %v4332_v31 = vadd.f32 %v4190_v35, %v3954_v18  ;;  %v3376_v57 = vsub.f32 %v5174_v55, %v3262_v19  ;;  %v3803_v42 = vmul.f32 %v8966_v52, %v8965_v15  ;;  %v8968_v35 = vld [vmem:[#allocation97_spill] sm:$0xff] }
 0x581   :  { %v3804_v21 = vmul.f32 %v8966_v52, %v8967_v32  ;;  %v3433_v32 = vld [vmem:[%s8572_s1 + $0x190] sm:$0xff] }
 0x582   :  { %4439 = vst [vmem:[%s8573_s4 + $0x2a0] sm:$0xff] %v4331_v39  ;;  %4440 = vst [vmem:[%s8573_s4 + $0x2a8] sm:$0xff] %v4332_v31  ;;  %4214 = vperm.xlu1 %4868, %v3376_v57   ;;  %v3911_v5 = vadd.f32 %v3803_v42, %v3425_v47  ;;  %v3479_v57 = vld [vmem:[%s8572_s1 + $0x300] sm:$0xff] }
 0x583   :  { %v4200_v30 = vpop.permute.xlu0 %4199  ;;  %v3734_v61 = vpop.permute.xlu1 %3733  ;;  %v3912_v18 = vadd.f32 %v3804_v21, %v3426_v28  ;;  %v3434_v21 = vld [vmem:[%s8572_s1 + $0x198] sm:$0xff] }
 0x584   :  { %v4335_v45 = vadd.f32 %v4200_v30, %v3957_v1  ;;  %v4336_v41 = vadd.f32 %v4200_v30, %v3958_v23  ;;  %v3857_v19 = vmul.f32 %v3734_v61, %v8968_v35  ;;  %v3858_v8 = vmul.f32 %v3734_v61, %v8969_v10  ;;  %v3480_v1 = vld [vmem:[%s8572_s1 + $0x308] sm:$0xff] }
 0x586   :  { %4443 = vst [vmem:[%s8573_s4 + $0x2c0] sm:$0xff] %v4335_v45  ;;  %4444 = vst [vmem:[%s8573_s4 + $0x2c8] sm:$0xff] %v4336_v41  ;;  %v3965_v23 = vadd.f32 %v3857_v19, %v3479_v57  ;;  %v3966_v27 = vadd.f32 %v3858_v8, %v3480_v1  ;;  %v8970_v45 = vld [vmem:[#allocation50_spill] sm:$0xff]  ;;  %v8971_v41 = vld [vmem:[#allocation117_spill] sm:$0xff] }
 0x587   :  { %v3807_v20 = vmul.f32 %v8971_v41, %v8970_v45  ;;  %v8978_v19 = vld [vmem:[#allocation57_spill] sm:$0xff] }
 0x588   :  { %v4075_v16 = vpop.permute.xlu1 %4074  ;;  %v3816_v10 = vmul.f32 %v7363_v40, %v8978_v19  ;;  %v3441_v45 = vld [vmem:[%s8572_s1 + $0x1d0] sm:$0xff]  ;;  %v8988_v19 = vld [vmem:[#allocation74_spill] sm:$0xff] }
 0x589   :  { %v4285_v37 = vadd.f32 %v4075_v16, %v3907_v38  ;;  %v4286_v48 = vadd.f32 %v4075_v16, %v3908_v22  ;;  %v3808_v38 = vmul.f32 %v8971_v41, %v8972_v53  ;;  %v3915_v44 = vadd.f32 %v3807_v20, %v3429_v13  ;;  %v8973_v16 = vld [vmem:[#allocation101_spill] sm:$0xff]  ;;  %v3442_v41 = vld [vmem:[%s8572_s1 + $0x1d8] sm:$0xff] }
 0x58a   :  { %v8982_v20 = vld [vmem:[#allocation105_spill] sm:$0xff] }
 0x58b   :  { %4393 = vst [vmem:[%s8573_s4 + $0x130] sm:$0xff] %v4285_v37  ;;  %4394 = vst [vmem:[%s8573_s4 + $0x138] sm:$0xff] %v4286_v48  ;;  %v3916_v11 = vadd.f32 %v3808_v38, %v3430_v63  ;;  %v8974_v48 = vld [vmem:[#allocation102_spill] sm:$0xff] }
 0x58c   :  { %v3266_v9 = vpop.permute.xlu1 %3265  ;;  %v4210_v26 = vpop.permute.xlu0 %4209  ;;  %v8983_v38 = vld [vmem:[#allocation106_spill] sm:$0xff] }
 0x58d   :  { %v3378_v58 = vsub.f32 %v5175_v34, %v3266_v9  ;;  %v4339_v0 = vadd.f32 %v4210_v26, %v3961_v4  ;;  %v4340_v29 = vadd.f32 %v4210_v26, %v3962_v33  ;;  %v3483_v9 = vld [vmem:[%s8572_s1 + $0x320] sm:$0xff]  ;;  %v3484_v26 = vld [vmem:[%s8572_s1 + $0x328] sm:$0xff]  ;;  %v8975_v34 = vld [vmem:[#allocation54_spill] sm:$0xff] }
 0x58f   :  { %4224 = vperm.xlu1 %4868, %v3378_v58   ;;  %4447 = vst [vmem:[%s8573_s4 + $0x2e0] sm:$0xff] %v4339_v0  ;;  %4448 = vst [vmem:[%s8573_s4 + $0x2e8] sm:$0xff] %v4340_v29  ;;  %v3811_v58 = vmul.f32 %v7332_v46, %v8975_v34  ;;  %v8976_v0 = vld [vmem:[#allocation53_spill] sm:$0xff] }
 0x590   :  { %v3744_v3 = vpop.permute.xlu1 %3743  ;;  %v3812_v29 = vmul.f32 %v7332_v46, %v8976_v0 }
 0x591   :  { %v3861_v37 = vmul.f32 %v3744_v3, %v8973_v16  ;;  %v3862_v49 = vmul.f32 %v3744_v3, %v8974_v48  ;;  %v5177_v3 = vld [vmem:[%s8571_s3 + $0x1a8] sm:$0xff]  ;;  %v3919_v8 = vadd.f32 %v3811_v58, %v3433_v32 }
 0x593   :  { %v3969_v15 = vadd.f32 %v3861_v37, %v3483_v9  ;;  %v3970_v52 = vadd.f32 %v3862_v49, %v3484_v26  ;;  %v8985_v37 = vld [vmem:[#allocation65_spill] sm:$0xff]  ;;  %v3487_v49 = vld [vmem:[%s8572_s1 + $0x340] sm:$0xff] }
 0x594   :  { %v3824_v48 = vmul.f32 %v7435_v25, %v8985_v37  ;;  %v8993_v37 = vld [vmem:[#allocation81_spill] sm:$0xff] }
 0x595   :  { %v4085_v39 = vpop.permute.xlu1 %4084 }
 0x596   :  { %v4289_v31 = vadd.f32 %v4085_v39, %v3911_v5  ;;  %v4290_v55 = vadd.f32 %v4085_v39, %v3912_v18  ;;  %v8977_v18 = vld [vmem:[#allocation58_spill] sm:$0xff]  ;;  %v3920_v39 = vadd.f32 %v3812_v29, %v3434_v21  ;;  %v8987_v21 = vld [vmem:[#allocation69_spill] sm:$0xff] }
 0x597   :  { %v3815_v35 = vmul.f32 %v7363_v40, %v8977_v18  ;;  %v3438_v40 = vld [vmem:[%s8572_s1 + $0x1b8] sm:$0xff] }
 0x598   :  { %4397 = vst [vmem:[%s8573_s4 + $0x150] sm:$0xff] %v4289_v31  ;;  %4398 = vst [vmem:[%s8573_s4 + $0x158] sm:$0xff] %v4290_v55  ;;  %v3437_v55 = vld [vmem:[%s8572_s1 + $0x1b0] sm:$0xff]  ;;  %v3450_v18 = vld [vmem:[%s8572_s1 + $0x218] sm:$0xff] }
 0x599   :  { %v3270_v24 = vpop.permute.xlu1 %3269  ;;  %v4220_v51 = vpop.permute.xlu0 %4219 }
 0x59a   :  { %v3380_v2 = vsub.f32 %v5176_v14, %v3270_v24  ;;  %v4343_v30 = vadd.f32 %v4220_v51, %v3965_v23  ;;  %v4344_v61 = vadd.f32 %v4220_v51, %v3966_v27  ;;  %v8979_v23 = vld [vmem:[#allocation62_spill] sm:$0xff]  ;;  %v8981_v51 = vld [vmem:[#allocation61_spill] sm:$0xff] }
 0x59b   :  { %v8980_v27 = vld [vmem:[#allocation110_spill] sm:$0xff] }
 0x59c   :  { %4234 = vperm.xlu1 %4868, %v3380_v2   ;;  %4451 = vst [vmem:[%s8573_s4 + $0x300] sm:$0xff] %v4343_v30  ;;  %4452 = vst [vmem:[%s8573_s4 + $0x308] sm:$0xff] %v4344_v61  ;;  %v3819_v24 = vmul.f32 %v8980_v27, %v8979_v23  ;;  %v3820_v14 = vmul.f32 %v8980_v27, %v8981_v51  ;;  %v3923_v2 = vadd.f32 %v3815_v35, %v3437_v55  ;;  %v8990_v27 = vld [vmem:[#allocation78_spill] sm:$0xff]  ;;  %v8991_v51 = vld [vmem:[#allocation77_spill] sm:$0xff] }
 0x59d   :  { %v3754_v22 = vpop.permute.xlu1 %3753  ;;  %v3924_v30 = vadd.f32 %v3816_v10, %v3438_v40  ;;  %v3831_v10 = vmul.f32 %v7504_v60, %v8988_v19 }
 0x59e   :  { %v3865_v53 = vmul.f32 %v3754_v22, %v8982_v20  ;;  %v3866_v13 = vmul.f32 %v3754_v22, %v8983_v38  ;;  %v3927_v22 = vadd.f32 %v3819_v24, %v3441_v45  ;;  %v3835_v24 = vmul.f32 %v7540_v43, %v8990_v27  ;;  %v3457_v45 = vld [vmem:[%s8572_s1 + $0x250] sm:$0xff] }
 0x5a0   :  { %v3973_v58 = vadd.f32 %v3865_v53, %v3487_v49  ;;  %v3943_v53 = vadd.f32 %v3835_v24, %v3457_v45  ;;  %v3461_v49 = vld [vmem:[%s8572_s1 + $0x270] sm:$0xff] }
 0x5a2   :  { %v4095_v56 = vpop.permute.xlu1 %4094 }
 0x5a3   :  { %v4293_v4 = vadd.f32 %v4095_v56, %v3915_v44  ;;  %v4294_v33 = vadd.f32 %v4095_v56, %v3916_v11  ;;  %v8984_v11 = vld [vmem:[#allocation66_spill] sm:$0xff]  ;;  %v3488_v56 = vld [vmem:[%s8572_s1 + $0x348] sm:$0xff] }
 0x5a4   :  { %v3823_v16 = vmul.f32 %v7435_v25, %v8984_v11  ;;  %v3445_v25 = vld [vmem:[%s8572_s1 + $0x1f0] sm:$0xff]  ;;  %v3974_v0 = vadd.f32 %v3866_v13, %v3488_v56  ;;  %v8992_v11 = vld [vmem:[#allocation82_spill] sm:$0xff] }
 0x5a5   :  { %4401 = vst [vmem:[%s8573_s4 + $0x170] sm:$0xff] %v4293_v4  ;;  %4402 = vst [vmem:[%s8573_s4 + $0x178] sm:$0xff] %v4294_v33  ;;  %v3928_v4 = vadd.f32 %v3820_v14, %v3442_v41  ;;  %v3446_v33 = vld [vmem:[%s8572_s1 + $0x1f8] sm:$0xff]  ;;  %v3836_v14 = vmul.f32 %v7540_v43, %v8991_v51  ;;  %v9001_v51 = vld [vmem:[#allocation100_spill] sm:$0xff] }
 0x5a6   :  { %v3274_v42 = vpop.permute.xlu1 %3273  ;;  %v4230_v46 = vpop.permute.xlu0 %4229  ;;  %v3458_v41 = vld [vmem:[%s8572_s1 + $0x258] sm:$0xff] }
 0x5a7   :  { %v3382_v47 = vsub.f32 %v5177_v3, %v3274_v42  ;;  %v4347_v28 = vadd.f32 %v4230_v46, %v3969_v15  ;;  %v4348_v5 = vadd.f32 %v4230_v46, %v3970_v52  ;;  %v3931_v15 = vadd.f32 %v3823_v16, %v3445_v25  ;;  %v8986_v42 = vld [vmem:[#allocation70_spill] sm:$0xff] }
 0x5a8   :  { %v3932_v52 = vadd.f32 %v3824_v48, %v3446_v33  ;;  %v3827_v32 = vmul.f32 %v7464_v62, %v8986_v42  ;;  %v3828_v46 = vmul.f32 %v7464_v62, %v8987_v21  ;;  %v3944_v38 = vadd.f32 %v3836_v14, %v3458_v41  ;;  %v3462_v56 = vld [vmem:[%s8572_s1 + $0x278] sm:$0xff] }
 0x5a9   :  { %4244 = vperm.xlu1 %4868, %v3382_v47   ;;  %4455 = vst [vmem:[%s8573_s4 + $0x320] sm:$0xff] %v4347_v28  ;;  %4456 = vst [vmem:[%s8573_s4 + $0x328] sm:$0xff] %v4348_v5  ;;  %v3449_v5 = vld [vmem:[%s8572_s1 + $0x210] sm:$0xff]  ;;  %v3839_v16 = vmul.f32 %v7588_v7, %v8992_v11  ;;  %v3840_v48 = vmul.f32 %v7588_v7, %v8993_v37  ;;  %v3856_v14 = vmul.f32 %v7775_v36, %v9001_v51 }
 0x5aa   :  { %v4105_v31 = vpop.permute.xlu1 %4104  ;;  %v3936_v55 = vadd.f32 %v3828_v46, %v3450_v18 }
 0x5ab   :  { %v4297_v57 = vadd.f32 %v4105_v31, %v3919_v8  ;;  %v4298_v1 = vadd.f32 %v4105_v31, %v3920_v39  ;;  %v8989_v8 = vld [vmem:[#allocation73_spill] sm:$0xff]  ;;  %v3935_v31 = vadd.f32 %v3827_v32, %v3449_v5  ;;  %v3470_v5 = vld [vmem:[%s8572_s1 + $0x2b8] sm:$0xff] }
 0x5ac   :  { %v3832_v39 = vmul.f32 %v7504_v60, %v8989_v8 }
 0x5ad   :  { %4405 = vst [vmem:[%s8573_s4 + $0x190] sm:$0xff] %v4297_v57  ;;  %4406 = vst [vmem:[%s8573_s4 + $0x198] sm:$0xff] %v4298_v1  ;;  %v3453_v57 = vld [vmem:[%s8572_s1 + $0x230] sm:$0xff]  ;;  %v3454_v1 = vld [vmem:[%s8572_s1 + $0x238] sm:$0xff] }
 0x5ae   :  { %v4115_v61 = vpop.permute.xlu1 %4114 }
 0x5af   :  { %v4301_v63 = vadd.f32 %v4115_v61, %v3923_v2  ;;  %v4302_v44 = vadd.f32 %v4115_v61, %v3924_v30  ;;  %v3939_v2 = vadd.f32 %v3831_v10, %v3453_v57  ;;  %v3940_v30 = vadd.f32 %v3832_v39, %v3454_v1  ;;  %v8999_v39 = vld [vmem:[#allocation96_spill] sm:$0xff] }
 0x5b1   :  { %4409 = vst [vmem:[%s8573_s4 + $0x1b0] sm:$0xff] %v4301_v63  ;;  %4410 = vst [vmem:[%s8573_s4 + $0x1b8] sm:$0xff] %v4302_v44 }
 0x5b2   :  { %v4125_v9 = vpop.permute.xlu1 %4124 }
 0x5b3   :  { %v4305_v26 = vadd.f32 %v4125_v9, %v3927_v22  ;;  %v4306_v34 = vadd.f32 %v4125_v9, %v3928_v4  ;;  %v4240_v29 = vpop.permute.xlu0 %4239  ;;  %v3947_v22 = vadd.f32 %v3839_v16, %v3461_v49  ;;  %v3948_v4 = vadd.f32 %v3840_v48, %v3462_v56  ;;  %v8994_v9 = vld [vmem:[#allocation86_spill] sm:$0xff] }
 0x5b4   :  { %v4351_v3 = vadd.f32 %v4240_v29, %v3973_v58  ;;  %v4352_v47 = vadd.f32 %v4240_v29, %v3974_v0  ;;  %v3465_v0 = vld [vmem:[%s8572_s1 + $0x290] sm:$0xff]  ;;  %v3466_v29 = vld [vmem:[%s8572_s1 + $0x298] sm:$0xff] }
 0x5b5   :  { %4413 = vst [vmem:[%s8573_s4 + $0x1d0] sm:$0xff] %v4305_v26  ;;  %4414 = vst [vmem:[%s8573_s4 + $0x1d8] sm:$0xff] %v4306_v34  ;;  %v3843_v26 = vmul.f32 %v7635_v54, %v8994_v9  ;;  %v8995_v34 = vld [vmem:[#allocation85_spill] sm:$0xff] }
 0x5b6   :  { %v4135_v28 = vpop.permute.xlu1 %4134  ;;  %4459 = vst [vmem:[%s8573_s4 + $0x340] sm:$0xff] %v4351_v3  ;;  %4460 = vst [vmem:[%s8573_s4 + $0x348] sm:$0xff] %v4352_v47  ;;  %v3844_v58 = vmul.f32 %v7635_v54, %v8995_v34  ;;  %v8996_v54 = vld [vmem:[#allocation89_spill] sm:$0xff]  ;;  %v8997_v3 = vld [vmem:[#allocation90_spill] sm:$0xff] }
 0x5b7   :  { %v4309_v62 = vadd.f32 %v4135_v28, %v3931_v15  ;;  %v4310_v35 = vadd.f32 %v4135_v28, %v3932_v52  ;;  %v3951_v15 = vadd.f32 %v3843_v26, %v3465_v0  ;;  %v3847_v46 = vmul.f32 %v7675_v6, %v8996_v54  ;;  %v3469_v28 = vld [vmem:[%s8572_s1 + $0x2b0] sm:$0xff] }
 0x5b8   :  { %v3952_v52 = vadd.f32 %v3844_v58, %v3466_v29  ;;  %v3848_v47 = vmul.f32 %v7675_v6, %v8997_v3  ;;  %v8998_v6 = vld [vmem:[#allocation95_spill] sm:$0xff] }
 0x5b9   :  { %4417 = vst [vmem:[%s8573_s4 + $0x1f0] sm:$0xff] %v4309_v62  ;;  %4418 = vst [vmem:[%s8573_s4 + $0x1f8] sm:$0xff] %v4310_v35  ;;  %v3955_v18 = vadd.f32 %v3847_v46, %v3469_v28  ;;  %v3851_v8 = vmul.f32 %v7718_v12, %v8998_v6  ;;  %v9007_v29 = vld [vmem:[#allocation119_spill] sm:$0xff] }
 0x5ba   :  { %v4145_v40 = vpop.permute.xlu1 %4144  ;;  %v3956_v62 = vadd.f32 %v3848_v47, %v3470_v5 }
 0x5bb   :  { %v4313_v60 = vadd.f32 %v4145_v40, %v3935_v31  ;;  %v4314_v23 = vadd.f32 %v4145_v40, %v3936_v55  ;;  %v3852_v31 = vmul.f32 %v7718_v12, %v8999_v39  ;;  %v3473_v55 = vld [vmem:[%s8572_s1 + $0x2d0] sm:$0xff]  ;;  %v3474_v40 = vld [vmem:[%s8572_s1 + $0x2d8] sm:$0xff]  ;;  %v9000_v12 = vld [vmem:[#allocation99_spill] sm:$0xff] }
 0x5bc   :  { %v3959_v57 = vadd.f32 %v3851_v8, %v3473_v55  ;;  %v3855_v24 = vmul.f32 %v7775_v36, %v9000_v12  ;;  %v9002_v36 = vld [vmem:[#allocation103_spill] sm:$0xff] }
 0x5bd   :  { %4421 = vst [vmem:[%s8573_s4 + $0x210] sm:$0xff] %v4313_v60  ;;  %4422 = vst [vmem:[%s8573_s4 + $0x218] sm:$0xff] %v4314_v23  ;;  %v3960_v1 = vadd.f32 %v3852_v31, %v3474_v40 }
 0x5be   :  { %v4155_v61 = vpop.permute.xlu1 %4154 }
 0x5bf   :  { %v4317_v43 = vadd.f32 %v4155_v61, %v3939_v2  ;;  %v4318_v20 = vadd.f32 %v4155_v61, %v3940_v30  ;;  %v3477_v2 = vld [vmem:[%s8572_s1 + $0x2f0] sm:$0xff]  ;;  %v3478_v30 = vld [vmem:[%s8572_s1 + $0x2f8] sm:$0xff] }
 0x5c0   :  { %v3963_v61 = vadd.f32 %v3855_v24, %v3477_v2  ;;  %v3964_v45 = vadd.f32 %v3856_v14, %v3478_v30 }
 0x5c1   :  { %4425 = vst [vmem:[%s8573_s4 + $0x230] sm:$0xff] %v4317_v43  ;;  %4426 = vst [vmem:[%s8573_s4 + $0x238] sm:$0xff] %v4318_v20 }
 0x5c2   :  { %v4165_v13 = vpop.permute.xlu1 %4164 }
 0x5c3   :  { %v4321_v63 = vadd.f32 %v4165_v13, %v3943_v53  ;;  %v4322_v44 = vadd.f32 %v4165_v13, %v3944_v38  ;;  %v3859_v53 = vmul.f32 %v7822_v17, %v9002_v36  ;;  %v9003_v38 = vld [vmem:[#allocation104_spill] sm:$0xff] }
 0x5c4   :  { %v3860_v13 = vmul.f32 %v7822_v17, %v9003_v38  ;;  %v9004_v17 = vld [vmem:[#allocation107_spill] sm:$0xff] }
 0x5c5   :  { %4429 = vst [vmem:[%s8573_s4 + $0x250] sm:$0xff] %v4321_v63  ;;  %4430 = vst [vmem:[%s8573_s4 + $0x258] sm:$0xff] %v4322_v44  ;;  %v3481_v63 = vld [vmem:[%s8572_s1 + $0x310] sm:$0xff]  ;;  %v3482_v44 = vld [vmem:[%s8572_s1 + $0x318] sm:$0xff]  ;;  %v3863_v56 = vmul.f32 %v7874_v50, %v9004_v17 }
 0x5c6   :  { %v3967_v11 = vadd.f32 %v3859_v53, %v3481_v63  ;;  %v3968_v16 = vadd.f32 %v3860_v13, %v3482_v44 }
 0x5c9   :  { %v4175_v25 = vpop.permute.xlu1 %4174 }
 0x5ca   :  { %v4325_v7 = vadd.f32 %v4175_v25, %v3947_v22  ;;  %v4326_v33 = vadd.f32 %v4175_v25, %v3948_v4  ;;  %v9005_v22 = vld [vmem:[#allocation108_spill] sm:$0xff]  ;;  %v3485_v25 = vld [vmem:[%s8572_s1 + $0x330] sm:$0xff] }
 0x5cb   :  { %v3864_v4 = vmul.f32 %v7874_v50, %v9005_v22  ;;  %v9006_v50 = vld [vmem:[#allocation118_spill] sm:$0xff] }
 0x5cc   :  { %4433 = vst [vmem:[%s8573_s4 + $0x270] sm:$0xff] %v4325_v7  ;;  %4434 = vst [vmem:[%s8573_s4 + $0x278] sm:$0xff] %v4326_v33  ;;  %v3486_v7 = vld [vmem:[%s8572_s1 + $0x338] sm:$0xff]  ;;  %v3971_v33 = vadd.f32 %v3863_v56, %v3485_v25  ;;  %v3867_v0 = vmul.f32 %v7972_v59, %v9006_v50 }
 0x5cd   :  { %v3972_v9 = vadd.f32 %v3864_v4, %v3486_v7 }
 0x5d6   :  { %v4185_v42 = vpop.permute.xlu1 %4184 }
 0x5d7   :  { %v4329_v32 = vadd.f32 %v4185_v42, %v3951_v15  ;;  %v4330_v21 = vadd.f32 %v4185_v42, %v3952_v52  ;;  %v3868_v15 = vmul.f32 %v7972_v59, %v9007_v29  ;;  %v3489_v52 = vld [vmem:[%s8572_s1 + $0x350] sm:$0xff]  ;;  %v3490_v42 = vld [vmem:[%s8572_s1 + $0x358] sm:$0xff] }
 0x5d9   :  { %4437 = vst [vmem:[%s8573_s4 + $0x290] sm:$0xff] %v4329_v32  ;;  %4438 = vst [vmem:[%s8573_s4 + $0x298] sm:$0xff] %v4330_v21  ;;  %v3975_v32 = vadd.f32 %v3867_v0, %v3489_v52  ;;  %v3976_v21 = vadd.f32 %v3868_v15, %v3490_v42 }
 0x5e3   :  { %v4195_v35 = vpop.permute.xlu1 %4194 }
 0x5e4   :  { %v4333_v19 = vadd.f32 %v4195_v35, %v3955_v18  ;;  %v4334_v10 = vadd.f32 %v4195_v35, %v3956_v62 }
 0x5e6   :  { %4441 = vst [vmem:[%s8573_s4 + $0x2b0] sm:$0xff] %v4333_v19  ;;  %4442 = vst [vmem:[%s8573_s4 + $0x2b8] sm:$0xff] %v4334_v10 }
 0x5f0   :  { %v4205_v60 = vpop.permute.xlu1 %4204 }
 0x5f1   :  { %v4337_v23 = vadd.f32 %v4205_v60, %v3959_v57  ;;  %v4338_v27 = vadd.f32 %v4205_v60, %v3960_v1 }
 0x5f3   :  { %4445 = vst [vmem:[%s8573_s4 + $0x2d0] sm:$0xff] %v4337_v23  ;;  %4446 = vst [vmem:[%s8573_s4 + $0x2d8] sm:$0xff] %v4338_v27 }
 0x5fd   :  { %v4215_v41 = vpop.permute.xlu1 %4214 }
 0x5fe   :  { %v4341_v43 = vadd.f32 %v4215_v41, %v3963_v61  ;;  %v4342_v20 = vadd.f32 %v4215_v41, %v3964_v45 }
 0x600   :  { %4449 = vst [vmem:[%s8573_s4 + $0x2f0] sm:$0xff] %v4341_v43  ;;  %4450 = vst [vmem:[%s8573_s4 + $0x2f8] sm:$0xff] %v4342_v20 }
 0x60a   :  { %v4225_v37 = vpop.permute.xlu1 %4224 }
 0x60b   :  { %v4345_v48 = vadd.f32 %v4225_v37, %v3967_v11  ;;  %v4346_v49 = vadd.f32 %v4225_v37, %v3968_v16 }
 0x60d   :  { %4453 = vst [vmem:[%s8573_s4 + $0x310] sm:$0xff] %v4345_v48  ;;  %4454 = vst [vmem:[%s8573_s4 + $0x318] sm:$0xff] %v4346_v49 }
 0x617   :  { %v4235_v26 = vpop.permute.xlu1 %4234 }
 0x618   :  { %v4349_v34 = vadd.f32 %v4235_v26, %v3971_v33  ;;  %v4350_v58 = vadd.f32 %v4235_v26, %v3972_v9 }
 0x61a   :  { %4457 = vst [vmem:[%s8573_s4 + $0x330] sm:$0xff] %v4349_v34  ;;  %4458 = vst [vmem:[%s8573_s4 + $0x338] sm:$0xff] %v4350_v58 }
 0x624   :  { %v4245_v54 = vpop.permute.xlu1 %4244 }
 0x625   :  { %v4353_v46 = vadd.f32 %v4245_v54, %v3975_v32  ;;  %v4354_v3 = vadd.f32 %v4245_v54, %v3976_v21 }
 0x627   :  { %4461 = vst [vmem:[%s8573_s4 + $0x350] sm:$0xff] %v4353_v46  ;;  %4462 = vst [vmem:[%s8573_s4 + $0x358] sm:$0xff] %v4354_v3 }

</bundles_post_ra>
